<compile_context>
chip_gen: v7x
topology: tpu7x:2x2x1
jax: 0.10.0
libtpu: 0.0.40
codegen_flags: <defaults>
</compile_context>

<pallas_src>
import jax
import jax.numpy as jnp
from jax.experimental import pallas as pl
from jax.experimental.pallas import tpu as pltpu

# ---- static config (small shapes consistent with the module) ----
B = 2
C_IN = 1                    # DenseNet121(in_channels=1)
H = W = 16
HW = H * W
KH = KW = 3
K = KH * KW * C_IN          # 9 conv taps
C0 = 32                     # conv-stem output channels (skeleton)
FEAT = 512                  # backbone feature dim (out_channels=512)
NUM_CONDITIONS = 3
NUM_LEVELS = 5
NUM_HEADS_OUT = NUM_CONDITIONS + NUM_LEVELS
BN_EPS = 1e-5

# lane-aligned padded sizes
C0P = 128                   # padded conv-stem channels
HEADP = 128                 # padded fused-head width
TAP_ROWS = 16               # rows 0..8 = folded conv taps, row 9 = folded bias


def spine_kernel(xpad_ref, wtaps_ref, wcomb_ref, out_ref):
    """Grid-less single program; 3 VMEM operands in, 1 lane-dense slab out."""
    # Conv stem (3x3, stride 1, pad 1, Cin=1) as 9 static-shift VPU MACs.
    # BatchNorm is pre-folded into the taps; folded bias sits in tap row K.
    acc = jnp.zeros((B, H, W, C0P), jnp.float32)
    for k in range(K):
        di, dj = divmod(k, KW)
        xs = xpad_ref[:, di:di + H, dj:dj + W, :]          # (B, H, W, 1)
        acc = acc + xs * wtaps_ref[k]                      # lane-broadcast MAC
    y = jnp.maximum(acc + wtaps_ref[K], 0.0)               # folded bias + ReLU

    # Global average pool as a plain sum (the 1/HW factor is folded into wcomb).
    gap = y.sum(axis=1).sum(axis=1)                        # (B, C0P)

    # Ones-lane trick: lane C0 := 1.0 so row C0 of wcomb acts as the bias row.
    lane = jax.lax.broadcasted_iota(jnp.int32, (B, C0P), 1)
    gap = jnp.where(lane == C0, jnp.float32(1.0), gap)

    # Fused backbone projection + both heads: single (B,C0P)@(C0P,HEADP) matmul.
    out_ref[...] = jnp.dot(gap, wcomb_ref[...],
                           preferred_element_type=jnp.float32)


def init_params(key):
    ks = jax.random.split(key, 8)
    wconv = jax.random.normal(ks[0], (K, C0), jnp.float32) * 0.1
    bconv = jax.random.normal(ks[1], (1, C0), jnp.float32) * 0.01
    gamma = jnp.ones((1, C0), jnp.float32)
    beta = jnp.zeros((1, C0), jnp.float32)
    wfeat = jax.random.normal(ks[2], (C0, FEAT), jnp.float32) * 0.05
    bfeat = jax.random.normal(ks[3], (1, FEAT), jnp.float32) * 0.01
    wc = jax.random.normal(ks[4], (FEAT, NUM_CONDITIONS), jnp.float32) * 0.05
    bc = jax.random.normal(ks[5], (1, NUM_CONDITIONS), jnp.float32) * 0.01
    wl = jax.random.normal(ks[6], (FEAT, NUM_LEVELS), jnp.float32) * 0.05
    bl = jax.random.normal(ks[7], (1, NUM_LEVELS), jnp.float32) * 0.01
    return (wconv, bconv, gamma, beta, wfeat, bfeat, wc, bc, wl, bl)


def prepare_params(params):
    """One-time weight folding/padding, OUTSIDE the per-call path.

    Folds: BatchNorm into the conv taps, conv bias into tap row K, the GAP
    1/HW factor and the feature-projection (wfeat @ heads — exact, no
    nonlinearity in between) into a single combined weight, and the combined
    bias into row C0 (picked up by an in-kernel ones-lane).  Everything is
    zero-padded to lane-dense (…,128) shapes.
    """
    wconv, bconv, gamma, beta, wfeat, bfeat, wc, bc, wl, bl = params

    # BatchNorm (inference, running_mean=0 / running_var=1) folded into conv.
    # TODO(synk): real trained checkpoints must fold the actual running stats.
    bn_scale = gamma * jax.lax.rsqrt(jnp.float32(1.0 + BN_EPS))         # (1, C0)
    wconv_f = wconv * bn_scale                                          # (K, C0)
    bconv_f = bconv * bn_scale + beta                                   # (1, C0)

    wtaps = jnp.zeros((TAP_ROWS, C0P), jnp.float32)
    wtaps = wtaps.at[:K, :C0].set(wconv_f)                              # taps
    wtaps = wtaps.at[K, :C0].set(bconv_f[0])                            # folded bias

    # Collapse feature projection and both heads: W_comb = wfeat @ [wc|wl].
    whead = jnp.concatenate([wc, wl], axis=1)                           # (FEAT, 8)
    bhead = jnp.concatenate([bc, bl], axis=1)                           # (1, 8)
    w_comb = wfeat @ whead                                              # (C0, 8)
    b_comb = bfeat @ whead + bhead                                      # (1, 8)

    wcomb = jnp.zeros((C0P, HEADP), jnp.float32)
    wcomb = wcomb.at[:C0, :NUM_HEADS_OUT].set(w_comb / jnp.float32(HW))  # 1/HW fold
    wcomb = wcomb.at[C0, :NUM_HEADS_OUT].set(b_comb[0])                  # bias row
    return wtaps, wcomb


def second_spine_classifier(x, wtaps, wcomb):
    """x: NCHW float32 [B, 1, H, W]. Returns (condition_logits, level_logits)."""
    # Per-call glue is only: drop channel dim, spatial pad, add a unit lane dim
    # (~2.6 KiB DMA'd; no im2col and no weight work on the per-call path).
    xpad = jnp.pad(x[:, 0, :, :], ((0, 0), (1, 1), (1, 1)))[..., None]   # (B,18,18,1)

    vmem = pl.BlockSpec(memory_space=pltpu.MemorySpace.VMEM)
    out = pl.pallas_call(
        spine_kernel,
        in_specs=[vmem, vmem, vmem],
        out_specs=vmem,
        out_shape=jax.ShapeDtypeStruct((B, HEADP), jnp.float32),
    )(xpad, wtaps, wcomb)

    cond_logits = out[:, :NUM_CONDITIONS]
    level_logits = out[:, NUM_CONDITIONS:NUM_HEADS_OUT]
    return cond_logits, level_logits


def _reference(x, params):
    """Pure-JAX reference of the same skeleton (unfolded math) for checking."""
    wconv, bconv, gamma, beta, wfeat, bfeat, wc, bc, wl, bl = params
    xp = jnp.pad(x[:, 0, :, :], ((0, 0), (1, 1), (1, 1)))
    y = jnp.zeros((B, H, W, C0), jnp.float32)
    for k in range(K):
        di, dj = divmod(k, KW)
        y = y + xp[:, di:di + H, dj:dj + W, None] * wconv[k]
    y = y + bconv[0]
    y = y * (gamma[0] * jax.lax.rsqrt(jnp.float32(1.0 + BN_EPS))) + beta[0]
    y = jnp.maximum(y, 0.0)
    gap = jnp.mean(y, axis=(1, 2))                        # (B, C0)
    feat = gap @ wfeat + bfeat
    return feat @ wc + bc, feat @ wl + bl


if __name__ == "__main__":
    key = jax.random.PRNGKey(0)
    kx, kp = jax.random.split(key)
    x = jax.random.normal(kx, (B, C_IN, H, W), jnp.float32)   # NCHW, like PyTorch
    params = init_params(kp)

    # One-time weight folding/padding (hoisted out of the per-call path).
    wtaps, wcomb = prepare_params(params)

    fwd = jax.jit(second_spine_classifier)
    cond_logits, level_logits = jax.block_until_ready(fwd(x, wtaps, wcomb))

    assert cond_logits.shape == (B, NUM_CONDITIONS)
    assert level_logits.shape == (B, NUM_LEVELS)
    assert cond_logits.dtype == jnp.float32 and level_logits.dtype == jnp.float32

    ref_cond, ref_lvl = _reference(x, params)
    assert jnp.allclose(cond_logits, ref_cond, rtol=1e-4, atol=1e-4)
    assert jnp.allclose(level_logits, ref_lvl, rtol=1e-4, atol=1e-4)

    print("KERNEL_OK")
</pallas_src>

<mosaic_0001>
module attributes {stable_mosaic.version = 11 : i64} {
  func.func @spine_kernel(%arg0: memref<2x18x18x1xf32, #tpu.memory_space<vmem>>, %arg1: memref<16x128xf32, #tpu.memory_space<vmem>>, %arg2: memref<128x128xf32, #tpu.memory_space<vmem>>, %arg3: memref<2x128xf32, #tpu.memory_space<vmem>>) attributes {dimension_semantics = [], scalar_prefetch = 0 : i64, scratch_operands = 0 : i64, tpu.core_type = #tpu.core_type<tc>} {
    %cst = arith.constant 0.000000e+00 : f32
    %0 = vector.broadcast %cst : f32 to vector<2x16x16x128xf32>
    %c0 = arith.constant 0 : index
    %c0_0 = arith.constant 0 : index
    %c0_1 = arith.constant 0 : index
    %c0_2 = arith.constant 0 : index
    %1 = vector.load %arg0[%c0, %c0_0, %c0_1, %c0_2] : memref<2x18x18x1xf32, #tpu.memory_space<vmem>>, vector<2x16x16x1xf32>
    %c0_3 = arith.constant 0 : index
    %c0_4 = arith.constant 0 : index
    %2 = vector.load %arg1[%c0_3, %c0_4] : memref<16x128xf32, #tpu.memory_space<vmem>>, vector<1x128xf32>
    %3 = vector.shape_cast %2 : vector<1x128xf32> to vector<128xf32>
    %4 = vector.shape_cast %3 : vector<128xf32> to vector<1x1x1x128xf32>
    %5 = vector.broadcast %1 : vector<2x16x16x1xf32> to vector<2x16x16x128xf32>
    %6 = vector.broadcast %4 : vector<1x1x1x128xf32> to vector<2x16x16x128xf32>
    %7 = arith.mulf %5, %6 : vector<2x16x16x128xf32>
    %8 = arith.addf %0, %7 : vector<2x16x16x128xf32>
    %c0_5 = arith.constant 0 : index
    %c0_6 = arith.constant 0 : index
    %c1 = arith.constant 1 : index
    %c0_7 = arith.constant 0 : index
    %9 = vector.load %arg0[%c0_5, %c0_6, %c1, %c0_7] : memref<2x18x18x1xf32, #tpu.memory_space<vmem>>, vector<2x16x16x1xf32>
    %c1_8 = arith.constant 1 : index
    %c0_9 = arith.constant 0 : index
    %10 = vector.load %arg1[%c1_8, %c0_9] : memref<16x128xf32, #tpu.memory_space<vmem>>, vector<1x128xf32>
    %11 = vector.shape_cast %10 : vector<1x128xf32> to vector<128xf32>
    %12 = vector.shape_cast %11 : vector<128xf32> to vector<1x1x1x128xf32>
    %13 = vector.broadcast %9 : vector<2x16x16x1xf32> to vector<2x16x16x128xf32>
    %14 = vector.broadcast %12 : vector<1x1x1x128xf32> to vector<2x16x16x128xf32>
    %15 = arith.mulf %13, %14 : vector<2x16x16x128xf32>
    %16 = arith.addf %8, %15 : vector<2x16x16x128xf32>
    %c0_10 = arith.constant 0 : index
    %c0_11 = arith.constant 0 : index
    %c2 = arith.constant 2 : index
    %c0_12 = arith.constant 0 : index
    %17 = vector.load %arg0[%c0_10, %c0_11, %c2, %c0_12] : memref<2x18x18x1xf32, #tpu.memory_space<vmem>>, vector<2x16x16x1xf32>
    %c2_13 = arith.constant 2 : index
    %c0_14 = arith.constant 0 : index
    %18 = vector.load %arg1[%c2_13, %c0_14] : memref<16x128xf32, #tpu.memory_space<vmem>>, vector<1x128xf32>
    %19 = vector.shape_cast %18 : vector<1x128xf32> to vector<128xf32>
    %20 = vector.shape_cast %19 : vector<128xf32> to vector<1x1x1x128xf32>
    %21 = vector.broadcast %17 : vector<2x16x16x1xf32> to vector<2x16x16x128xf32>
    %22 = vector.broadcast %20 : vector<1x1x1x128xf32> to vector<2x16x16x128xf32>
    %23 = arith.mulf %21, %22 : vector<2x16x16x128xf32>
    %24 = arith.addf %16, %23 : vector<2x16x16x128xf32>
    %c0_15 = arith.constant 0 : index
    %c1_16 = arith.constant 1 : index
    %c0_17 = arith.constant 0 : index
    %c0_18 = arith.constant 0 : index
    %25 = vector.load %arg0[%c0_15, %c1_16, %c0_17, %c0_18] : memref<2x18x18x1xf32, #tpu.memory_space<vmem>>, vector<2x16x16x1xf32>
    %c3 = arith.constant 3 : index
    %c0_19 = arith.constant 0 : index
    %26 = vector.load %arg1[%c3, %c0_19] : memref<16x128xf32, #tpu.memory_space<vmem>>, vector<1x128xf32>
    %27 = vector.shape_cast %26 : vector<1x128xf32> to vector<128xf32>
    %28 = vector.shape_cast %27 : vector<128xf32> to vector<1x1x1x128xf32>
    %29 = vector.broadcast %25 : vector<2x16x16x1xf32> to vector<2x16x16x128xf32>
    %30 = vector.broadcast %28 : vector<1x1x1x128xf32> to vector<2x16x16x128xf32>
    %31 = arith.mulf %29, %30 : vector<2x16x16x128xf32>
    %32 = arith.addf %24, %31 : vector<2x16x16x128xf32>
    %c0_20 = arith.constant 0 : index
    %c1_21 = arith.constant 1 : index
    %c1_22 = arith.constant 1 : index
    %c0_23 = arith.constant 0 : index
    %33 = vector.load %arg0[%c0_20, %c1_21, %c1_22, %c0_23] : memref<2x18x18x1xf32, #tpu.memory_space<vmem>>, vector<2x16x16x1xf32>
    %c4 = arith.constant 4 : index
    %c0_24 = arith.constant 0 : index
    %34 = vector.load %arg1[%c4, %c0_24] : memref<16x128xf32, #tpu.memory_space<vmem>>, vector<1x128xf32>
    %35 = vector.shape_cast %34 : vector<1x128xf32> to vector<128xf32>
    %36 = vector.shape_cast %35 : vector<128xf32> to vector<1x1x1x128xf32>
    %37 = vector.broadcast %33 : vector<2x16x16x1xf32> to vector<2x16x16x128xf32>
    %38 = vector.broadcast %36 : vector<1x1x1x128xf32> to vector<2x16x16x128xf32>
    %39 = arith.mulf %37, %38 : vector<2x16x16x128xf32>
    %40 = arith.addf %32, %39 : vector<2x16x16x128xf32>
    %c0_25 = arith.constant 0 : index
    %c1_26 = arith.constant 1 : index
    %c2_27 = arith.constant 2 : index
    %c0_28 = arith.constant 0 : index
    %41 = vector.load %arg0[%c0_25, %c1_26, %c2_27, %c0_28] : memref<2x18x18x1xf32, #tpu.memory_space<vmem>>, vector<2x16x16x1xf32>
    %c5 = arith.constant 5 : index
    %c0_29 = arith.constant 0 : index
    %42 = vector.load %arg1[%c5, %c0_29] : memref<16x128xf32, #tpu.memory_space<vmem>>, vector<1x128xf32>
    %43 = vector.shape_cast %42 : vector<1x128xf32> to vector<128xf32>
    %44 = vector.shape_cast %43 : vector<128xf32> to vector<1x1x1x128xf32>
    %45 = vector.broadcast %41 : vector<2x16x16x1xf32> to vector<2x16x16x128xf32>
    %46 = vector.broadcast %44 : vector<1x1x1x128xf32> to vector<2x16x16x128xf32>
    %47 = arith.mulf %45, %46 : vector<2x16x16x128xf32>
    %48 = arith.addf %40, %47 : vector<2x16x16x128xf32>
    %c0_30 = arith.constant 0 : index
    %c2_31 = arith.constant 2 : index
    %c0_32 = arith.constant 0 : index
    %c0_33 = arith.constant 0 : index
    %49 = vector.load %arg0[%c0_30, %c2_31, %c0_32, %c0_33] : memref<2x18x18x1xf32, #tpu.memory_space<vmem>>, vector<2x16x16x1xf32>
    %c6 = arith.constant 6 : index
    %c0_34 = arith.constant 0 : index
    %50 = vector.load %arg1[%c6, %c0_34] : memref<16x128xf32, #tpu.memory_space<vmem>>, vector<1x128xf32>
    %51 = vector.shape_cast %50 : vector<1x128xf32> to vector<128xf32>
    %52 = vector.shape_cast %51 : vector<128xf32> to vector<1x1x1x128xf32>
    %53 = vector.broadcast %49 : vector<2x16x16x1xf32> to vector<2x16x16x128xf32>
    %54 = vector.broadcast %52 : vector<1x1x1x128xf32> to vector<2x16x16x128xf32>
    %55 = arith.mulf %53, %54 : vector<2x16x16x128xf32>
    %56 = arith.addf %48, %55 : vector<2x16x16x128xf32>
    %c0_35 = arith.constant 0 : index
    %c2_36 = arith.constant 2 : index
    %c1_37 = arith.constant 1 : index
    %c0_38 = arith.constant 0 : index
    %57 = vector.load %arg0[%c0_35, %c2_36, %c1_37, %c0_38] : memref<2x18x18x1xf32, #tpu.memory_space<vmem>>, vector<2x16x16x1xf32>
    %c7 = arith.constant 7 : index
    %c0_39 = arith.constant 0 : index
    %58 = vector.load %arg1[%c7, %c0_39] : memref<16x128xf32, #tpu.memory_space<vmem>>, vector<1x128xf32>
    %59 = vector.shape_cast %58 : vector<1x128xf32> to vector<128xf32>
    %60 = vector.shape_cast %59 : vector<128xf32> to vector<1x1x1x128xf32>
    %61 = vector.broadcast %57 : vector<2x16x16x1xf32> to vector<2x16x16x128xf32>
    %62 = vector.broadcast %60 : vector<1x1x1x128xf32> to vector<2x16x16x128xf32>
    %63 = arith.mulf %61, %62 : vector<2x16x16x128xf32>
    %64 = arith.addf %56, %63 : vector<2x16x16x128xf32>
    %c0_40 = arith.constant 0 : index
    %c2_41 = arith.constant 2 : index
    %c2_42 = arith.constant 2 : index
    %c0_43 = arith.constant 0 : index
    %65 = vector.load %arg0[%c0_40, %c2_41, %c2_42, %c0_43] : memref<2x18x18x1xf32, #tpu.memory_space<vmem>>, vector<2x16x16x1xf32>
    %c8 = arith.constant 8 : index
    %c0_44 = arith.constant 0 : index
    %66 = vector.load %arg1[%c8, %c0_44] : memref<16x128xf32, #tpu.memory_space<vmem>>, vector<1x128xf32>
    %67 = vector.shape_cast %66 : vector<1x128xf32> to vector<128xf32>
    %68 = vector.shape_cast %67 : vector<128xf32> to vector<1x1x1x128xf32>
    %69 = vector.broadcast %65 : vector<2x16x16x1xf32> to vector<2x16x16x128xf32>
    %70 = vector.broadcast %68 : vector<1x1x1x128xf32> to vector<2x16x16x128xf32>
    %71 = arith.mulf %69, %70 : vector<2x16x16x128xf32>
    %72 = arith.addf %64, %71 : vector<2x16x16x128xf32>
    %c9 = arith.constant 9 : index
    %c0_45 = arith.constant 0 : index
    %73 = vector.load %arg1[%c9, %c0_45] : memref<16x128xf32, #tpu.memory_space<vmem>>, vector<1x128xf32>
    %74 = vector.shape_cast %73 : vector<1x128xf32> to vector<128xf32>
    %75 = vector.shape_cast %74 : vector<128xf32> to vector<1x1x1x128xf32>
    %76 = vector.broadcast %75 : vector<1x1x1x128xf32> to vector<2x16x16x128xf32>
    %77 = arith.addf %72, %76 : vector<2x16x16x128xf32>
    %cst_46 = arith.constant 0.000000e+00 : f32
    %78 = vector.broadcast %cst_46 : f32 to vector<2x16x16x128xf32>
    %79 = arith.maximumf %77, %78 : vector<2x16x16x128xf32>
    %cst_47 = arith.constant dense<0.000000e+00> : vector<2x16x128xf32>
    %80 = vector.multi_reduction <add>, %79, %cst_47 [1] : vector<2x16x16x128xf32> to vector<2x16x128xf32>
    %cst_48 = arith.constant dense<0.000000e+00> : vector<2x128xf32>
    %81 = vector.multi_reduction <add>, %80, %cst_48 [1] : vector<2x16x128xf32> to vector<2x128xf32>
    %82 = tpu.iota {dimensions = array<i32: 1>} : vector<2x128xi32>
    %c32_i32 = arith.constant 32 : i32
    %83 = vector.broadcast %c32_i32 : i32 to vector<2x128xi32>
    %84 = arith.cmpi eq, %82, %83 : vector<2x128xi32>
    %cst_49 = arith.constant 1.000000e+00 : f32
    %85 = vector.broadcast %cst_49 : f32 to vector<2x128xf32>
    %86 = arith.select %84, %85, %81 : vector<2x128xi1>, vector<2x128xf32>
    %c0_50 = arith.constant 0 : index
    %c0_51 = arith.constant 0 : index
    %87 = vector.load %arg2[%c0_50, %c0_51] : memref<128x128xf32, #tpu.memory_space<vmem>>, vector<128x128xf32>
    %cst_52 = arith.constant dense<0.000000e+00> : vector<2x128xf32>
    %88 = tpu.matmul %86, %87, %cst_52 {dimension_numbers = #tpu.dot_dimension_numbers<[1], [0], [0], [1], [0, 0, 1, 1], [], []>} : vector<2x128xf32>, vector<128x128xf32>, vector<2x128xf32> -> vector<2x128xf32>
    %c0_53 = arith.constant 0 : index
    %c0_54 = arith.constant 0 : index
    %89 = vector.load %arg3[%c0_53, %c0_54] : memref<2x128xf32, #tpu.memory_space<vmem>>, vector<2x128xf32>
    tpu.vector_store %arg3[%c0_53, %c0_54], %88 {strides = array<i32>} : memref<2x128xf32, #tpu.memory_space<vmem>>, vector<2x128xf32>,
    return
  }
}

</mosaic_0001>

<bundles_post_ra>
// kernel: second_spine_classifier.1
= control target key start
LH: loop header
LB: loop body
LE: loop exit
PB: predicated region body
PF: predicated region fallthrough
CT: control target
= control target key end

     0   :  { %v5458_v0 = vmov 0   ;;  %vm5460_vm0 = vmmov 0   ;;  %vm4881_vm1 = vcmask 1041409   ;;  %s10776_s0 = inlined_call_operand.vmem [shape: f32[2,18,18,1], index: 0, kind: input, shape index: {}]   ;;  %s10777_s1 = inlined_call_operand.vmem [shape: f32[16,128], index: 1, kind: input, shape index: {}]   ;;  %s10778_s2 = inlined_call_operand.vmem [shape: f32[128,128], index: 2, kind: input, shape index: {}]   ;;  %s10779_s3 = inlined_call_operand.vmem [shape: f32[2,128], index: 3, kind: output, shape index: {}]  }
   0x1   :  { %5451 = vset.pattern.permute.xlu1 %v5458_v0  ;;  %5450 = vset.pattern.permute.xlu0 %v5458_v0  ;;  %v16_v1 = vld [vmem:[%s10776_s0 + $0x18] sm:$0xff]  ;;  %v14_v2 = vld [vmem:[%s10776_s0] sm:$0xff]  ;;  %v15_v4 = vld [vmem:[%s10776_s0 + $0x8] sm:$0xff] }
   0x2   :  { %91 = vperm.xlu1 %5451, %v16_v1   ;;  %81 = vperm.xlu0 %5450, %v14_v2   ;;  %v17_v3 = vld [vmem:[%s10776_s0 + $0x20] sm:$0xff]  ;;  %v19_v5 = vld [vmem:[%s10776_s0 + $0x38] sm:$0xff]  ;;  %v18_v6 = vld [vmem:[%s10776_s0 + $0x30] sm:$0xff] }
   0x3   :  { %v21_v7 = vld [vmem:[%s10776_s0 + $0x50] sm:$0xff]  ;;  %v20_v8 = vld [vmem:[%s10776_s0 + $0x48] sm:$0xff]  ;;  %v22_v10 = vld [vmem:[%s10776_s0 + $0x60] sm:$0xff] }
   0x4   :  { %v23_v9 = vld [vmem:[%s10776_s0 + $0x68] sm:$0xff]  ;;  %v25_v11 = vld [vmem:[%s10776_s0 + $0x80] sm:$0xff]  ;;  %v24_v12 = vld [vmem:[%s10776_s0 + $0x78] sm:$0xff] }
   0x5   :  { %v27_v13 = vld [vmem:[%s10776_s0 + $0x98] sm:$0xff]  ;;  %v26_v14 = vld [vmem:[%s10776_s0 + $0x90] sm:$0xff]  ;;  %v28_v16 = vld [vmem:[%s10776_s0 + $0xa8] sm:$0xff] }
   0x6   :  { %96 = vperm.xlu1 %5451, %v17_v3   ;;  %86 = vperm.xlu0 %5450, %v15_v4   ;;  %v29_v15 = vld [vmem:[%s10776_s0 + $0xb0] sm:$0xff]  ;;  %v31_v17 = vld [vmem:[%s10776_s0 + $0xc8] sm:$0xff]  ;;  %v30_v18 = vld [vmem:[%s10776_s0 + $0xc0] sm:$0xff] }
   0x7   :  { %v33_v19 = vld [vmem:[%s10776_s0 + $0xe0] sm:$0xff]  ;;  %v32_v20 = vld [vmem:[%s10776_s0 + $0xd8] sm:$0xff]  ;;  %v34_v22 = vld [vmem:[%s10776_s0 + $0xf0] sm:$0xff] }
   0x8   :  { %v35_v21 = vld [vmem:[%s10776_s0 + $0xf8] sm:$0xff]  ;;  %v37_v23 = vld [vmem:[%s10776_s0 + $0x110] sm:$0xff]  ;;  %v36_v24 = vld [vmem:[%s10776_s0 + $0x108] sm:$0xff] }
   0x9   :  { %v39_v25 = vld [vmem:[%s10776_s0 + $0x128] sm:$0xff]  ;;  %v38_v26 = vld [vmem:[%s10776_s0 + $0x120] sm:$0xff]  ;;  %v40_v28 = vld [vmem:[%s10776_s0 + $0x138] sm:$0xff] }
   0xa   :  { %106 = vperm.xlu1 %5451, %v19_v5   ;;  %101 = vperm.xlu0 %5450, %v18_v6   ;;  %v41_v27 = vld [vmem:[%s10776_s0 + $0x140] sm:$0xff]  ;;  %v43_v29 = vld [vmem:[%s10776_s0 + $0x158] sm:$0xff]  ;;  %v42_v30 = vld [vmem:[%s10776_s0 + $0x150] sm:$0xff] }
   0xb   :  { %v45_v31 = vld [vmem:[%s10776_s0 + $0x170] sm:$0xff]  ;;  %v44_v32 = vld [vmem:[%s10776_s0 + $0x168] sm:$0xff]  ;;  %v47_v33 = vld [vmem:[%s10776_s0 + $0x1b8] sm:$0xff] }
   0xc   :  { %v46_v34 = vld [vmem:[%s10776_s0 + $0x1b0] sm:$0xff]  ;;  %v48_v36 = vld [vmem:[%s10776_s0 + $0x1c8] sm:$0xff]  ;;  %v50_v38 = vld [vmem:[%s10776_s0 + $0x1e0] sm:$0xff] }
   0xd   :  { %v49_v35 = vld [vmem:[%s10776_s0 + $0x1d0] sm:$0xff]  ;;  %v51_v37 = vld [vmem:[%s10776_s0 + $0x1e8] sm:$0xff]  ;;  %v53_v39 = vld [vmem:[%s10776_s0 + $0x200] sm:$0xff] }
   0xe   :  { %116 = vperm.xlu1 %5451, %v21_v7   ;;  %111 = vperm.xlu0 %5450, %v20_v8   ;;  %v52_v40 = vld [vmem:[%s10776_s0 + $0x1f8] sm:$0xff]  ;;  %v54_v42 = vld [vmem:[%s10776_s0 + $0x210] sm:$0xff]  ;;  %v56_v44 = vld [vmem:[%s10776_s0 + $0x228] sm:$0xff] }
   0xf   :  { %v55_v41 = vld [vmem:[%s10776_s0 + $0x218] sm:$0xff]  ;;  %v57_v43 = vld [vmem:[%s10776_s0 + $0x230] sm:$0xff]  ;;  %v59_v45 = vld [vmem:[%s10776_s0 + $0x248] sm:$0xff] }
  0x10   :  { %v58_v46 = vld [vmem:[%s10776_s0 + $0x240] sm:$0xff]  ;;  %v60_v48 = vld [vmem:[%s10776_s0 + $0x258] sm:$0xff]  ;;  %v62_v50 = vld [vmem:[%s10776_s0 + $0x270] sm:$0xff] }
  0x11   :  { %v61_v47 = vld [vmem:[%s10776_s0 + $0x260] sm:$0xff]  ;;  %v63_v49 = vld [vmem:[%s10776_s0 + $0x278] sm:$0xff]  ;;  %v65_v51 = vld [vmem:[%s10776_s0 + $0x290] sm:$0xff] }
  0x12   :  { %126 = vperm.xlu1 %5451, %v23_v9   ;;  %121 = vperm.xlu0 %5450, %v22_v10   ;;  %v64_v52 = vld [vmem:[%s10776_s0 + $0x288] sm:$0xff]  ;;  %v66_v54 = vld [vmem:[%s10776_s0 + $0x2a0] sm:$0xff]  ;;  %v68_v56 = vld [vmem:[%s10776_s0 + $0x2b8] sm:$0xff] }
  0x13   :  { %v67_v53 = vld [vmem:[%s10776_s0 + $0x2a8] sm:$0xff]  ;;  %v69_v55 = vld [vmem:[%s10776_s0 + $0x2c0] sm:$0xff]  ;;  %v71_v57 = vld [vmem:[%s10776_s0 + $0x2d8] sm:$0xff] }
  0x14   :  { %v70_v58 = vld [vmem:[%s10776_s0 + $0x2d0] sm:$0xff]  ;;  %v72_v60 = vld [vmem:[%s10776_s0 + $0x2e8] sm:$0xff]  ;;  %v74_v62 = vld [vmem:[%s10776_s0 + $0x300] sm:$0xff] }
  0x15   :  { %v73_v59 = vld [vmem:[%s10776_s0 + $0x2f0] sm:$0xff]  ;;  %v75_v61 = vld [vmem:[%s10776_s0 + $0x308] sm:$0xff]  ;;  %v77_v63 = vld [vmem:[%s10776_s0 + $0x320] sm:$0xff] }
  0x16   :  { %136 = vperm.xlu1 %5451, %v25_v11   ;;  %131 = vperm.xlu0 %5450, %v24_v12   ;;  %v76_v0 = vld [vmem:[%s10776_s0 + $0x318] sm:$0xff]  ;;  %v532_v1 = vld [vmem:[%s10776_s0 + $0x9] sm:$0xff]  ;;  %v531_v2 = vld [vmem:[%s10776_s0 + $0x1] sm:$0xff] }
  0x17   :  { %v534_v5 = vld [vmem:[%s10776_s0 + $0x21] sm:$0xff]  ;;  %v533_v6 = vld [vmem:[%s10776_s0 + $0x19] sm:$0xff]  ;;  %v535_v10 = vld [vmem:[%s10776_s0 + $0x31] sm:$0xff] }
  0x18   :  { %v536_v9 = vld [vmem:[%s10776_s0 + $0x39] sm:$0xff] }
  0x1a   :  { %146 = vperm.xlu1 %5451, %v27_v13   ;;  %141 = vperm.xlu0 %5450, %v26_v14   ;;  %v538_v13 = vld [vmem:[%s10776_s0 + $0x51] sm:$0xff]  ;;  %v537_v14 = vld [vmem:[%s10776_s0 + $0x49] sm:$0xff] }
  0x1e   :  { %156 = vperm.xlu1 %5451, %v29_v15   ;;  %151 = vperm.xlu0 %5450, %v28_v16  }
  0x22   :  { %166 = vperm.xlu1 %5451, %v31_v17   ;;  %161 = vperm.xlu0 %5450, %v30_v18   ;;  %v540_v17 = vld [vmem:[%s10776_s0 + $0x69] sm:$0xff]  ;;  %v539_v18 = vld [vmem:[%s10776_s0 + $0x61] sm:$0xff] }
  0x26   :  { %176 = vperm.xlu1 %5451, %v33_v19   ;;  %171 = vperm.xlu0 %5450, %v32_v20  }
  0x2a   :  { %186 = vperm.xlu1 %5451, %v35_v21   ;;  %181 = vperm.xlu0 %5450, %v34_v22   ;;  %v542_v21 = vld [vmem:[%s10776_s0 + $0x81] sm:$0xff]  ;;  %v541_v22 = vld [vmem:[%s10776_s0 + $0x79] sm:$0xff] }
  0x2e   :  { %196 = vperm.xlu1 %5451, %v37_v23   ;;  %191 = vperm.xlu0 %5450, %v36_v24  }
  0x32   :  { %206 = vperm.xlu1 %5451, %v39_v25   ;;  %201 = vperm.xlu0 %5450, %v38_v26   ;;  %v544_v25 = vld [vmem:[%s10776_s0 + $0x99] sm:$0xff]  ;;  %v543_v26 = vld [vmem:[%s10776_s0 + $0x91] sm:$0xff] }
  0x36   :  { %216 = vperm.xlu1 %5451, %v41_v27   ;;  %211 = vperm.xlu0 %5450, %v40_v28  }
  0x3a   :  { %226 = vperm.xlu1 %5451, %v43_v29   ;;  %221 = vperm.xlu0 %5450, %v42_v30   ;;  %v546_v29 = vld [vmem:[%s10776_s0 + $0xb1] sm:$0xff]  ;;  %v545_v30 = vld [vmem:[%s10776_s0 + $0xa9] sm:$0xff] }
  0x3e   :  { %236 = vperm.xlu1 %5451, %v45_v31   ;;  %231 = vperm.xlu0 %5450, %v44_v32  }
  0x42   :  { %246 = vperm.xlu1 %5451, %v47_v33   ;;  %241 = vperm.xlu0 %5450, %v46_v34   ;;  %v548_v33 = vld [vmem:[%s10776_s0 + $0xc9] sm:$0xff]  ;;  %v547_v34 = vld [vmem:[%s10776_s0 + $0xc1] sm:$0xff] }
  0x46   :  { %256 = vperm.xlu1 %5451, %v49_v35   ;;  %251 = vperm.xlu0 %5450, %v48_v36  }
  0x4a   :  { %266 = vperm.xlu1 %5451, %v51_v37   ;;  %261 = vperm.xlu0 %5450, %v50_v38   ;;  %v550_v37 = vld [vmem:[%s10776_s0 + $0xe1] sm:$0xff]  ;;  %v549_v38 = vld [vmem:[%s10776_s0 + $0xd9] sm:$0xff] }
  0x4e   :  { %276 = vperm.xlu1 %5451, %v53_v39   ;;  %271 = vperm.xlu0 %5450, %v52_v40  }
  0x52   :  { %286 = vperm.xlu1 %5451, %v55_v41   ;;  %281 = vperm.xlu0 %5450, %v54_v42   ;;  %v552_v41 = vld [vmem:[%s10776_s0 + $0xf9] sm:$0xff]  ;;  %v551_v42 = vld [vmem:[%s10776_s0 + $0xf1] sm:$0xff] }
  0x56   :  { %296 = vperm.xlu1 %5451, %v57_v43   ;;  %291 = vperm.xlu0 %5450, %v56_v44  }
  0x5a   :  { %306 = vperm.xlu1 %5451, %v59_v45   ;;  %301 = vperm.xlu0 %5450, %v58_v46   ;;  %v554_v45 = vld [vmem:[%s10776_s0 + $0x111] sm:$0xff]  ;;  %v553_v46 = vld [vmem:[%s10776_s0 + $0x109] sm:$0xff] }
  0x5e   :  { %316 = vperm.xlu1 %5451, %v61_v47   ;;  %311 = vperm.xlu0 %5450, %v60_v48  }
  0x62   :  { %326 = vperm.xlu1 %5451, %v63_v49   ;;  %321 = vperm.xlu0 %5450, %v62_v50   ;;  %v556_v49 = vld [vmem:[%s10776_s0 + $0x129] sm:$0xff]  ;;  %v555_v50 = vld [vmem:[%s10776_s0 + $0x121] sm:$0xff] }
  0x66   :  { %336 = vperm.xlu1 %5451, %v65_v51   ;;  %331 = vperm.xlu0 %5450, %v64_v52  }
  0x6a   :  { %346 = vperm.xlu1 %5451, %v67_v53   ;;  %341 = vperm.xlu0 %5450, %v66_v54   ;;  %v558_v53 = vld [vmem:[%s10776_s0 + $0x141] sm:$0xff]  ;;  %v557_v54 = vld [vmem:[%s10776_s0 + $0x139] sm:$0xff] }
  0x6e   :  { %356 = vperm.xlu1 %5451, %v69_v55   ;;  %351 = vperm.xlu0 %5450, %v68_v56  }
  0x72   :  { %366 = vperm.xlu1 %5451, %v71_v57   ;;  %361 = vperm.xlu0 %5450, %v70_v58   ;;  %v560_v57 = vld [vmem:[%s10776_s0 + $0x159] sm:$0xff]  ;;  %v559_v58 = vld [vmem:[%s10776_s0 + $0x151] sm:$0xff] }
  0x76   :  { %376 = vperm.xlu1 %5451, %v73_v59   ;;  %371 = vperm.xlu0 %5450, %v72_v60  }
  0x7a   :  { %386 = vperm.xlu1 %5451, %v75_v61   ;;  %381 = vperm.xlu0 %5450, %v74_v62   ;;  %v562_v61 = vld [vmem:[%s10776_s0 + $0x171] sm:$0xff]  ;;  %v561_v62 = vld [vmem:[%s10776_s0 + $0x169] sm:$0xff] }
  0x7e   :  { %396 = vperm.xlu1 %5451, %v77_v63   ;;  %391 = vperm.xlu0 %5450, %v76_v0  }
  0x81   :  { %v5680_v3 = vpop.permute.xlu1 %91  ;;  %v5682_v4 = vpop.permute.xlu0 %81 }
  0x82   :  { %603 = vperm.xlu1 %5451, %v532_v1   ;;  %598 = vperm.xlu0 %5450, %v531_v2   ;;  %v564_v1 = vld [vmem:[%s10776_s0 + $0x1b9] sm:$0xff]  ;;  %v563_v2 = vld [vmem:[%s10776_s0 + $0x1b1] sm:$0xff] }
  0x85   :  { %v5690_v7 = vpop.permute.xlu1 %96  ;;  %v5692_v8 = vpop.permute.xlu0 %86 }
  0x86   :  { %613 = vperm.xlu1 %5451, %v534_v5   ;;  %608 = vperm.xlu0 %5450, %v533_v6  }
  0x89   :  { %v5700_v11 = vpop.permute.xlu1 %106  ;;  %v5702_v12 = vpop.permute.xlu0 %101 }
  0x8a   :  { %623 = vperm.xlu1 %5451, %v536_v9   ;;  %618 = vperm.xlu0 %5450, %v535_v10   ;;  %v566_v9 = vld [vmem:[%s10776_s0 + $0x1d1] sm:$0xff]  ;;  %v565_v10 = vld [vmem:[%s10776_s0 + $0x1c9] sm:$0xff] }
  0x8d   :  { %v5710_v15 = vpop.permute.xlu1 %116  ;;  %v5712_v16 = vpop.permute.xlu0 %111 }
  0x8e   :  { %633 = vperm.xlu1 %5451, %v538_v13   ;;  %628 = vperm.xlu0 %5450, %v537_v14  }
  0x91   :  { %v5720_v19 = vpop.permute.xlu1 %126  ;;  %v5722_v20 = vpop.permute.xlu0 %121 }
  0x92   :  { %643 = vperm.xlu1 %5451, %v540_v17   ;;  %638 = vperm.xlu0 %5450, %v539_v18   ;;  %v568_v17 = vld [vmem:[%s10776_s0 + $0x1e9] sm:$0xff]  ;;  %v567_v18 = vld [vmem:[%s10776_s0 + $0x1e1] sm:$0xff] }
  0x95   :  { %v5730_v23 = vpop.permute.xlu1 %136  ;;  %v5732_v24 = vpop.permute.xlu0 %131 }
  0x96   :  { %653 = vperm.xlu1 %5451, %v542_v21   ;;  %648 = vperm.xlu0 %5450, %v541_v22  }
  0x99   :  { %v5740_v27 = vpop.permute.xlu1 %146  ;;  %v5742_v28 = vpop.permute.xlu0 %141 }
  0x9a   :  { %663 = vperm.xlu1 %5451, %v544_v25   ;;  %658 = vperm.xlu0 %5450, %v543_v26   ;;  %v570_v25 = vld [vmem:[%s10776_s0 + $0x201] sm:$0xff]  ;;  %v569_v26 = vld [vmem:[%s10776_s0 + $0x1f9] sm:$0xff] }
  0x9d   :  { %v5750_v31 = vpop.permute.xlu1 %156  ;;  %v5752_v32 = vpop.permute.xlu0 %151 }
  0x9e   :  { %673 = vperm.xlu1 %5451, %v546_v29   ;;  %668 = vperm.xlu0 %5450, %v545_v30  }
  0xa1   :  { %v5760_v35 = vpop.permute.xlu1 %166  ;;  %v5762_v36 = vpop.permute.xlu0 %161 }
  0xa2   :  { %683 = vperm.xlu1 %5451, %v548_v33   ;;  %678 = vperm.xlu0 %5450, %v547_v34   ;;  %v572_v33 = vld [vmem:[%s10776_s0 + $0x219] sm:$0xff]  ;;  %v571_v34 = vld [vmem:[%s10776_s0 + $0x211] sm:$0xff] }
  0xa5   :  { %v5770_v39 = vpop.permute.xlu1 %176  ;;  %v5772_v40 = vpop.permute.xlu0 %171 }
  0xa6   :  { %693 = vperm.xlu1 %5451, %v550_v37   ;;  %688 = vperm.xlu0 %5450, %v549_v38  }
  0xa9   :  { %v5780_v43 = vpop.permute.xlu1 %186  ;;  %v5782_v44 = vpop.permute.xlu0 %181 }
  0xaa   :  { %703 = vperm.xlu1 %5451, %v552_v41   ;;  %698 = vperm.xlu0 %5450, %v551_v42   ;;  %v574_v41 = vld [vmem:[%s10776_s0 + $0x231] sm:$0xff]  ;;  %v573_v42 = vld [vmem:[%s10776_s0 + $0x229] sm:$0xff] }
  0xad   :  { %v5790_v47 = vpop.permute.xlu1 %196  ;;  %v5792_v48 = vpop.permute.xlu0 %191 }
  0xae   :  { %713 = vperm.xlu1 %5451, %v554_v45   ;;  %708 = vperm.xlu0 %5450, %v553_v46  }
  0xb1   :  { %v5800_v51 = vpop.permute.xlu1 %206  ;;  %v5802_v52 = vpop.permute.xlu0 %201 }
  0xb2   :  { %723 = vperm.xlu1 %5451, %v556_v49   ;;  %718 = vperm.xlu0 %5450, %v555_v50   ;;  %v576_v49 = vld [vmem:[%s10776_s0 + $0x249] sm:$0xff]  ;;  %v575_v50 = vld [vmem:[%s10776_s0 + $0x241] sm:$0xff] }
  0xb5   :  { %v5810_v55 = vpop.permute.xlu1 %216  ;;  %v5812_v56 = vpop.permute.xlu0 %211 }
  0xb6   :  { %733 = vperm.xlu1 %5451, %v558_v53   ;;  %728 = vperm.xlu0 %5450, %v557_v54  }
  0xb9   :  { %v5820_v59 = vpop.permute.xlu1 %226  ;;  %v5822_v60 = vpop.permute.xlu0 %221 }
  0xba   :  { %743 = vperm.xlu1 %5451, %v560_v57   ;;  %738 = vperm.xlu0 %5450, %v559_v58   ;;  %v578_v57 = vld [vmem:[%s10776_s0 + $0x261] sm:$0xff]  ;;  %v577_v58 = vld [vmem:[%s10776_s0 + $0x259] sm:$0xff] }
  0xbd   :  { %v5830_v63 = vpop.permute.xlu1 %236  ;;  %v5832_v0 = vpop.permute.xlu0 %231 }
  0xbe   :  { %753 = vperm.xlu1 %5451, %v562_v61   ;;  %748 = vperm.xlu0 %5450, %v561_v62  }
  0xc1   :  { %v5840_v5 = vpop.permute.xlu1 %246  ;;  %v5842_v6 = vpop.permute.xlu0 %241 }
  0xc2   :  { %763 = vperm.xlu1 %5451, %v564_v1   ;;  %758 = vperm.xlu0 %5450, %v563_v2   ;;  %v580_v1 = vld [vmem:[%s10776_s0 + $0x279] sm:$0xff]  ;;  %v579_v2 = vld [vmem:[%s10776_s0 + $0x271] sm:$0xff] }
  0xc5   :  { %v5850_v13 = vpop.permute.xlu1 %256  ;;  %v5852_v14 = vpop.permute.xlu0 %251 }
  0xc6   :  { %773 = vperm.xlu1 %5451, %v566_v9   ;;  %768 = vperm.xlu0 %5450, %v565_v10  }
  0xc9   :  { %v5860_v21 = vpop.permute.xlu1 %266  ;;  %v5862_v22 = vpop.permute.xlu0 %261 }
  0xca   :  { %783 = vperm.xlu1 %5451, %v568_v17   ;;  %778 = vperm.xlu0 %5450, %v567_v18   ;;  %v582_v17 = vld [vmem:[%s10776_s0 + $0x291] sm:$0xff]  ;;  %v581_v18 = vld [vmem:[%s10776_s0 + $0x289] sm:$0xff] }
  0xcd   :  { %v5870_v29 = vpop.permute.xlu1 %276  ;;  %v5872_v30 = vpop.permute.xlu0 %271 }
  0xce   :  { %793 = vperm.xlu1 %5451, %v570_v25   ;;  %788 = vperm.xlu0 %5450, %v569_v26  }
  0xd1   :  { %v5880_v37 = vpop.permute.xlu1 %286  ;;  %v5882_v38 = vpop.permute.xlu0 %281 }
  0xd2   :  { %803 = vperm.xlu1 %5451, %v572_v33   ;;  %798 = vperm.xlu0 %5450, %v571_v34   ;;  %v584_v33 = vld [vmem:[%s10776_s0 + $0x2a9] sm:$0xff]  ;;  %v583_v34 = vld [vmem:[%s10776_s0 + $0x2a1] sm:$0xff] }
  0xd5   :  { %v5890_v45 = vpop.permute.xlu1 %296  ;;  %v5892_v46 = vpop.permute.xlu0 %291 }
  0xd6   :  { %813 = vperm.xlu1 %5451, %v574_v41   ;;  %808 = vperm.xlu0 %5450, %v573_v42  }
  0xd9   :  { %v5900_v53 = vpop.permute.xlu1 %306  ;;  %v5902_v54 = vpop.permute.xlu0 %301 }
  0xda   :  { %823 = vperm.xlu1 %5451, %v576_v49   ;;  %818 = vperm.xlu0 %5450, %v575_v50   ;;  %v586_v49 = vld [vmem:[%s10776_s0 + $0x2c1] sm:$0xff]  ;;  %v585_v50 = vld [vmem:[%s10776_s0 + $0x2b9] sm:$0xff] }
  0xdd   :  { %v5910_v61 = vpop.permute.xlu1 %316  ;;  %v5912_v62 = vpop.permute.xlu0 %311 }
  0xde   :  { %833 = vperm.xlu1 %5451, %v578_v57   ;;  %828 = vperm.xlu0 %5450, %v577_v58  }
  0xe1   :  { %v5920_v9 = vpop.permute.xlu1 %326  ;;  %v5922_v10 = vpop.permute.xlu0 %321 }
  0xe2   :  { %843 = vperm.xlu1 %5451, %v580_v1   ;;  %838 = vperm.xlu0 %5450, %v579_v2   ;;  %v588_v1 = vld [vmem:[%s10776_s0 + $0x2d9] sm:$0xff]  ;;  %v587_v2 = vld [vmem:[%s10776_s0 + $0x2d1] sm:$0xff] }
  0xe5   :  { %v5930_v25 = vpop.permute.xlu1 %336  ;;  %v5932_v26 = vpop.permute.xlu0 %331 }
  0xe6   :  { %853 = vperm.xlu1 %5451, %v582_v17   ;;  %848 = vperm.xlu0 %5450, %v581_v18  }
  0xe9   :  { %v5940_v41 = vpop.permute.xlu1 %346  ;;  %v5942_v42 = vpop.permute.xlu0 %341 }
  0xea   :  { %863 = vperm.xlu1 %5451, %v584_v33   ;;  %858 = vperm.xlu0 %5450, %v583_v34   ;;  %v590_v33 = vld [vmem:[%s10776_s0 + $0x2f1] sm:$0xff]  ;;  %v589_v34 = vld [vmem:[%s10776_s0 + $0x2e9] sm:$0xff] }
  0xed   :  { %v5950_v57 = vpop.permute.xlu1 %356  ;;  %v5952_v58 = vpop.permute.xlu0 %351 }
  0xee   :  { %10782 = vst [vmem:[#allocation2_spill] sm:$0xff] %v5952_v58  ;;  %873 = vperm.xlu1 %5451, %v586_v49   ;;  %868 = vperm.xlu0 %5450, %v585_v50  }
  0xf1   :  { %v5960_v17 = vpop.permute.xlu1 %366  ;;  %v5962_v18 = vpop.permute.xlu0 %361 }
  0xf2   :  { %10783 = vst [vmem:[#allocation3_spill] sm:$0xff] %v5960_v17  ;;  %10784 = vst [vmem:[#allocation4_spill] sm:$0xff] %v5962_v18  ;;  %883 = vperm.xlu1 %5451, %v588_v1   ;;  %878 = vperm.xlu0 %5450, %v587_v2   ;;  %v592_v18 = vld [vmem:[%s10776_s0 + $0x309] sm:$0xff]  ;;  %v591_v1 = vld [vmem:[%s10776_s0 + $0x301] sm:$0xff] }
  0xf5   :  { %v5970_v49 = vpop.permute.xlu1 %376  ;;  %v5972_v50 = vpop.permute.xlu0 %371 }
  0xf6   :  { %10785 = vst [vmem:[#allocation5_spill] sm:$0xff] %v5970_v49  ;;  %10786 = vst [vmem:[#allocation6_spill] sm:$0xff] %v5972_v50  ;;  %893 = vperm.xlu1 %5451, %v590_v33   ;;  %888 = vperm.xlu0 %5450, %v589_v34   ;;  %v594_v50 = vld [vmem:[%s10776_s0 + $0x321] sm:$0xff]  ;;  %v593_v33 = vld [vmem:[%s10776_s0 + $0x319] sm:$0xff] }
  0xf9   :  { %v5980_v2 = vpop.permute.xlu1 %386  ;;  %v5982_v17 = vpop.permute.xlu0 %381 }
  0xfa   :  { %10787 = vst [vmem:[#allocation7_spill] sm:$0xff] %v5980_v2  ;;  %10788 = vst [vmem:[#allocation8_spill] sm:$0xff] %v5982_v17  ;;  %903 = vperm.xlu1 %5451, %v592_v18   ;;  %898 = vperm.xlu0 %5450, %v591_v1   ;;  %v1049_v17 = vld [vmem:[%s10776_s0 + $0xa] sm:$0xff]  ;;  %v1048_v18 = vld [vmem:[%s10776_s0 + $0x2] sm:$0xff] }
  0xfd   :  { %v5990_v34 = vpop.permute.xlu1 %396  ;;  %v5992_v49 = vpop.permute.xlu0 %391 }
  0xfe   :  { %10789 = vst [vmem:[#allocation9_spill] sm:$0xff] %v5990_v34  ;;  %10790 = vst [vmem:[#allocation10_spill] sm:$0xff] %v5992_v49  ;;  %913 = vperm.xlu1 %5451, %v594_v50   ;;  %908 = vperm.xlu0 %5450, %v593_v33   ;;  %v1051_v49 = vld [vmem:[%s10776_s0 + $0x22] sm:$0xff]  ;;  %v1050_v50 = vld [vmem:[%s10776_s0 + $0x1a] sm:$0xff] }
 0x101   :  { %v6000_v1 = vpop.permute.xlu1 %603  ;;  %v6002_v2 = vpop.permute.xlu0 %598 }
 0x102   :  { %10791 = vst [vmem:[#allocation11_spill] sm:$0xff] %v6000_v1  ;;  %10792 = vst [vmem:[#allocation12_spill] sm:$0xff] %v6002_v2  ;;  %1120 = vperm.xlu1 %5451, %v1049_v17   ;;  %1115 = vperm.xlu0 %5450, %v1048_v18   ;;  %v1053_v2 = vld [vmem:[%s10776_s0 + $0x3a] sm:$0xff]  ;;  %v1052_v17 = vld [vmem:[%s10776_s0 + $0x32] sm:$0xff] }
 0x105   :  { %v6010_v33 = vpop.permute.xlu1 %613  ;;  %v6012_v34 = vpop.permute.xlu0 %608 }
 0x106   :  { %10793 = vst [vmem:[#allocation13_spill] sm:$0xff] %v6010_v33  ;;  %10794 = vst [vmem:[#allocation14_spill] sm:$0xff] %v6012_v34  ;;  %1130 = vperm.xlu1 %5451, %v1051_v49   ;;  %1125 = vperm.xlu0 %5450, %v1050_v50   ;;  %v1055_v34 = vld [vmem:[%s10776_s0 + $0x52] sm:$0xff]  ;;  %v1054_v49 = vld [vmem:[%s10776_s0 + $0x4a] sm:$0xff] }
 0x109   :  { %v6020_v18 = vpop.permute.xlu1 %623  ;;  %v6022_v1 = vpop.permute.xlu0 %618 }
 0x10a   :  { %10795 = vst [vmem:[#allocation15_spill] sm:$0xff] %v6020_v18  ;;  %10796 = vst [vmem:[#allocation16_spill] sm:$0xff] %v6022_v1  ;;  %1140 = vperm.xlu1 %5451, %v1053_v2   ;;  %1135 = vperm.xlu0 %5450, %v1052_v17   ;;  %v1057_v1 = vld [vmem:[%s10776_s0 + $0x6a] sm:$0xff]  ;;  %v1056_v2 = vld [vmem:[%s10776_s0 + $0x62] sm:$0xff] }
 0x10d   :  { %v6030_v50 = vpop.permute.xlu1 %633  ;;  %v6032_v33 = vpop.permute.xlu0 %628 }
 0x10e   :  { %10797 = vst [vmem:[#allocation17_spill] sm:$0xff] %v6030_v50  ;;  %10798 = vst [vmem:[#allocation18_spill] sm:$0xff] %v6032_v33  ;;  %1150 = vperm.xlu1 %5451, %v1055_v34   ;;  %1145 = vperm.xlu0 %5450, %v1054_v49   ;;  %v1059_v33 = vld [vmem:[%s10776_s0 + $0x82] sm:$0xff]  ;;  %v1058_v34 = vld [vmem:[%s10776_s0 + $0x7a] sm:$0xff] }
 0x111   :  { %v6040_v17 = vpop.permute.xlu1 %643  ;;  %v6042_v18 = vpop.permute.xlu0 %638 }
 0x112   :  { %10799 = vst [vmem:[#allocation19_spill] sm:$0xff] %v6040_v17  ;;  %10800 = vst [vmem:[#allocation20_spill] sm:$0xff] %v6042_v18  ;;  %1160 = vperm.xlu1 %5451, %v1057_v1   ;;  %1155 = vperm.xlu0 %5450, %v1056_v2   ;;  %v1061_v18 = vld [vmem:[%s10776_s0 + $0x9a] sm:$0xff]  ;;  %v1060_v1 = vld [vmem:[%s10776_s0 + $0x92] sm:$0xff] }
 0x115   :  { %v6050_v49 = vpop.permute.xlu1 %653  ;;  %v6052_v50 = vpop.permute.xlu0 %648 }
 0x116   :  { %10801 = vst [vmem:[#allocation21_spill] sm:$0xff] %v6050_v49  ;;  %10802 = vst [vmem:[#allocation22_spill] sm:$0xff] %v6052_v50  ;;  %1170 = vperm.xlu1 %5451, %v1059_v33   ;;  %1165 = vperm.xlu0 %5450, %v1058_v34   ;;  %v1063_v50 = vld [vmem:[%s10776_s0 + $0xb2] sm:$0xff]  ;;  %v1062_v33 = vld [vmem:[%s10776_s0 + $0xaa] sm:$0xff] }
 0x119   :  { %v6060_v2 = vpop.permute.xlu1 %663  ;;  %v6062_v17 = vpop.permute.xlu0 %658 }
 0x11a   :  { %10803 = vst [vmem:[#allocation23_spill] sm:$0xff] %v6060_v2  ;;  %10804 = vst [vmem:[#allocation24_spill] sm:$0xff] %v6062_v17  ;;  %1180 = vperm.xlu1 %5451, %v1061_v18   ;;  %1175 = vperm.xlu0 %5450, %v1060_v1   ;;  %v1065_v17 = vld [vmem:[%s10776_s0 + $0xca] sm:$0xff]  ;;  %v1064_v18 = vld [vmem:[%s10776_s0 + $0xc2] sm:$0xff] }
 0x11d   :  { %v6070_v34 = vpop.permute.xlu1 %673  ;;  %v6072_v49 = vpop.permute.xlu0 %668 }
 0x11e   :  { %10805 = vst [vmem:[#allocation25_spill] sm:$0xff] %v6070_v34  ;;  %10806 = vst [vmem:[#allocation26_spill] sm:$0xff] %v6072_v49  ;;  %1190 = vperm.xlu1 %5451, %v1063_v50   ;;  %1185 = vperm.xlu0 %5450, %v1062_v33   ;;  %v1067_v49 = vld [vmem:[%s10776_s0 + $0xe2] sm:$0xff]  ;;  %v1066_v50 = vld [vmem:[%s10776_s0 + $0xda] sm:$0xff] }
 0x121   :  { %v6080_v1 = vpop.permute.xlu1 %683  ;;  %v6082_v2 = vpop.permute.xlu0 %678 }
 0x122   :  { %10807 = vst [vmem:[#allocation27_spill] sm:$0xff] %v6080_v1  ;;  %10808 = vst [vmem:[#allocation28_spill] sm:$0xff] %v6082_v2  ;;  %1200 = vperm.xlu1 %5451, %v1065_v17   ;;  %1195 = vperm.xlu0 %5450, %v1064_v18   ;;  %v1069_v2 = vld [vmem:[%s10776_s0 + $0xfa] sm:$0xff]  ;;  %v1068_v17 = vld [vmem:[%s10776_s0 + $0xf2] sm:$0xff] }
 0x125   :  { %v6090_v33 = vpop.permute.xlu1 %693  ;;  %v6092_v34 = vpop.permute.xlu0 %688 }
 0x126   :  { %10809 = vst [vmem:[#allocation29_spill] sm:$0xff] %v6090_v33  ;;  %10810 = vst [vmem:[#allocation30_spill] sm:$0xff] %v6092_v34  ;;  %1210 = vperm.xlu1 %5451, %v1067_v49   ;;  %1205 = vperm.xlu0 %5450, %v1066_v50   ;;  %v1071_v34 = vld [vmem:[%s10776_s0 + $0x112] sm:$0xff]  ;;  %v1070_v49 = vld [vmem:[%s10776_s0 + $0x10a] sm:$0xff] }
 0x129   :  { %v6100_v18 = vpop.permute.xlu1 %703  ;;  %v6102_v1 = vpop.permute.xlu0 %698 }
 0x12a   :  { %10811 = vst [vmem:[#allocation31_spill] sm:$0xff] %v6100_v18  ;;  %10812 = vst [vmem:[#allocation32_spill] sm:$0xff] %v6102_v1  ;;  %1220 = vperm.xlu1 %5451, %v1069_v2   ;;  %1215 = vperm.xlu0 %5450, %v1068_v17   ;;  %v1073_v1 = vld [vmem:[%s10776_s0 + $0x12a] sm:$0xff]  ;;  %v1072_v2 = vld [vmem:[%s10776_s0 + $0x122] sm:$0xff] }
 0x12d   :  { %v6110_v50 = vpop.permute.xlu1 %713  ;;  %v6112_v33 = vpop.permute.xlu0 %708 }
 0x12e   :  { %10813 = vst [vmem:[#allocation33_spill] sm:$0xff] %v6110_v50  ;;  %10814 = vst [vmem:[#allocation34_spill] sm:$0xff] %v6112_v33  ;;  %1230 = vperm.xlu1 %5451, %v1071_v34   ;;  %1225 = vperm.xlu0 %5450, %v1070_v49   ;;  %v1075_v33 = vld [vmem:[%s10776_s0 + $0x142] sm:$0xff]  ;;  %v1074_v34 = vld [vmem:[%s10776_s0 + $0x13a] sm:$0xff] }
 0x131   :  { %v6120_v17 = vpop.permute.xlu1 %723  ;;  %v6122_v18 = vpop.permute.xlu0 %718 }
 0x132   :  { %10815 = vst [vmem:[#allocation35_spill] sm:$0xff] %v6120_v17  ;;  %10816 = vst [vmem:[#allocation36_spill] sm:$0xff] %v6122_v18  ;;  %1240 = vperm.xlu1 %5451, %v1073_v1   ;;  %1235 = vperm.xlu0 %5450, %v1072_v2   ;;  %v1077_v18 = vld [vmem:[%s10776_s0 + $0x15a] sm:$0xff]  ;;  %v1076_v1 = vld [vmem:[%s10776_s0 + $0x152] sm:$0xff] }
 0x135   :  { %v6130_v49 = vpop.permute.xlu1 %733  ;;  %v6132_v50 = vpop.permute.xlu0 %728 }
 0x136   :  { %10817 = vst [vmem:[#allocation37_spill] sm:$0xff] %v6130_v49  ;;  %10818 = vst [vmem:[#allocation38_spill] sm:$0xff] %v6132_v50  ;;  %1250 = vperm.xlu1 %5451, %v1075_v33   ;;  %1245 = vperm.xlu0 %5450, %v1074_v34   ;;  %v1079_v50 = vld [vmem:[%s10776_s0 + $0x172] sm:$0xff]  ;;  %v1078_v33 = vld [vmem:[%s10776_s0 + $0x16a] sm:$0xff] }
 0x139   :  { %v6140_v2 = vpop.permute.xlu1 %743  ;;  %v6142_v17 = vpop.permute.xlu0 %738 }
 0x13a   :  { %10819 = vst [vmem:[#allocation39_spill] sm:$0xff] %v6140_v2  ;;  %10820 = vst [vmem:[#allocation40_spill] sm:$0xff] %v6142_v17  ;;  %1260 = vperm.xlu1 %5451, %v1077_v18   ;;  %1255 = vperm.xlu0 %5450, %v1076_v1   ;;  %v1081_v17 = vld [vmem:[%s10776_s0 + $0x1ba] sm:$0xff]  ;;  %v1080_v18 = vld [vmem:[%s10776_s0 + $0x1b2] sm:$0xff] }
 0x13d   :  { %v6150_v34 = vpop.permute.xlu1 %753  ;;  %v6152_v49 = vpop.permute.xlu0 %748 }
 0x13e   :  { %10821 = vst [vmem:[#allocation41_spill] sm:$0xff] %v6150_v34  ;;  %10822 = vst [vmem:[#allocation42_spill] sm:$0xff] %v6152_v49  ;;  %1270 = vperm.xlu1 %5451, %v1079_v50   ;;  %1265 = vperm.xlu0 %5450, %v1078_v33   ;;  %v1083_v49 = vld [vmem:[%s10776_s0 + $0x1d2] sm:$0xff]  ;;  %v1082_v50 = vld [vmem:[%s10776_s0 + $0x1ca] sm:$0xff] }
 0x141   :  { %v6160_v1 = vpop.permute.xlu1 %763  ;;  %v6162_v2 = vpop.permute.xlu0 %758 }
 0x142   :  { %10823 = vst [vmem:[#allocation43_spill] sm:$0xff] %v6160_v1  ;;  %10824 = vst [vmem:[#allocation44_spill] sm:$0xff] %v6162_v2  ;;  %1280 = vperm.xlu1 %5451, %v1081_v17   ;;  %1275 = vperm.xlu0 %5450, %v1080_v18   ;;  %v1085_v2 = vld [vmem:[%s10776_s0 + $0x1ea] sm:$0xff]  ;;  %v1084_v17 = vld [vmem:[%s10776_s0 + $0x1e2] sm:$0xff] }
 0x145   :  { %v6170_v33 = vpop.permute.xlu1 %773  ;;  %v6172_v34 = vpop.permute.xlu0 %768 }
 0x146   :  { %10825 = vst [vmem:[#allocation45_spill] sm:$0xff] %v6170_v33  ;;  %10826 = vst [vmem:[#allocation46_spill] sm:$0xff] %v6172_v34  ;;  %1290 = vperm.xlu1 %5451, %v1083_v49   ;;  %1285 = vperm.xlu0 %5450, %v1082_v50   ;;  %v1087_v34 = vld [vmem:[%s10776_s0 + $0x202] sm:$0xff]  ;;  %v1086_v49 = vld [vmem:[%s10776_s0 + $0x1fa] sm:$0xff] }
 0x149   :  { %v6180_v18 = vpop.permute.xlu1 %783  ;;  %v6182_v1 = vpop.permute.xlu0 %778 }
 0x14a   :  { %10827 = vst [vmem:[#allocation47_spill] sm:$0xff] %v6180_v18  ;;  %10828 = vst [vmem:[#allocation48_spill] sm:$0xff] %v6182_v1  ;;  %1300 = vperm.xlu1 %5451, %v1085_v2   ;;  %1295 = vperm.xlu0 %5450, %v1084_v17   ;;  %v1089_v1 = vld [vmem:[%s10776_s0 + $0x21a] sm:$0xff]  ;;  %v1088_v2 = vld [vmem:[%s10776_s0 + $0x212] sm:$0xff] }
 0x14d   :  { %v6190_v50 = vpop.permute.xlu1 %793  ;;  %v6192_v33 = vpop.permute.xlu0 %788 }
 0x14e   :  { %10829 = vst [vmem:[#allocation49_spill] sm:$0xff] %v6190_v50  ;;  %10830 = vst [vmem:[#allocation50_spill] sm:$0xff] %v6192_v33  ;;  %1310 = vperm.xlu1 %5451, %v1087_v34   ;;  %1305 = vperm.xlu0 %5450, %v1086_v49   ;;  %v1091_v33 = vld [vmem:[%s10776_s0 + $0x232] sm:$0xff]  ;;  %v1090_v34 = vld [vmem:[%s10776_s0 + $0x22a] sm:$0xff] }
 0x151   :  { %v6200_v17 = vpop.permute.xlu1 %803  ;;  %v6202_v18 = vpop.permute.xlu0 %798 }
 0x152   :  { %10831 = vst [vmem:[#allocation51_spill] sm:$0xff] %v6200_v17  ;;  %10832 = vst [vmem:[#allocation52_spill] sm:$0xff] %v6202_v18  ;;  %1320 = vperm.xlu1 %5451, %v1089_v1   ;;  %1315 = vperm.xlu0 %5450, %v1088_v2   ;;  %v1093_v18 = vld [vmem:[%s10776_s0 + $0x24a] sm:$0xff]  ;;  %v1092_v1 = vld [vmem:[%s10776_s0 + $0x242] sm:$0xff] }
 0x155   :  { %v6210_v49 = vpop.permute.xlu1 %813  ;;  %v6212_v50 = vpop.permute.xlu0 %808 }
 0x156   :  { %10833 = vst [vmem:[#allocation53_spill] sm:$0xff] %v6210_v49  ;;  %10834 = vst [vmem:[#allocation54_spill] sm:$0xff] %v6212_v50  ;;  %1330 = vperm.xlu1 %5451, %v1091_v33   ;;  %1325 = vperm.xlu0 %5450, %v1090_v34   ;;  %v1095_v50 = vld [vmem:[%s10776_s0 + $0x262] sm:$0xff]  ;;  %v1094_v33 = vld [vmem:[%s10776_s0 + $0x25a] sm:$0xff] }
 0x159   :  { %v6220_v2 = vpop.permute.xlu1 %823  ;;  %v6222_v17 = vpop.permute.xlu0 %818 }
 0x15a   :  { %10835 = vst [vmem:[#allocation55_spill] sm:$0xff] %v6220_v2  ;;  %10836 = vst [vmem:[#allocation56_spill] sm:$0xff] %v6222_v17  ;;  %1340 = vperm.xlu1 %5451, %v1093_v18   ;;  %1335 = vperm.xlu0 %5450, %v1092_v1   ;;  %v1097_v17 = vld [vmem:[%s10776_s0 + $0x27a] sm:$0xff]  ;;  %v1096_v18 = vld [vmem:[%s10776_s0 + $0x272] sm:$0xff] }
 0x15d   :  { %v6230_v34 = vpop.permute.xlu1 %833  ;;  %v6232_v49 = vpop.permute.xlu0 %828 }
 0x15e   :  { %10837 = vst [vmem:[#allocation57_spill] sm:$0xff] %v6230_v34  ;;  %10838 = vst [vmem:[#allocation58_spill] sm:$0xff] %v6232_v49  ;;  %1350 = vperm.xlu1 %5451, %v1095_v50   ;;  %1345 = vperm.xlu0 %5450, %v1094_v33   ;;  %v1099_v49 = vld [vmem:[%s10776_s0 + $0x292] sm:$0xff]  ;;  %v1098_v50 = vld [vmem:[%s10776_s0 + $0x28a] sm:$0xff] }
 0x161   :  { %v6240_v1 = vpop.permute.xlu1 %843  ;;  %v6242_v2 = vpop.permute.xlu0 %838 }
 0x162   :  { %10839 = vst [vmem:[#allocation59_spill] sm:$0xff] %v6240_v1  ;;  %10840 = vst [vmem:[#allocation60_spill] sm:$0xff] %v6242_v2  ;;  %1360 = vperm.xlu1 %5451, %v1097_v17   ;;  %1355 = vperm.xlu0 %5450, %v1096_v18   ;;  %v1101_v2 = vld [vmem:[%s10776_s0 + $0x2aa] sm:$0xff]  ;;  %v1100_v17 = vld [vmem:[%s10776_s0 + $0x2a2] sm:$0xff] }
 0x165   :  { %v6250_v33 = vpop.permute.xlu1 %853  ;;  %v6252_v34 = vpop.permute.xlu0 %848 }
 0x166   :  { %10841 = vst [vmem:[#allocation61_spill] sm:$0xff] %v6250_v33  ;;  %10842 = vst [vmem:[#allocation62_spill] sm:$0xff] %v6252_v34  ;;  %1370 = vperm.xlu1 %5451, %v1099_v49   ;;  %1365 = vperm.xlu0 %5450, %v1098_v50   ;;  %v1103_v34 = vld [vmem:[%s10776_s0 + $0x2c2] sm:$0xff]  ;;  %v1102_v49 = vld [vmem:[%s10776_s0 + $0x2ba] sm:$0xff] }
 0x169   :  { %v6260_v18 = vpop.permute.xlu1 %863  ;;  %v6262_v1 = vpop.permute.xlu0 %858 }
 0x16a   :  { %10843 = vst [vmem:[#allocation63_spill] sm:$0xff] %v6260_v18  ;;  %10844 = vst [vmem:[#allocation64_spill] sm:$0xff] %v6262_v1  ;;  %1380 = vperm.xlu1 %5451, %v1101_v2   ;;  %1375 = vperm.xlu0 %5450, %v1100_v17   ;;  %v1105_v1 = vld [vmem:[%s10776_s0 + $0x2da] sm:$0xff]  ;;  %v1104_v2 = vld [vmem:[%s10776_s0 + $0x2d2] sm:$0xff] }
 0x16d   :  { %v6270_v50 = vpop.permute.xlu1 %873  ;;  %v6272_v33 = vpop.permute.xlu0 %868 }
 0x16e   :  { %10845 = vst [vmem:[#allocation65_spill] sm:$0xff] %v6270_v50  ;;  %10846 = vst [vmem:[#allocation66_spill] sm:$0xff] %v6272_v33  ;;  %1390 = vperm.xlu1 %5451, %v1103_v34   ;;  %1385 = vperm.xlu0 %5450, %v1102_v49   ;;  %v1107_v33 = vld [vmem:[%s10776_s0 + $0x2f2] sm:$0xff]  ;;  %v1106_v34 = vld [vmem:[%s10776_s0 + $0x2ea] sm:$0xff] }
 0x171   :  { %v6280_v17 = vpop.permute.xlu1 %883  ;;  %v6282_v18 = vpop.permute.xlu0 %878 }
 0x172   :  { %10847 = vst [vmem:[#allocation67_spill] sm:$0xff] %v6280_v17  ;;  %10848 = vst [vmem:[#allocation68_spill] sm:$0xff] %v6282_v18  ;;  %1400 = vperm.xlu1 %5451, %v1105_v1   ;;  %1395 = vperm.xlu0 %5450, %v1104_v2   ;;  %v1109_v18 = vld [vmem:[%s10776_s0 + $0x30a] sm:$0xff]  ;;  %v1108_v1 = vld [vmem:[%s10776_s0 + $0x302] sm:$0xff] }
 0x175   :  { %v6290_v49 = vpop.permute.xlu1 %893  ;;  %v6292_v50 = vpop.permute.xlu0 %888 }
 0x176   :  { %10849 = vst [vmem:[#allocation69_spill] sm:$0xff] %v6290_v49  ;;  %10850 = vst [vmem:[#allocation70_spill] sm:$0xff] %v6292_v50  ;;  %1410 = vperm.xlu1 %5451, %v1107_v33   ;;  %1405 = vperm.xlu0 %5450, %v1106_v34   ;;  %v1111_v50 = vld [vmem:[%s10776_s0 + $0x322] sm:$0xff]  ;;  %v1110_v33 = vld [vmem:[%s10776_s0 + $0x31a] sm:$0xff] }
 0x179   :  { %v6300_v2 = vpop.permute.xlu1 %903  ;;  %v6302_v17 = vpop.permute.xlu0 %898 }
 0x17a   :  { %10851 = vst [vmem:[#allocation71_spill] sm:$0xff] %v6300_v2  ;;  %10852 = vst [vmem:[#allocation72_spill] sm:$0xff] %v6302_v17  ;;  %1420 = vperm.xlu1 %5451, %v1109_v18   ;;  %1415 = vperm.xlu0 %5450, %v1108_v1   ;;  %v4980_v17 = vld [vmem:[%s10776_s0 + $0x20] sm:$0xff]  ;;  %v4979_v18 = vld [vmem:[%s10776_s0 + $0x18] sm:$0xff] }
 0x17d   :  { %v6310_v34 = vpop.permute.xlu1 %913  ;;  %v6312_v49 = vpop.permute.xlu0 %908 }
 0x17e   :  { %10853 = vst [vmem:[#allocation73_spill] sm:$0xff] %v6310_v34  ;;  %10854 = vst [vmem:[#allocation74_spill] sm:$0xff] %v6312_v49  ;;  %1430 = vperm.xlu1 %5451, %v1111_v50   ;;  %1425 = vperm.xlu0 %5450, %v1110_v33   ;;  %v4982_v49 = vld [vmem:[%s10776_s0 + $0x38] sm:$0xff]  ;;  %v4981_v50 = vld [vmem:[%s10776_s0 + $0x30] sm:$0xff] }
 0x181   :  { %v6320_v1 = vpop.permute.xlu1 %1120  ;;  %v6322_v2 = vpop.permute.xlu0 %1115 }
 0x182   :  { %10855 = vst [vmem:[#allocation75_spill] sm:$0xff] %v6320_v1  ;;  %10856 = vst [vmem:[#allocation76_spill] sm:$0xff] %v6322_v2  ;;  %1638 = vperm.xlu1 %5451, %v4980_v17   ;;  %1633 = vperm.xlu0 %5450, %v4979_v18   ;;  %v4984_v2 = vld [vmem:[%s10776_s0 + $0x50] sm:$0xff]  ;;  %v4983_v17 = vld [vmem:[%s10776_s0 + $0x48] sm:$0xff] }
 0x185   :  { %v6330_v33 = vpop.permute.xlu1 %1130  ;;  %v6332_v34 = vpop.permute.xlu0 %1125 }
 0x186   :  { %10857 = vst [vmem:[#allocation77_spill] sm:$0xff] %v6330_v33  ;;  %10858 = vst [vmem:[#allocation78_spill] sm:$0xff] %v6332_v34  ;;  %1648 = vperm.xlu1 %5451, %v4982_v49   ;;  %1643 = vperm.xlu0 %5450, %v4981_v50   ;;  %v4986_v34 = vld [vmem:[%s10776_s0 + $0x68] sm:$0xff]  ;;  %v4985_v49 = vld [vmem:[%s10776_s0 + $0x60] sm:$0xff] }
 0x189   :  { %v6340_v18 = vpop.permute.xlu1 %1140  ;;  %v6342_v1 = vpop.permute.xlu0 %1135 }
 0x18a   :  { %10859 = vst [vmem:[#allocation79_spill] sm:$0xff] %v6340_v18  ;;  %10860 = vst [vmem:[#allocation80_spill] sm:$0xff] %v6342_v1  ;;  %1658 = vperm.xlu1 %5451, %v4984_v2   ;;  %1653 = vperm.xlu0 %5450, %v4983_v17   ;;  %v4988_v1 = vld [vmem:[%s10776_s0 + $0x80] sm:$0xff]  ;;  %v4987_v2 = vld [vmem:[%s10776_s0 + $0x78] sm:$0xff] }
 0x18d   :  { %v6350_v50 = vpop.permute.xlu1 %1150  ;;  %v6352_v33 = vpop.permute.xlu0 %1145 }
 0x18e   :  { %10861 = vst [vmem:[#allocation81_spill] sm:$0xff] %v6350_v50  ;;  %10862 = vst [vmem:[#allocation82_spill] sm:$0xff] %v6352_v33  ;;  %1668 = vperm.xlu1 %5451, %v4986_v34   ;;  %1663 = vperm.xlu0 %5450, %v4985_v49   ;;  %v4990_v33 = vld [vmem:[%s10776_s0 + $0x98] sm:$0xff]  ;;  %v4989_v34 = vld [vmem:[%s10776_s0 + $0x90] sm:$0xff] }
 0x191   :  { %v6360_v17 = vpop.permute.xlu1 %1160  ;;  %v6362_v18 = vpop.permute.xlu0 %1155 }
 0x192   :  { %10863 = vst [vmem:[#allocation83_spill] sm:$0xff] %v6360_v17  ;;  %10864 = vst [vmem:[#allocation84_spill] sm:$0xff] %v6362_v18  ;;  %1678 = vperm.xlu1 %5451, %v4988_v1   ;;  %1673 = vperm.xlu0 %5450, %v4987_v2   ;;  %v4992_v18 = vld [vmem:[%s10776_s0 + $0xb0] sm:$0xff]  ;;  %v4991_v1 = vld [vmem:[%s10776_s0 + $0xa8] sm:$0xff] }
 0x195   :  { %v6370_v49 = vpop.permute.xlu1 %1170  ;;  %v6372_v50 = vpop.permute.xlu0 %1165 }
 0x196   :  { %10865 = vst [vmem:[#allocation85_spill] sm:$0xff] %v6370_v49  ;;  %10866 = vst [vmem:[#allocation86_spill] sm:$0xff] %v6372_v50  ;;  %1688 = vperm.xlu1 %5451, %v4990_v33   ;;  %1683 = vperm.xlu0 %5450, %v4989_v34   ;;  %v4994_v50 = vld [vmem:[%s10776_s0 + $0xc8] sm:$0xff]  ;;  %v4993_v33 = vld [vmem:[%s10776_s0 + $0xc0] sm:$0xff] }
 0x199   :  { %v6380_v2 = vpop.permute.xlu1 %1180  ;;  %v6382_v17 = vpop.permute.xlu0 %1175 }
 0x19a   :  { %10867 = vst [vmem:[#allocation87_spill] sm:$0xff] %v6380_v2  ;;  %10868 = vst [vmem:[#allocation88_spill] sm:$0xff] %v6382_v17  ;;  %1698 = vperm.xlu1 %5451, %v4992_v18   ;;  %1693 = vperm.xlu0 %5450, %v4991_v1   ;;  %v4996_v17 = vld [vmem:[%s10776_s0 + $0xe0] sm:$0xff]  ;;  %v4995_v18 = vld [vmem:[%s10776_s0 + $0xd8] sm:$0xff] }
 0x19d   :  { %v6390_v34 = vpop.permute.xlu1 %1190  ;;  %v6392_v49 = vpop.permute.xlu0 %1185 }
 0x19e   :  { %10869 = vst [vmem:[#allocation89_spill] sm:$0xff] %v6390_v34  ;;  %10870 = vst [vmem:[#allocation90_spill] sm:$0xff] %v6392_v49  ;;  %1708 = vperm.xlu1 %5451, %v4994_v50   ;;  %1703 = vperm.xlu0 %5450, %v4993_v33   ;;  %v4998_v49 = vld [vmem:[%s10776_s0 + $0xf8] sm:$0xff]  ;;  %v4997_v50 = vld [vmem:[%s10776_s0 + $0xf0] sm:$0xff] }
 0x1a1   :  { %v6400_v1 = vpop.permute.xlu1 %1200  ;;  %v6402_v2 = vpop.permute.xlu0 %1195 }
 0x1a2   :  { %10871 = vst [vmem:[#allocation91_spill] sm:$0xff] %v6400_v1  ;;  %10872 = vst [vmem:[#allocation92_spill] sm:$0xff] %v6402_v2  ;;  %1718 = vperm.xlu1 %5451, %v4996_v17   ;;  %1713 = vperm.xlu0 %5450, %v4995_v18   ;;  %v5000_v2 = vld [vmem:[%s10776_s0 + $0x110] sm:$0xff]  ;;  %v4999_v17 = vld [vmem:[%s10776_s0 + $0x108] sm:$0xff] }
 0x1a5   :  { %v6410_v33 = vpop.permute.xlu1 %1210  ;;  %v6412_v34 = vpop.permute.xlu0 %1205 }
 0x1a6   :  { %10873 = vst [vmem:[#allocation93_spill] sm:$0xff] %v6410_v33  ;;  %10874 = vst [vmem:[#allocation94_spill] sm:$0xff] %v6412_v34  ;;  %1728 = vperm.xlu1 %5451, %v4998_v49   ;;  %1723 = vperm.xlu0 %5450, %v4997_v50   ;;  %v5002_v34 = vld [vmem:[%s10776_s0 + $0x128] sm:$0xff]  ;;  %v5001_v49 = vld [vmem:[%s10776_s0 + $0x120] sm:$0xff] }
 0x1a9   :  { %v6420_v18 = vpop.permute.xlu1 %1220  ;;  %v6422_v1 = vpop.permute.xlu0 %1215 }
 0x1aa   :  { %10875 = vst [vmem:[#allocation95_spill] sm:$0xff] %v6420_v18  ;;  %10876 = vst [vmem:[#allocation96_spill] sm:$0xff] %v6422_v1  ;;  %1738 = vperm.xlu1 %5451, %v5000_v2   ;;  %1733 = vperm.xlu0 %5450, %v4999_v17   ;;  %v5004_v1 = vld [vmem:[%s10776_s0 + $0x140] sm:$0xff]  ;;  %v5003_v2 = vld [vmem:[%s10776_s0 + $0x138] sm:$0xff] }
 0x1ad   :  { %v6430_v50 = vpop.permute.xlu1 %1230  ;;  %v6432_v33 = vpop.permute.xlu0 %1225 }
 0x1ae   :  { %10877 = vst [vmem:[#allocation97_spill] sm:$0xff] %v6430_v50  ;;  %10878 = vst [vmem:[#allocation98_spill] sm:$0xff] %v6432_v33  ;;  %1748 = vperm.xlu1 %5451, %v5002_v34   ;;  %1743 = vperm.xlu0 %5450, %v5001_v49   ;;  %v5006_v33 = vld [vmem:[%s10776_s0 + $0x158] sm:$0xff]  ;;  %v5005_v34 = vld [vmem:[%s10776_s0 + $0x150] sm:$0xff] }
 0x1b1   :  { %v6440_v17 = vpop.permute.xlu1 %1240  ;;  %v6442_v18 = vpop.permute.xlu0 %1235 }
 0x1b2   :  { %10879 = vst [vmem:[#allocation99_spill] sm:$0xff] %v6440_v17  ;;  %10880 = vst [vmem:[#allocation100_spill] sm:$0xff] %v6442_v18  ;;  %1758 = vperm.xlu1 %5451, %v5004_v1   ;;  %1753 = vperm.xlu0 %5450, %v5003_v2   ;;  %v5008_v18 = vld [vmem:[%s10776_s0 + $0x170] sm:$0xff]  ;;  %v5007_v1 = vld [vmem:[%s10776_s0 + $0x168] sm:$0xff] }
 0x1b5   :  { %v6450_v49 = vpop.permute.xlu1 %1250  ;;  %v6452_v50 = vpop.permute.xlu0 %1245 }
 0x1b6   :  { %10881 = vst [vmem:[#allocation101_spill] sm:$0xff] %v6450_v49  ;;  %10882 = vst [vmem:[#allocation102_spill] sm:$0xff] %v6452_v50  ;;  %1768 = vperm.xlu1 %5451, %v5006_v33   ;;  %1763 = vperm.xlu0 %5450, %v5005_v34   ;;  %v5010_v50 = vld [vmem:[%s10776_s0 + $0x188] sm:$0xff]  ;;  %v5009_v33 = vld [vmem:[%s10776_s0 + $0x180] sm:$0xff] }
 0x1b9   :  { %v6460_v2 = vpop.permute.xlu1 %1260  ;;  %v6462_v17 = vpop.permute.xlu0 %1255 }
 0x1ba   :  { %10883 = vst [vmem:[#allocation103_spill] sm:$0xff] %v6460_v2  ;;  %10884 = vst [vmem:[#allocation104_spill] sm:$0xff] %v6462_v17  ;;  %1778 = vperm.xlu1 %5451, %v5008_v18   ;;  %1773 = vperm.xlu0 %5450, %v5007_v1   ;;  %v5012_v17 = vld [vmem:[%s10776_s0 + $0x1d0] sm:$0xff]  ;;  %v5011_v18 = vld [vmem:[%s10776_s0 + $0x1c8] sm:$0xff] }
 0x1bd   :  { %v6470_v34 = vpop.permute.xlu1 %1270  ;;  %v6472_v49 = vpop.permute.xlu0 %1265 }
 0x1be   :  { %10885 = vst [vmem:[#allocation105_spill] sm:$0xff] %v6470_v34  ;;  %10886 = vst [vmem:[#allocation106_spill] sm:$0xff] %v6472_v49  ;;  %1788 = vperm.xlu1 %5451, %v5010_v50   ;;  %1783 = vperm.xlu0 %5450, %v5009_v33   ;;  %v5014_v49 = vld [vmem:[%s10776_s0 + $0x1e8] sm:$0xff]  ;;  %v5013_v50 = vld [vmem:[%s10776_s0 + $0x1e0] sm:$0xff] }
 0x1c1   :  { %v6480_v1 = vpop.permute.xlu1 %1280  ;;  %v6482_v2 = vpop.permute.xlu0 %1275 }
 0x1c2   :  { %10887 = vst [vmem:[#allocation107_spill] sm:$0xff] %v6480_v1  ;;  %10888 = vst [vmem:[#allocation108_spill] sm:$0xff] %v6482_v2  ;;  %1798 = vperm.xlu1 %5451, %v5012_v17   ;;  %1793 = vperm.xlu0 %5450, %v5011_v18   ;;  %v5016_v2 = vld [vmem:[%s10776_s0 + $0x200] sm:$0xff]  ;;  %v5015_v17 = vld [vmem:[%s10776_s0 + $0x1f8] sm:$0xff] }
 0x1c5   :  { %v6490_v33 = vpop.permute.xlu1 %1290  ;;  %v6492_v34 = vpop.permute.xlu0 %1285 }
 0x1c6   :  { %10889 = vst [vmem:[#allocation109_spill] sm:$0xff] %v6490_v33  ;;  %10890 = vst [vmem:[#allocation110_spill] sm:$0xff] %v6492_v34  ;;  %1808 = vperm.xlu1 %5451, %v5014_v49   ;;  %1803 = vperm.xlu0 %5450, %v5013_v50   ;;  %v5018_v34 = vld [vmem:[%s10776_s0 + $0x218] sm:$0xff]  ;;  %v5017_v49 = vld [vmem:[%s10776_s0 + $0x210] sm:$0xff] }
 0x1c9   :  { %v6500_v18 = vpop.permute.xlu1 %1300  ;;  %v6502_v1 = vpop.permute.xlu0 %1295 }
 0x1ca   :  { %10891 = vst [vmem:[#allocation111_spill] sm:$0xff] %v6500_v18  ;;  %10892 = vst [vmem:[#allocation112_spill] sm:$0xff] %v6502_v1  ;;  %1818 = vperm.xlu1 %5451, %v5016_v2   ;;  %1813 = vperm.xlu0 %5450, %v5015_v17   ;;  %v5020_v1 = vld [vmem:[%s10776_s0 + $0x230] sm:$0xff]  ;;  %v5019_v2 = vld [vmem:[%s10776_s0 + $0x228] sm:$0xff] }
 0x1cd   :  { %v6510_v50 = vpop.permute.xlu1 %1310  ;;  %v6512_v33 = vpop.permute.xlu0 %1305 }
 0x1ce   :  { %10893 = vst [vmem:[#allocation113_spill] sm:$0xff] %v6510_v50  ;;  %10894 = vst [vmem:[#allocation114_spill] sm:$0xff] %v6512_v33  ;;  %1828 = vperm.xlu1 %5451, %v5018_v34   ;;  %1823 = vperm.xlu0 %5450, %v5017_v49   ;;  %v5022_v33 = vld [vmem:[%s10776_s0 + $0x248] sm:$0xff]  ;;  %v5021_v34 = vld [vmem:[%s10776_s0 + $0x240] sm:$0xff] }
 0x1d1   :  { %v6520_v17 = vpop.permute.xlu1 %1320  ;;  %v6522_v18 = vpop.permute.xlu0 %1315 }
 0x1d2   :  { %10895 = vst [vmem:[#allocation115_spill] sm:$0xff] %v6520_v17  ;;  %10896 = vst [vmem:[#allocation116_spill] sm:$0xff] %v6522_v18  ;;  %1838 = vperm.xlu1 %5451, %v5020_v1   ;;  %1833 = vperm.xlu0 %5450, %v5019_v2   ;;  %v5024_v18 = vld [vmem:[%s10776_s0 + $0x260] sm:$0xff]  ;;  %v5023_v1 = vld [vmem:[%s10776_s0 + $0x258] sm:$0xff] }
 0x1d5   :  { %v6530_v49 = vpop.permute.xlu1 %1330  ;;  %v6532_v50 = vpop.permute.xlu0 %1325 }
 0x1d6   :  { %10897 = vst [vmem:[#allocation117_spill] sm:$0xff] %v6530_v49  ;;  %10898 = vst [vmem:[#allocation118_spill] sm:$0xff] %v6532_v50  ;;  %1848 = vperm.xlu1 %5451, %v5022_v33   ;;  %1843 = vperm.xlu0 %5450, %v5021_v34   ;;  %v5026_v50 = vld [vmem:[%s10776_s0 + $0x278] sm:$0xff]  ;;  %v5025_v33 = vld [vmem:[%s10776_s0 + $0x270] sm:$0xff] }
 0x1d9   :  { %v6540_v2 = vpop.permute.xlu1 %1340  ;;  %v6542_v17 = vpop.permute.xlu0 %1335 }
 0x1da   :  { %10899 = vst [vmem:[#allocation119_spill] sm:$0xff] %v6540_v2  ;;  %10900 = vst [vmem:[#allocation120_spill] sm:$0xff] %v6542_v17  ;;  %1858 = vperm.xlu1 %5451, %v5024_v18   ;;  %1853 = vperm.xlu0 %5450, %v5023_v1   ;;  %v5028_v17 = vld [vmem:[%s10776_s0 + $0x290] sm:$0xff]  ;;  %v5027_v18 = vld [vmem:[%s10776_s0 + $0x288] sm:$0xff] }
 0x1dd   :  { %v6550_v34 = vpop.permute.xlu1 %1350  ;;  %v6552_v49 = vpop.permute.xlu0 %1345 }
 0x1de   :  { %10901 = vst [vmem:[#allocation121_spill] sm:$0xff] %v6550_v34  ;;  %10902 = vst [vmem:[#allocation122_spill] sm:$0xff] %v6552_v49  ;;  %1868 = vperm.xlu1 %5451, %v5026_v50   ;;  %1863 = vperm.xlu0 %5450, %v5025_v33   ;;  %v5030_v49 = vld [vmem:[%s10776_s0 + $0x2a8] sm:$0xff]  ;;  %v5029_v50 = vld [vmem:[%s10776_s0 + $0x2a0] sm:$0xff] }
 0x1e1   :  { %v6560_v1 = vpop.permute.xlu1 %1360  ;;  %v6562_v2 = vpop.permute.xlu0 %1355 }
 0x1e2   :  { %10903 = vst [vmem:[#allocation123_spill] sm:$0xff] %v6560_v1  ;;  %10904 = vst [vmem:[#allocation124_spill] sm:$0xff] %v6562_v2  ;;  %1878 = vperm.xlu1 %5451, %v5028_v17   ;;  %1873 = vperm.xlu0 %5450, %v5027_v18   ;;  %v5032_v2 = vld [vmem:[%s10776_s0 + $0x2c0] sm:$0xff]  ;;  %v5031_v17 = vld [vmem:[%s10776_s0 + $0x2b8] sm:$0xff] }
 0x1e5   :  { %v6570_v33 = vpop.permute.xlu1 %1370  ;;  %v6572_v34 = vpop.permute.xlu0 %1365 }
 0x1e6   :  { %10905 = vst [vmem:[#allocation125_spill] sm:$0xff] %v6570_v33  ;;  %10906 = vst [vmem:[#allocation126_spill] sm:$0xff] %v6572_v34  ;;  %1888 = vperm.xlu1 %5451, %v5030_v49   ;;  %1883 = vperm.xlu0 %5450, %v5029_v50   ;;  %v5034_v34 = vld [vmem:[%s10776_s0 + $0x2d8] sm:$0xff]  ;;  %v5033_v49 = vld [vmem:[%s10776_s0 + $0x2d0] sm:$0xff] }
 0x1e9   :  { %v6580_v18 = vpop.permute.xlu1 %1380  ;;  %v6582_v1 = vpop.permute.xlu0 %1375 }
 0x1ea   :  { %10907 = vst [vmem:[#allocation127_spill] sm:$0xff] %v6580_v18  ;;  %10908 = vst [vmem:[#allocation128_spill] sm:$0xff] %v6582_v1  ;;  %1898 = vperm.xlu1 %5451, %v5032_v2   ;;  %1893 = vperm.xlu0 %5450, %v5031_v17   ;;  %v5036_v1 = vld [vmem:[%s10776_s0 + $0x2f0] sm:$0xff]  ;;  %v5035_v2 = vld [vmem:[%s10776_s0 + $0x2e8] sm:$0xff] }
 0x1ed   :  { %v6590_v50 = vpop.permute.xlu1 %1390  ;;  %v6592_v33 = vpop.permute.xlu0 %1385 }
 0x1ee   :  { %10909 = vst [vmem:[#allocation129_spill] sm:$0xff] %v6590_v50  ;;  %10910 = vst [vmem:[#allocation130_spill] sm:$0xff] %v6592_v33  ;;  %1908 = vperm.xlu1 %5451, %v5034_v34   ;;  %1903 = vperm.xlu0 %5450, %v5033_v49   ;;  %v5038_v33 = vld [vmem:[%s10776_s0 + $0x308] sm:$0xff]  ;;  %v5037_v34 = vld [vmem:[%s10776_s0 + $0x300] sm:$0xff] }
 0x1f1   :  { %v6600_v17 = vpop.permute.xlu1 %1400  ;;  %v6602_v18 = vpop.permute.xlu0 %1395 }
 0x1f2   :  { %10911 = vst [vmem:[#allocation131_spill] sm:$0xff] %v6600_v17  ;;  %10912 = vst [vmem:[#allocation132_spill] sm:$0xff] %v6602_v18  ;;  %1918 = vperm.xlu1 %5451, %v5036_v1   ;;  %1913 = vperm.xlu0 %5450, %v5035_v2   ;;  %v5040_v18 = vld [vmem:[%s10776_s0 + $0x320] sm:$0xff]  ;;  %v5039_v1 = vld [vmem:[%s10776_s0 + $0x318] sm:$0xff] }
 0x1f5   :  { %v6610_v49 = vpop.permute.xlu1 %1410  ;;  %v6612_v50 = vpop.permute.xlu0 %1405 }
 0x1f6   :  { %10913 = vst [vmem:[#allocation133_spill] sm:$0xff] %v6610_v49  ;;  %10914 = vst [vmem:[#allocation134_spill] sm:$0xff] %v6612_v50  ;;  %1928 = vperm.xlu1 %5451, %v5038_v33   ;;  %1923 = vperm.xlu0 %5450, %v5037_v34   ;;  %v5042_v50 = vld [vmem:[%s10776_s0 + $0x338] sm:$0xff]  ;;  %v5041_v33 = vld [vmem:[%s10776_s0 + $0x330] sm:$0xff] }
 0x1f9   :  { %v6620_v2 = vpop.permute.xlu1 %1420  ;;  %v6622_v17 = vpop.permute.xlu0 %1415 }
 0x1fa   :  { %10915 = vst [vmem:[#allocation135_spill] sm:$0xff] %v6620_v2  ;;  %10916 = vst [vmem:[#allocation136_spill] sm:$0xff] %v6622_v17  ;;  %1938 = vperm.xlu1 %5451, %v5040_v18   ;;  %1933 = vperm.xlu0 %5450, %v5039_v1   ;;  %v5045_v17 = vld [vmem:[%s10776_s0 + $0x21] sm:$0xff]  ;;  %v5044_v18 = vld [vmem:[%s10776_s0 + $0x19] sm:$0xff] }
 0x1fd   :  { %v6630_v34 = vpop.permute.xlu1 %1430  ;;  %v6632_v49 = vpop.permute.xlu0 %1425 }
 0x1fe   :  { %10917 = vst [vmem:[#allocation137_spill] sm:$0xff] %v6630_v34  ;;  %10918 = vst [vmem:[#allocation138_spill] sm:$0xff] %v6632_v49  ;;  %1948 = vperm.xlu1 %5451, %v5042_v50   ;;  %1943 = vperm.xlu0 %5450, %v5041_v33   ;;  %v5047_v49 = vld [vmem:[%s10776_s0 + $0x39] sm:$0xff]  ;;  %v5046_v50 = vld [vmem:[%s10776_s0 + $0x31] sm:$0xff] }
 0x201   :  { %v6640_v1 = vpop.permute.xlu1 %1638  ;;  %v6642_v2 = vpop.permute.xlu0 %1633 }
 0x202   :  { %10919 = vst [vmem:[#allocation139_spill] sm:$0xff] %v6640_v1  ;;  %10920 = vst [vmem:[#allocation140_spill] sm:$0xff] %v6642_v2  ;;  %2155 = vperm.xlu1 %5451, %v5045_v17   ;;  %2150 = vperm.xlu0 %5450, %v5044_v18   ;;  %v5049_v2 = vld [vmem:[%s10776_s0 + $0x51] sm:$0xff]  ;;  %v5048_v17 = vld [vmem:[%s10776_s0 + $0x49] sm:$0xff] }
 0x205   :  { %v6650_v33 = vpop.permute.xlu1 %1648  ;;  %v6652_v34 = vpop.permute.xlu0 %1643 }
 0x206   :  { %10921 = vst [vmem:[#allocation141_spill] sm:$0xff] %v6650_v33  ;;  %10922 = vst [vmem:[#allocation142_spill] sm:$0xff] %v6652_v34  ;;  %2165 = vperm.xlu1 %5451, %v5047_v49   ;;  %2160 = vperm.xlu0 %5450, %v5046_v50   ;;  %v5051_v34 = vld [vmem:[%s10776_s0 + $0x69] sm:$0xff]  ;;  %v5050_v49 = vld [vmem:[%s10776_s0 + $0x61] sm:$0xff] }
 0x209   :  { %v6660_v18 = vpop.permute.xlu1 %1658  ;;  %v6662_v1 = vpop.permute.xlu0 %1653 }
 0x20a   :  { %10923 = vst [vmem:[#allocation143_spill] sm:$0xff] %v6660_v18  ;;  %10924 = vst [vmem:[#allocation144_spill] sm:$0xff] %v6662_v1  ;;  %2175 = vperm.xlu1 %5451, %v5049_v2   ;;  %2170 = vperm.xlu0 %5450, %v5048_v17   ;;  %v5053_v1 = vld [vmem:[%s10776_s0 + $0x81] sm:$0xff]  ;;  %v5052_v2 = vld [vmem:[%s10776_s0 + $0x79] sm:$0xff] }
 0x20d   :  { %v6670_v50 = vpop.permute.xlu1 %1668  ;;  %v6672_v33 = vpop.permute.xlu0 %1663 }
 0x20e   :  { %10925 = vst [vmem:[#allocation145_spill] sm:$0xff] %v6670_v50  ;;  %10926 = vst [vmem:[#allocation146_spill] sm:$0xff] %v6672_v33  ;;  %2185 = vperm.xlu1 %5451, %v5051_v34   ;;  %2180 = vperm.xlu0 %5450, %v5050_v49   ;;  %v5055_v33 = vld [vmem:[%s10776_s0 + $0x99] sm:$0xff]  ;;  %v5054_v34 = vld [vmem:[%s10776_s0 + $0x91] sm:$0xff] }
 0x211   :  { %v6680_v17 = vpop.permute.xlu1 %1678  ;;  %v6682_v18 = vpop.permute.xlu0 %1673 }
 0x212   :  { %10927 = vst [vmem:[#allocation147_spill] sm:$0xff] %v6680_v17  ;;  %10928 = vst [vmem:[#allocation148_spill] sm:$0xff] %v6682_v18  ;;  %2195 = vperm.xlu1 %5451, %v5053_v1   ;;  %2190 = vperm.xlu0 %5450, %v5052_v2   ;;  %v5057_v18 = vld [vmem:[%s10776_s0 + $0xb1] sm:$0xff]  ;;  %v5056_v1 = vld [vmem:[%s10776_s0 + $0xa9] sm:$0xff] }
 0x215   :  { %v6690_v49 = vpop.permute.xlu1 %1688  ;;  %v6692_v50 = vpop.permute.xlu0 %1683 }
 0x216   :  { %10929 = vst [vmem:[#allocation149_spill] sm:$0xff] %v6690_v49  ;;  %10930 = vst [vmem:[#allocation150_spill] sm:$0xff] %v6692_v50  ;;  %2205 = vperm.xlu1 %5451, %v5055_v33   ;;  %2200 = vperm.xlu0 %5450, %v5054_v34   ;;  %v5059_v50 = vld [vmem:[%s10776_s0 + $0xc9] sm:$0xff]  ;;  %v5058_v33 = vld [vmem:[%s10776_s0 + $0xc1] sm:$0xff] }
 0x219   :  { %v6700_v2 = vpop.permute.xlu1 %1698  ;;  %v6702_v17 = vpop.permute.xlu0 %1693 }
 0x21a   :  { %10931 = vst [vmem:[#allocation151_spill] sm:$0xff] %v6700_v2  ;;  %10932 = vst [vmem:[#allocation152_spill] sm:$0xff] %v6702_v17  ;;  %2215 = vperm.xlu1 %5451, %v5057_v18   ;;  %2210 = vperm.xlu0 %5450, %v5056_v1   ;;  %v5061_v17 = vld [vmem:[%s10776_s0 + $0xe1] sm:$0xff]  ;;  %v5060_v18 = vld [vmem:[%s10776_s0 + $0xd9] sm:$0xff] }
 0x21d   :  { %v6710_v34 = vpop.permute.xlu1 %1708  ;;  %v6712_v49 = vpop.permute.xlu0 %1703 }
 0x21e   :  { %10933 = vst [vmem:[#allocation153_spill] sm:$0xff] %v6710_v34  ;;  %10934 = vst [vmem:[#allocation154_spill] sm:$0xff] %v6712_v49  ;;  %2225 = vperm.xlu1 %5451, %v5059_v50   ;;  %2220 = vperm.xlu0 %5450, %v5058_v33   ;;  %v5063_v49 = vld [vmem:[%s10776_s0 + $0xf9] sm:$0xff]  ;;  %v5062_v50 = vld [vmem:[%s10776_s0 + $0xf1] sm:$0xff] }
 0x221   :  { %v6720_v1 = vpop.permute.xlu1 %1718  ;;  %v6722_v2 = vpop.permute.xlu0 %1713 }
 0x222   :  { %10935 = vst [vmem:[#allocation155_spill] sm:$0xff] %v6720_v1  ;;  %10936 = vst [vmem:[#allocation156_spill] sm:$0xff] %v6722_v2  ;;  %2235 = vperm.xlu1 %5451, %v5061_v17   ;;  %2230 = vperm.xlu0 %5450, %v5060_v18   ;;  %v5065_v2 = vld [vmem:[%s10776_s0 + $0x111] sm:$0xff]  ;;  %v5064_v17 = vld [vmem:[%s10776_s0 + $0x109] sm:$0xff] }
 0x225   :  { %v6730_v33 = vpop.permute.xlu1 %1728  ;;  %v6732_v34 = vpop.permute.xlu0 %1723 }
 0x226   :  { %10937 = vst [vmem:[#allocation157_spill] sm:$0xff] %v6730_v33  ;;  %10938 = vst [vmem:[#allocation158_spill] sm:$0xff] %v6732_v34  ;;  %2245 = vperm.xlu1 %5451, %v5063_v49   ;;  %2240 = vperm.xlu0 %5450, %v5062_v50   ;;  %v5067_v34 = vld [vmem:[%s10776_s0 + $0x129] sm:$0xff]  ;;  %v5066_v49 = vld [vmem:[%s10776_s0 + $0x121] sm:$0xff] }
 0x229   :  { %v6740_v18 = vpop.permute.xlu1 %1738  ;;  %v6742_v1 = vpop.permute.xlu0 %1733 }
 0x22a   :  { %10939 = vst [vmem:[#allocation159_spill] sm:$0xff] %v6740_v18  ;;  %10940 = vst [vmem:[#allocation160_spill] sm:$0xff] %v6742_v1  ;;  %2255 = vperm.xlu1 %5451, %v5065_v2   ;;  %2250 = vperm.xlu0 %5450, %v5064_v17   ;;  %v5069_v1 = vld [vmem:[%s10776_s0 + $0x141] sm:$0xff]  ;;  %v5068_v2 = vld [vmem:[%s10776_s0 + $0x139] sm:$0xff] }
 0x22d   :  { %v6750_v50 = vpop.permute.xlu1 %1748  ;;  %v6752_v33 = vpop.permute.xlu0 %1743 }
 0x22e   :  { %10941 = vst [vmem:[#allocation161_spill] sm:$0xff] %v6750_v50  ;;  %10942 = vst [vmem:[#allocation162_spill] sm:$0xff] %v6752_v33  ;;  %2265 = vperm.xlu1 %5451, %v5067_v34   ;;  %2260 = vperm.xlu0 %5450, %v5066_v49   ;;  %v5071_v33 = vld [vmem:[%s10776_s0 + $0x159] sm:$0xff]  ;;  %v5070_v34 = vld [vmem:[%s10776_s0 + $0x151] sm:$0xff] }
 0x231   :  { %v6760_v17 = vpop.permute.xlu1 %1758  ;;  %v6762_v18 = vpop.permute.xlu0 %1753 }
 0x232   :  { %10943 = vst [vmem:[#allocation163_spill] sm:$0xff] %v6760_v17  ;;  %10944 = vst [vmem:[#allocation164_spill] sm:$0xff] %v6762_v18  ;;  %2275 = vperm.xlu1 %5451, %v5069_v1   ;;  %2270 = vperm.xlu0 %5450, %v5068_v2   ;;  %v5073_v18 = vld [vmem:[%s10776_s0 + $0x171] sm:$0xff]  ;;  %v5072_v1 = vld [vmem:[%s10776_s0 + $0x169] sm:$0xff] }
 0x235   :  { %v6770_v49 = vpop.permute.xlu1 %1768  ;;  %v6772_v50 = vpop.permute.xlu0 %1763 }
 0x236   :  { %10945 = vst [vmem:[#allocation165_spill] sm:$0xff] %v6770_v49  ;;  %10946 = vst [vmem:[#allocation166_spill] sm:$0xff] %v6772_v50  ;;  %2285 = vperm.xlu1 %5451, %v5071_v33   ;;  %2280 = vperm.xlu0 %5450, %v5070_v34   ;;  %v5075_v50 = vld [vmem:[%s10776_s0 + $0x189] sm:$0xff]  ;;  %v5074_v33 = vld [vmem:[%s10776_s0 + $0x181] sm:$0xff] }
 0x239   :  { %v6780_v2 = vpop.permute.xlu1 %1778  ;;  %v6782_v17 = vpop.permute.xlu0 %1773 }
 0x23a   :  { %10947 = vst [vmem:[#allocation167_spill] sm:$0xff] %v6780_v2  ;;  %10948 = vst [vmem:[#allocation168_spill] sm:$0xff] %v6782_v17  ;;  %2295 = vperm.xlu1 %5451, %v5073_v18   ;;  %2290 = vperm.xlu0 %5450, %v5072_v1   ;;  %v5077_v17 = vld [vmem:[%s10776_s0 + $0x1d1] sm:$0xff]  ;;  %v5076_v18 = vld [vmem:[%s10776_s0 + $0x1c9] sm:$0xff] }
 0x23d   :  { %v6790_v34 = vpop.permute.xlu1 %1788  ;;  %v6792_v49 = vpop.permute.xlu0 %1783 }
 0x23e   :  { %10949 = vst [vmem:[#allocation169_spill] sm:$0xff] %v6790_v34  ;;  %10950 = vst [vmem:[#allocation170_spill] sm:$0xff] %v6792_v49  ;;  %2305 = vperm.xlu1 %5451, %v5075_v50   ;;  %2300 = vperm.xlu0 %5450, %v5074_v33   ;;  %v5079_v49 = vld [vmem:[%s10776_s0 + $0x1e9] sm:$0xff]  ;;  %v5078_v50 = vld [vmem:[%s10776_s0 + $0x1e1] sm:$0xff] }
 0x241   :  { %v6800_v1 = vpop.permute.xlu1 %1798  ;;  %v6802_v2 = vpop.permute.xlu0 %1793 }
 0x242   :  { %10951 = vst [vmem:[#allocation171_spill] sm:$0xff] %v6800_v1  ;;  %10952 = vst [vmem:[#allocation172_spill] sm:$0xff] %v6802_v2  ;;  %2315 = vperm.xlu1 %5451, %v5077_v17   ;;  %2310 = vperm.xlu0 %5450, %v5076_v18   ;;  %v5081_v2 = vld [vmem:[%s10776_s0 + $0x201] sm:$0xff]  ;;  %v5080_v17 = vld [vmem:[%s10776_s0 + $0x1f9] sm:$0xff] }
 0x245   :  { %v6810_v33 = vpop.permute.xlu1 %1808  ;;  %v6812_v34 = vpop.permute.xlu0 %1803 }
 0x246   :  { %10953 = vst [vmem:[#allocation173_spill] sm:$0xff] %v6810_v33  ;;  %10954 = vst [vmem:[#allocation174_spill] sm:$0xff] %v6812_v34  ;;  %2325 = vperm.xlu1 %5451, %v5079_v49   ;;  %2320 = vperm.xlu0 %5450, %v5078_v50   ;;  %v5083_v34 = vld [vmem:[%s10776_s0 + $0x219] sm:$0xff]  ;;  %v5082_v49 = vld [vmem:[%s10776_s0 + $0x211] sm:$0xff] }
 0x249   :  { %v6820_v18 = vpop.permute.xlu1 %1818  ;;  %v6822_v1 = vpop.permute.xlu0 %1813 }
 0x24a   :  { %10955 = vst [vmem:[#allocation175_spill] sm:$0xff] %v6820_v18  ;;  %10956 = vst [vmem:[#allocation176_spill] sm:$0xff] %v6822_v1  ;;  %2335 = vperm.xlu1 %5451, %v5081_v2   ;;  %2330 = vperm.xlu0 %5450, %v5080_v17   ;;  %v5085_v1 = vld [vmem:[%s10776_s0 + $0x231] sm:$0xff]  ;;  %v5084_v2 = vld [vmem:[%s10776_s0 + $0x229] sm:$0xff] }
 0x24d   :  { %v6830_v50 = vpop.permute.xlu1 %1828  ;;  %v6832_v33 = vpop.permute.xlu0 %1823 }
 0x24e   :  { %10957 = vst [vmem:[#allocation177_spill] sm:$0xff] %v6830_v50  ;;  %10958 = vst [vmem:[#allocation178_spill] sm:$0xff] %v6832_v33  ;;  %2345 = vperm.xlu1 %5451, %v5083_v34   ;;  %2340 = vperm.xlu0 %5450, %v5082_v49   ;;  %v5087_v33 = vld [vmem:[%s10776_s0 + $0x249] sm:$0xff]  ;;  %v5086_v34 = vld [vmem:[%s10776_s0 + $0x241] sm:$0xff] }
 0x251   :  { %v6840_v17 = vpop.permute.xlu1 %1838  ;;  %v6842_v18 = vpop.permute.xlu0 %1833 }
 0x252   :  { %10959 = vst [vmem:[#allocation179_spill] sm:$0xff] %v6840_v17  ;;  %10960 = vst [vmem:[#allocation180_spill] sm:$0xff] %v6842_v18  ;;  %2355 = vperm.xlu1 %5451, %v5085_v1   ;;  %2350 = vperm.xlu0 %5450, %v5084_v2   ;;  %v5089_v18 = vld [vmem:[%s10776_s0 + $0x261] sm:$0xff]  ;;  %v5088_v1 = vld [vmem:[%s10776_s0 + $0x259] sm:$0xff] }
 0x255   :  { %v6850_v49 = vpop.permute.xlu1 %1848  ;;  %v6852_v50 = vpop.permute.xlu0 %1843 }
 0x256   :  { %10961 = vst [vmem:[#allocation181_spill] sm:$0xff] %v6850_v49  ;;  %10962 = vst [vmem:[#allocation182_spill] sm:$0xff] %v6852_v50  ;;  %2365 = vperm.xlu1 %5451, %v5087_v33   ;;  %2360 = vperm.xlu0 %5450, %v5086_v34   ;;  %v5091_v50 = vld [vmem:[%s10776_s0 + $0x279] sm:$0xff]  ;;  %v5090_v33 = vld [vmem:[%s10776_s0 + $0x271] sm:$0xff] }
 0x259   :  { %v6860_v2 = vpop.permute.xlu1 %1858  ;;  %v6862_v17 = vpop.permute.xlu0 %1853 }
 0x25a   :  { %10963 = vst [vmem:[#allocation183_spill] sm:$0xff] %v6860_v2  ;;  %10964 = vst [vmem:[#allocation184_spill] sm:$0xff] %v6862_v17  ;;  %2375 = vperm.xlu1 %5451, %v5089_v18   ;;  %2370 = vperm.xlu0 %5450, %v5088_v1   ;;  %v5093_v17 = vld [vmem:[%s10776_s0 + $0x291] sm:$0xff]  ;;  %v5092_v18 = vld [vmem:[%s10776_s0 + $0x289] sm:$0xff] }
 0x25d   :  { %v6870_v34 = vpop.permute.xlu1 %1868  ;;  %v6872_v49 = vpop.permute.xlu0 %1863 }
 0x25e   :  { %10965 = vst [vmem:[#allocation185_spill] sm:$0xff] %v6870_v34  ;;  %10966 = vst [vmem:[#allocation186_spill] sm:$0xff] %v6872_v49  ;;  %2385 = vperm.xlu1 %5451, %v5091_v50   ;;  %2380 = vperm.xlu0 %5450, %v5090_v33   ;;  %v5095_v49 = vld [vmem:[%s10776_s0 + $0x2a9] sm:$0xff]  ;;  %v5094_v50 = vld [vmem:[%s10776_s0 + $0x2a1] sm:$0xff] }
 0x261   :  { %v6880_v1 = vpop.permute.xlu1 %1878  ;;  %v6882_v2 = vpop.permute.xlu0 %1873 }
 0x262   :  { %10967 = vst [vmem:[#allocation187_spill] sm:$0xff] %v6880_v1  ;;  %10968 = vst [vmem:[#allocation188_spill] sm:$0xff] %v6882_v2  ;;  %2395 = vperm.xlu1 %5451, %v5093_v17   ;;  %2390 = vperm.xlu0 %5450, %v5092_v18   ;;  %v5097_v2 = vld [vmem:[%s10776_s0 + $0x2c1] sm:$0xff]  ;;  %v5096_v17 = vld [vmem:[%s10776_s0 + $0x2b9] sm:$0xff] }
 0x265   :  { %v6890_v33 = vpop.permute.xlu1 %1888  ;;  %v6892_v34 = vpop.permute.xlu0 %1883 }
 0x266   :  { %10969 = vst [vmem:[#allocation189_spill] sm:$0xff] %v6890_v33  ;;  %10970 = vst [vmem:[#allocation190_spill] sm:$0xff] %v6892_v34  ;;  %2405 = vperm.xlu1 %5451, %v5095_v49   ;;  %2400 = vperm.xlu0 %5450, %v5094_v50   ;;  %v5099_v34 = vld [vmem:[%s10776_s0 + $0x2d9] sm:$0xff]  ;;  %v5098_v49 = vld [vmem:[%s10776_s0 + $0x2d1] sm:$0xff] }
 0x269   :  { %v6900_v18 = vpop.permute.xlu1 %1898  ;;  %v6902_v1 = vpop.permute.xlu0 %1893 }
 0x26a   :  { %10971 = vst [vmem:[#allocation191_spill] sm:$0xff] %v6900_v18  ;;  %10972 = vst [vmem:[#allocation192_spill] sm:$0xff] %v6902_v1  ;;  %2415 = vperm.xlu1 %5451, %v5097_v2   ;;  %2410 = vperm.xlu0 %5450, %v5096_v17   ;;  %v5101_v1 = vld [vmem:[%s10776_s0 + $0x2f1] sm:$0xff]  ;;  %v5100_v2 = vld [vmem:[%s10776_s0 + $0x2e9] sm:$0xff] }
 0x26d   :  { %v6910_v50 = vpop.permute.xlu1 %1908  ;;  %v6912_v33 = vpop.permute.xlu0 %1903 }
 0x26e   :  { %10973 = vst [vmem:[#allocation193_spill] sm:$0xff] %v6910_v50  ;;  %10974 = vst [vmem:[#allocation194_spill] sm:$0xff] %v6912_v33  ;;  %2425 = vperm.xlu1 %5451, %v5099_v34   ;;  %2420 = vperm.xlu0 %5450, %v5098_v49   ;;  %v5103_v33 = vld [vmem:[%s10776_s0 + $0x309] sm:$0xff]  ;;  %v5102_v34 = vld [vmem:[%s10776_s0 + $0x301] sm:$0xff] }
 0x271   :  { %v6920_v17 = vpop.permute.xlu1 %1918  ;;  %v6922_v18 = vpop.permute.xlu0 %1913 }
 0x272   :  { %10975 = vst [vmem:[#allocation195_spill] sm:$0xff] %v6920_v17  ;;  %10976 = vst [vmem:[#allocation196_spill] sm:$0xff] %v6922_v18  ;;  %2435 = vperm.xlu1 %5451, %v5101_v1   ;;  %2430 = vperm.xlu0 %5450, %v5100_v2   ;;  %v5105_v18 = vld [vmem:[%s10776_s0 + $0x321] sm:$0xff]  ;;  %v5104_v1 = vld [vmem:[%s10776_s0 + $0x319] sm:$0xff] }
 0x275   :  { %v6930_v49 = vpop.permute.xlu1 %1928  ;;  %v6932_v50 = vpop.permute.xlu0 %1923 }
 0x276   :  { %10977 = vst [vmem:[#allocation197_spill] sm:$0xff] %v6930_v49  ;;  %10978 = vst [vmem:[#allocation198_spill] sm:$0xff] %v6932_v50  ;;  %2445 = vperm.xlu1 %5451, %v5103_v33   ;;  %2440 = vperm.xlu0 %5450, %v5102_v34   ;;  %v5107_v50 = vld [vmem:[%s10776_s0 + $0x339] sm:$0xff]  ;;  %v5106_v33 = vld [vmem:[%s10776_s0 + $0x331] sm:$0xff] }
 0x279   :  { %v6940_v2 = vpop.permute.xlu1 %1938  ;;  %v6942_v17 = vpop.permute.xlu0 %1933 }
 0x27a   :  { %10979 = vst [vmem:[#allocation199_spill] sm:$0xff] %v6940_v2  ;;  %10980 = vst [vmem:[#allocation200_spill] sm:$0xff] %v6942_v17  ;;  %2455 = vperm.xlu1 %5451, %v5105_v18   ;;  %2450 = vperm.xlu0 %5450, %v5104_v1   ;;  %v5110_v17 = vld [vmem:[%s10776_s0 + $0x22] sm:$0xff]  ;;  %v5109_v18 = vld [vmem:[%s10776_s0 + $0x1a] sm:$0xff] }
 0x27d   :  { %v6950_v34 = vpop.permute.xlu1 %1948  ;;  %v6952_v49 = vpop.permute.xlu0 %1943 }
 0x27e   :  { %10981 = vst [vmem:[#allocation201_spill] sm:$0xff] %v6950_v34  ;;  %10982 = vst [vmem:[#allocation202_spill] sm:$0xff] %v6952_v49  ;;  %2465 = vperm.xlu1 %5451, %v5107_v50   ;;  %2460 = vperm.xlu0 %5450, %v5106_v33   ;;  %v5112_v49 = vld [vmem:[%s10776_s0 + $0x3a] sm:$0xff]  ;;  %v5111_v50 = vld [vmem:[%s10776_s0 + $0x32] sm:$0xff] }
 0x281   :  { %v6960_v1 = vpop.permute.xlu1 %2155  ;;  %v6962_v2 = vpop.permute.xlu0 %2150 }
 0x282   :  { %10983 = vst [vmem:[#allocation203_spill] sm:$0xff] %v6960_v1  ;;  %10984 = vst [vmem:[#allocation204_spill] sm:$0xff] %v6962_v2  ;;  %2672 = vperm.xlu1 %5451, %v5110_v17   ;;  %2667 = vperm.xlu0 %5450, %v5109_v18   ;;  %v5114_v2 = vld [vmem:[%s10776_s0 + $0x52] sm:$0xff]  ;;  %v5113_v17 = vld [vmem:[%s10776_s0 + $0x4a] sm:$0xff] }
 0x285   :  { %v6970_v33 = vpop.permute.xlu1 %2165  ;;  %v6972_v34 = vpop.permute.xlu0 %2160 }
 0x286   :  { %10985 = vst [vmem:[#allocation205_spill] sm:$0xff] %v6970_v33  ;;  %10986 = vst [vmem:[#allocation206_spill] sm:$0xff] %v6972_v34  ;;  %2682 = vperm.xlu1 %5451, %v5112_v49   ;;  %2677 = vperm.xlu0 %5450, %v5111_v50   ;;  %v5116_v34 = vld [vmem:[%s10776_s0 + $0x6a] sm:$0xff]  ;;  %v5115_v49 = vld [vmem:[%s10776_s0 + $0x62] sm:$0xff] }
 0x289   :  { %v6980_v18 = vpop.permute.xlu1 %2175  ;;  %v6982_v1 = vpop.permute.xlu0 %2170 }
 0x28a   :  { %10987 = vst [vmem:[#allocation207_spill] sm:$0xff] %v6980_v18  ;;  %10988 = vst [vmem:[#allocation208_spill] sm:$0xff] %v6982_v1  ;;  %2692 = vperm.xlu1 %5451, %v5114_v2   ;;  %2687 = vperm.xlu0 %5450, %v5113_v17   ;;  %v5118_v1 = vld [vmem:[%s10776_s0 + $0x82] sm:$0xff]  ;;  %v5117_v2 = vld [vmem:[%s10776_s0 + $0x7a] sm:$0xff] }
 0x28d   :  { %v6990_v50 = vpop.permute.xlu1 %2185  ;;  %v6992_v33 = vpop.permute.xlu0 %2180 }
 0x28e   :  { %10989 = vst [vmem:[#allocation209_spill] sm:$0xff] %v6990_v50  ;;  %10990 = vst [vmem:[#allocation210_spill] sm:$0xff] %v6992_v33  ;;  %2702 = vperm.xlu1 %5451, %v5116_v34   ;;  %2697 = vperm.xlu0 %5450, %v5115_v49   ;;  %v5120_v33 = vld [vmem:[%s10776_s0 + $0x9a] sm:$0xff]  ;;  %v5119_v34 = vld [vmem:[%s10776_s0 + $0x92] sm:$0xff] }
 0x291   :  { %v7000_v17 = vpop.permute.xlu1 %2195  ;;  %v7002_v18 = vpop.permute.xlu0 %2190 }
 0x292   :  { %10991 = vst [vmem:[#allocation211_spill] sm:$0xff] %v7000_v17  ;;  %10992 = vst [vmem:[#allocation212_spill] sm:$0xff] %v7002_v18  ;;  %2712 = vperm.xlu1 %5451, %v5118_v1   ;;  %2707 = vperm.xlu0 %5450, %v5117_v2   ;;  %v5122_v18 = vld [vmem:[%s10776_s0 + $0xb2] sm:$0xff]  ;;  %v5121_v1 = vld [vmem:[%s10776_s0 + $0xaa] sm:$0xff] }
 0x295   :  { %v7010_v49 = vpop.permute.xlu1 %2205  ;;  %v7012_v50 = vpop.permute.xlu0 %2200 }
 0x296   :  { %10993 = vst [vmem:[#allocation213_spill] sm:$0xff] %v7010_v49  ;;  %10994 = vst [vmem:[#allocation214_spill] sm:$0xff] %v7012_v50  ;;  %2722 = vperm.xlu1 %5451, %v5120_v33   ;;  %2717 = vperm.xlu0 %5450, %v5119_v34   ;;  %v5124_v50 = vld [vmem:[%s10776_s0 + $0xca] sm:$0xff]  ;;  %v5123_v33 = vld [vmem:[%s10776_s0 + $0xc2] sm:$0xff] }
 0x299   :  { %v7020_v2 = vpop.permute.xlu1 %2215  ;;  %v7022_v17 = vpop.permute.xlu0 %2210 }
 0x29a   :  { %10995 = vst [vmem:[#allocation215_spill] sm:$0xff] %v7020_v2  ;;  %10996 = vst [vmem:[#allocation216_spill] sm:$0xff] %v7022_v17  ;;  %2732 = vperm.xlu1 %5451, %v5122_v18   ;;  %2727 = vperm.xlu0 %5450, %v5121_v1   ;;  %v5126_v17 = vld [vmem:[%s10776_s0 + $0xe2] sm:$0xff]  ;;  %v5125_v18 = vld [vmem:[%s10776_s0 + $0xda] sm:$0xff] }
 0x29d   :  { %v7030_v34 = vpop.permute.xlu1 %2225  ;;  %v7032_v49 = vpop.permute.xlu0 %2220 }
 0x29e   :  { %10997 = vst [vmem:[#allocation217_spill] sm:$0xff] %v7030_v34  ;;  %10998 = vst [vmem:[#allocation218_spill] sm:$0xff] %v7032_v49  ;;  %2742 = vperm.xlu1 %5451, %v5124_v50   ;;  %2737 = vperm.xlu0 %5450, %v5123_v33   ;;  %v5128_v49 = vld [vmem:[%s10776_s0 + $0xfa] sm:$0xff]  ;;  %v5127_v50 = vld [vmem:[%s10776_s0 + $0xf2] sm:$0xff] }
 0x2a1   :  { %v7040_v1 = vpop.permute.xlu1 %2235  ;;  %v7042_v2 = vpop.permute.xlu0 %2230 }
 0x2a2   :  { %10999 = vst [vmem:[#allocation219_spill] sm:$0xff] %v7040_v1  ;;  %11000 = vst [vmem:[#allocation220_spill] sm:$0xff] %v7042_v2  ;;  %2752 = vperm.xlu1 %5451, %v5126_v17   ;;  %2747 = vperm.xlu0 %5450, %v5125_v18   ;;  %v5130_v2 = vld [vmem:[%s10776_s0 + $0x112] sm:$0xff]  ;;  %v5129_v17 = vld [vmem:[%s10776_s0 + $0x10a] sm:$0xff] }
 0x2a5   :  { %v7050_v33 = vpop.permute.xlu1 %2245  ;;  %v7052_v34 = vpop.permute.xlu0 %2240 }
 0x2a6   :  { %11001 = vst [vmem:[#allocation221_spill] sm:$0xff] %v7050_v33  ;;  %11002 = vst [vmem:[#allocation222_spill] sm:$0xff] %v7052_v34  ;;  %2762 = vperm.xlu1 %5451, %v5128_v49   ;;  %2757 = vperm.xlu0 %5450, %v5127_v50   ;;  %v5132_v34 = vld [vmem:[%s10776_s0 + $0x12a] sm:$0xff]  ;;  %v5131_v49 = vld [vmem:[%s10776_s0 + $0x122] sm:$0xff] }
 0x2a9   :  { %v7060_v18 = vpop.permute.xlu1 %2255  ;;  %v7062_v1 = vpop.permute.xlu0 %2250 }
 0x2aa   :  { %11003 = vst [vmem:[#allocation223_spill] sm:$0xff] %v7060_v18  ;;  %11004 = vst [vmem:[#allocation224_spill] sm:$0xff] %v7062_v1  ;;  %2772 = vperm.xlu1 %5451, %v5130_v2   ;;  %2767 = vperm.xlu0 %5450, %v5129_v17   ;;  %v5134_v1 = vld [vmem:[%s10776_s0 + $0x142] sm:$0xff]  ;;  %v5133_v2 = vld [vmem:[%s10776_s0 + $0x13a] sm:$0xff] }
 0x2ad   :  { %v7070_v50 = vpop.permute.xlu1 %2265  ;;  %v7072_v33 = vpop.permute.xlu0 %2260 }
 0x2ae   :  { %11005 = vst [vmem:[#allocation225_spill] sm:$0xff] %v7070_v50  ;;  %11006 = vst [vmem:[#allocation226_spill] sm:$0xff] %v7072_v33  ;;  %2782 = vperm.xlu1 %5451, %v5132_v34   ;;  %2777 = vperm.xlu0 %5450, %v5131_v49   ;;  %v5136_v33 = vld [vmem:[%s10776_s0 + $0x15a] sm:$0xff]  ;;  %v5135_v34 = vld [vmem:[%s10776_s0 + $0x152] sm:$0xff] }
 0x2b1   :  { %v7080_v17 = vpop.permute.xlu1 %2275  ;;  %v7082_v18 = vpop.permute.xlu0 %2270 }
 0x2b2   :  { %11007 = vst [vmem:[#allocation227_spill] sm:$0xff] %v7080_v17  ;;  %11008 = vst [vmem:[#allocation228_spill] sm:$0xff] %v7082_v18  ;;  %2792 = vperm.xlu1 %5451, %v5134_v1   ;;  %2787 = vperm.xlu0 %5450, %v5133_v2   ;;  %v5138_v18 = vld [vmem:[%s10776_s0 + $0x172] sm:$0xff]  ;;  %v5137_v1 = vld [vmem:[%s10776_s0 + $0x16a] sm:$0xff] }
 0x2b5   :  { %v7090_v49 = vpop.permute.xlu1 %2285  ;;  %v7092_v50 = vpop.permute.xlu0 %2280 }
 0x2b6   :  { %11009 = vst [vmem:[#allocation229_spill] sm:$0xff] %v7090_v49  ;;  %11010 = vst [vmem:[#allocation230_spill] sm:$0xff] %v7092_v50  ;;  %2802 = vperm.xlu1 %5451, %v5136_v33   ;;  %2797 = vperm.xlu0 %5450, %v5135_v34   ;;  %v5140_v50 = vld [vmem:[%s10776_s0 + $0x18a] sm:$0xff]  ;;  %v5139_v33 = vld [vmem:[%s10776_s0 + $0x182] sm:$0xff] }
 0x2b9   :  { %v7100_v2 = vpop.permute.xlu1 %2295  ;;  %v7102_v17 = vpop.permute.xlu0 %2290 }
 0x2ba   :  { %11011 = vst [vmem:[#allocation231_spill] sm:$0xff] %v7100_v2  ;;  %11012 = vst [vmem:[#allocation232_spill] sm:$0xff] %v7102_v17  ;;  %2812 = vperm.xlu1 %5451, %v5138_v18   ;;  %2807 = vperm.xlu0 %5450, %v5137_v1   ;;  %v5142_v17 = vld [vmem:[%s10776_s0 + $0x1d2] sm:$0xff]  ;;  %v5141_v18 = vld [vmem:[%s10776_s0 + $0x1ca] sm:$0xff] }
 0x2bd   :  { %v7110_v34 = vpop.permute.xlu1 %2305  ;;  %v7112_v49 = vpop.permute.xlu0 %2300 }
 0x2be   :  { %11013 = vst [vmem:[#allocation233_spill] sm:$0xff] %v7110_v34  ;;  %11014 = vst [vmem:[#allocation234_spill] sm:$0xff] %v7112_v49  ;;  %2822 = vperm.xlu1 %5451, %v5140_v50   ;;  %2817 = vperm.xlu0 %5450, %v5139_v33   ;;  %v5144_v49 = vld [vmem:[%s10776_s0 + $0x1ea] sm:$0xff]  ;;  %v5143_v50 = vld [vmem:[%s10776_s0 + $0x1e2] sm:$0xff] }
 0x2c1   :  { %v7120_v1 = vpop.permute.xlu1 %2315  ;;  %v7122_v2 = vpop.permute.xlu0 %2310 }
 0x2c2   :  { %11015 = vst [vmem:[#allocation235_spill] sm:$0xff] %v7120_v1  ;;  %11016 = vst [vmem:[#allocation236_spill] sm:$0xff] %v7122_v2  ;;  %2832 = vperm.xlu1 %5451, %v5142_v17   ;;  %2827 = vperm.xlu0 %5450, %v5141_v18   ;;  %v5146_v2 = vld [vmem:[%s10776_s0 + $0x202] sm:$0xff]  ;;  %v5145_v17 = vld [vmem:[%s10776_s0 + $0x1fa] sm:$0xff] }
 0x2c5   :  { %v7130_v33 = vpop.permute.xlu1 %2325  ;;  %v7132_v34 = vpop.permute.xlu0 %2320 }
 0x2c6   :  { %11017 = vst [vmem:[#allocation237_spill] sm:$0xff] %v7130_v33  ;;  %11018 = vst [vmem:[#allocation238_spill] sm:$0xff] %v7132_v34  ;;  %2842 = vperm.xlu1 %5451, %v5144_v49   ;;  %2837 = vperm.xlu0 %5450, %v5143_v50   ;;  %v5148_v34 = vld [vmem:[%s10776_s0 + $0x21a] sm:$0xff]  ;;  %v5147_v49 = vld [vmem:[%s10776_s0 + $0x212] sm:$0xff] }
 0x2c9   :  { %v7140_v18 = vpop.permute.xlu1 %2335  ;;  %v7142_v1 = vpop.permute.xlu0 %2330 }
 0x2ca   :  { %11019 = vst [vmem:[#allocation239_spill] sm:$0xff] %v7140_v18  ;;  %11020 = vst [vmem:[#allocation240_spill] sm:$0xff] %v7142_v1  ;;  %2852 = vperm.xlu1 %5451, %v5146_v2   ;;  %2847 = vperm.xlu0 %5450, %v5145_v17   ;;  %v5150_v1 = vld [vmem:[%s10776_s0 + $0x232] sm:$0xff]  ;;  %v5149_v2 = vld [vmem:[%s10776_s0 + $0x22a] sm:$0xff] }
 0x2cd   :  { %v7150_v50 = vpop.permute.xlu1 %2345  ;;  %v7152_v33 = vpop.permute.xlu0 %2340 }
 0x2ce   :  { %11021 = vst [vmem:[#allocation241_spill] sm:$0xff] %v7150_v50  ;;  %11022 = vst [vmem:[#allocation242_spill] sm:$0xff] %v7152_v33  ;;  %2862 = vperm.xlu1 %5451, %v5148_v34   ;;  %2857 = vperm.xlu0 %5450, %v5147_v49   ;;  %v5152_v33 = vld [vmem:[%s10776_s0 + $0x24a] sm:$0xff]  ;;  %v5151_v34 = vld [vmem:[%s10776_s0 + $0x242] sm:$0xff] }
 0x2d1   :  { %v7160_v17 = vpop.permute.xlu1 %2355  ;;  %v7162_v18 = vpop.permute.xlu0 %2350 }
 0x2d2   :  { %11023 = vst [vmem:[#allocation243_spill] sm:$0xff] %v7160_v17  ;;  %11024 = vst [vmem:[#allocation244_spill] sm:$0xff] %v7162_v18  ;;  %2872 = vperm.xlu1 %5451, %v5150_v1   ;;  %2867 = vperm.xlu0 %5450, %v5149_v2   ;;  %v5154_v18 = vld [vmem:[%s10776_s0 + $0x262] sm:$0xff]  ;;  %v5153_v1 = vld [vmem:[%s10776_s0 + $0x25a] sm:$0xff] }
 0x2d5   :  { %v7170_v49 = vpop.permute.xlu1 %2365  ;;  %v7172_v50 = vpop.permute.xlu0 %2360 }
 0x2d6   :  { %11025 = vst [vmem:[#allocation245_spill] sm:$0xff] %v7170_v49  ;;  %11026 = vst [vmem:[#allocation246_spill] sm:$0xff] %v7172_v50  ;;  %2882 = vperm.xlu1 %5451, %v5152_v33   ;;  %2877 = vperm.xlu0 %5450, %v5151_v34   ;;  %v5156_v50 = vld [vmem:[%s10776_s0 + $0x27a] sm:$0xff]  ;;  %v5155_v33 = vld [vmem:[%s10776_s0 + $0x272] sm:$0xff] }
 0x2d9   :  { %v7180_v2 = vpop.permute.xlu1 %2375  ;;  %v7182_v17 = vpop.permute.xlu0 %2370 }
 0x2da   :  { %11027 = vst [vmem:[#allocation247_spill] sm:$0xff] %v7180_v2  ;;  %11028 = vst [vmem:[#allocation248_spill] sm:$0xff] %v7182_v17  ;;  %2892 = vperm.xlu1 %5451, %v5154_v18   ;;  %2887 = vperm.xlu0 %5450, %v5153_v1   ;;  %v5158_v17 = vld [vmem:[%s10776_s0 + $0x292] sm:$0xff]  ;;  %v5157_v18 = vld [vmem:[%s10776_s0 + $0x28a] sm:$0xff] }
 0x2dd   :  { %v7190_v34 = vpop.permute.xlu1 %2385  ;;  %v7192_v49 = vpop.permute.xlu0 %2380 }
 0x2de   :  { %11029 = vst [vmem:[#allocation249_spill] sm:$0xff] %v7190_v34  ;;  %11030 = vst [vmem:[#allocation250_spill] sm:$0xff] %v7192_v49  ;;  %2902 = vperm.xlu1 %5451, %v5156_v50   ;;  %2897 = vperm.xlu0 %5450, %v5155_v33   ;;  %v5160_v49 = vld [vmem:[%s10776_s0 + $0x2aa] sm:$0xff]  ;;  %v5159_v50 = vld [vmem:[%s10776_s0 + $0x2a2] sm:$0xff] }
 0x2e1   :  { %v7200_v1 = vpop.permute.xlu1 %2395  ;;  %v7202_v2 = vpop.permute.xlu0 %2390 }
 0x2e2   :  { %11031 = vst [vmem:[#allocation251_spill] sm:$0xff] %v7200_v1  ;;  %11032 = vst [vmem:[#allocation252_spill] sm:$0xff] %v7202_v2  ;;  %2912 = vperm.xlu1 %5451, %v5158_v17   ;;  %2907 = vperm.xlu0 %5450, %v5157_v18   ;;  %v5162_v2 = vld [vmem:[%s10776_s0 + $0x2c2] sm:$0xff]  ;;  %v5161_v17 = vld [vmem:[%s10776_s0 + $0x2ba] sm:$0xff] }
 0x2e5   :  { %v7210_v33 = vpop.permute.xlu1 %2405  ;;  %v7212_v34 = vpop.permute.xlu0 %2400 }
 0x2e6   :  { %11033 = vst [vmem:[#allocation253_spill] sm:$0xff] %v7210_v33  ;;  %11034 = vst [vmem:[#allocation254_spill] sm:$0xff] %v7212_v34  ;;  %2922 = vperm.xlu1 %5451, %v5160_v49   ;;  %2917 = vperm.xlu0 %5450, %v5159_v50   ;;  %v5164_v34 = vld [vmem:[%s10776_s0 + $0x2da] sm:$0xff]  ;;  %v5163_v49 = vld [vmem:[%s10776_s0 + $0x2d2] sm:$0xff] }
 0x2e9   :  { %v7220_v18 = vpop.permute.xlu1 %2415  ;;  %v7222_v1 = vpop.permute.xlu0 %2410 }
 0x2ea   :  { %11035 = vst [vmem:[#allocation255_spill] sm:$0xff] %v7220_v18  ;;  %11036 = vst [vmem:[#allocation256_spill] sm:$0xff] %v7222_v1  ;;  %2932 = vperm.xlu1 %5451, %v5162_v2   ;;  %2927 = vperm.xlu0 %5450, %v5161_v17   ;;  %v5166_v1 = vld [vmem:[%s10776_s0 + $0x2f2] sm:$0xff]  ;;  %v5165_v2 = vld [vmem:[%s10776_s0 + $0x2ea] sm:$0xff] }
 0x2ed   :  { %v7230_v50 = vpop.permute.xlu1 %2425  ;;  %v7232_v33 = vpop.permute.xlu0 %2420 }
 0x2ee   :  { %11037 = vst [vmem:[#allocation257_spill] sm:$0xff] %v7230_v50  ;;  %11038 = vst [vmem:[#allocation258_spill] sm:$0xff] %v7232_v33  ;;  %2942 = vperm.xlu1 %5451, %v5164_v34   ;;  %2937 = vperm.xlu0 %5450, %v5163_v49   ;;  %v5168_v33 = vld [vmem:[%s10776_s0 + $0x30a] sm:$0xff]  ;;  %v5167_v34 = vld [vmem:[%s10776_s0 + $0x302] sm:$0xff] }
 0x2f1   :  { %v7240_v17 = vpop.permute.xlu1 %2435  ;;  %v7242_v18 = vpop.permute.xlu0 %2430 }
 0x2f2   :  { %11039 = vst [vmem:[#allocation259_spill] sm:$0xff] %v7240_v17  ;;  %11040 = vst [vmem:[#allocation260_spill] sm:$0xff] %v7242_v18  ;;  %2952 = vperm.xlu1 %5451, %v5166_v1   ;;  %2947 = vperm.xlu0 %5450, %v5165_v2   ;;  %v5170_v18 = vld [vmem:[%s10776_s0 + $0x322] sm:$0xff]  ;;  %v5169_v1 = vld [vmem:[%s10776_s0 + $0x31a] sm:$0xff] }
 0x2f5   :  { %v7250_v49 = vpop.permute.xlu1 %2445  ;;  %v7252_v50 = vpop.permute.xlu0 %2440 }
 0x2f6   :  { %11041 = vst [vmem:[#allocation261_spill] sm:$0xff] %v7250_v49  ;;  %11042 = vst [vmem:[#allocation262_spill] sm:$0xff] %v7252_v50  ;;  %2962 = vperm.xlu1 %5451, %v5168_v33   ;;  %2957 = vperm.xlu0 %5450, %v5167_v34   ;;  %v5172_v50 = vld [vmem:[%s10776_s0 + $0x33a] sm:$0xff]  ;;  %v5171_v33 = vld [vmem:[%s10776_s0 + $0x332] sm:$0xff] }
 0x2f9   :  { %v7260_v2 = vpop.permute.xlu1 %2455  ;;  %v7262_v17 = vpop.permute.xlu0 %2450 }
 0x2fa   :  { %11043 = vst [vmem:[#allocation263_spill] sm:$0xff] %v7260_v2  ;;  %11044 = vst [vmem:[#allocation264_spill] sm:$0xff] %v7262_v17  ;;  %2972 = vperm.xlu1 %5451, %v5170_v18   ;;  %2967 = vperm.xlu0 %5450, %v5169_v1   ;;  %v5175_v17 = vld [vmem:[%s10776_s0 + $0x38] sm:$0xff]  ;;  %v5174_v18 = vld [vmem:[%s10776_s0 + $0x30] sm:$0xff] }
 0x2fd   :  { %v7270_v34 = vpop.permute.xlu1 %2465  ;;  %v7272_v49 = vpop.permute.xlu0 %2460 }
 0x2fe   :  { %11045 = vst [vmem:[#allocation265_spill] sm:$0xff] %v7270_v34  ;;  %11046 = vst [vmem:[#allocation266_spill] sm:$0xff] %v7272_v49  ;;  %2982 = vperm.xlu1 %5451, %v5172_v50   ;;  %2977 = vperm.xlu0 %5450, %v5171_v33   ;;  %v5177_v49 = vld [vmem:[%s10776_s0 + $0x50] sm:$0xff]  ;;  %v5176_v50 = vld [vmem:[%s10776_s0 + $0x48] sm:$0xff] }
 0x301   :  { %v7280_v1 = vpop.permute.xlu1 %2672  ;;  %v7282_v2 = vpop.permute.xlu0 %2667 }
 0x302   :  { %11047 = vst [vmem:[#allocation267_spill] sm:$0xff] %v7280_v1  ;;  %11048 = vst [vmem:[#allocation268_spill] sm:$0xff] %v7282_v2  ;;  %3190 = vperm.xlu1 %5451, %v5175_v17   ;;  %3185 = vperm.xlu0 %5450, %v5174_v18   ;;  %v5179_v2 = vld [vmem:[%s10776_s0 + $0x68] sm:$0xff]  ;;  %v5178_v17 = vld [vmem:[%s10776_s0 + $0x60] sm:$0xff] }
 0x305   :  { %v7290_v33 = vpop.permute.xlu1 %2682  ;;  %v7292_v34 = vpop.permute.xlu0 %2677 }
 0x306   :  { %11049 = vst [vmem:[#allocation269_spill] sm:$0xff] %v7290_v33  ;;  %11050 = vst [vmem:[#allocation270_spill] sm:$0xff] %v7292_v34  ;;  %3200 = vperm.xlu1 %5451, %v5177_v49   ;;  %3195 = vperm.xlu0 %5450, %v5176_v50   ;;  %v5181_v34 = vld [vmem:[%s10776_s0 + $0x80] sm:$0xff]  ;;  %v5180_v49 = vld [vmem:[%s10776_s0 + $0x78] sm:$0xff] }
 0x309   :  { %v7300_v18 = vpop.permute.xlu1 %2692  ;;  %v7302_v1 = vpop.permute.xlu0 %2687 }
 0x30a   :  { %11051 = vst [vmem:[#allocation271_spill] sm:$0xff] %v7300_v18  ;;  %11052 = vst [vmem:[#allocation272_spill] sm:$0xff] %v7302_v1  ;;  %3210 = vperm.xlu1 %5451, %v5179_v2   ;;  %3205 = vperm.xlu0 %5450, %v5178_v17   ;;  %v5183_v1 = vld [vmem:[%s10776_s0 + $0x98] sm:$0xff]  ;;  %v5182_v2 = vld [vmem:[%s10776_s0 + $0x90] sm:$0xff] }
 0x30d   :  { %v7310_v50 = vpop.permute.xlu1 %2702  ;;  %v7312_v33 = vpop.permute.xlu0 %2697 }
 0x30e   :  { %11053 = vst [vmem:[#allocation273_spill] sm:$0xff] %v7310_v50  ;;  %11054 = vst [vmem:[#allocation274_spill] sm:$0xff] %v7312_v33  ;;  %3220 = vperm.xlu1 %5451, %v5181_v34   ;;  %3215 = vperm.xlu0 %5450, %v5180_v49   ;;  %v5185_v33 = vld [vmem:[%s10776_s0 + $0xb0] sm:$0xff]  ;;  %v5184_v34 = vld [vmem:[%s10776_s0 + $0xa8] sm:$0xff] }
 0x311   :  { %v7320_v17 = vpop.permute.xlu1 %2712  ;;  %v7322_v18 = vpop.permute.xlu0 %2707 }
 0x312   :  { %11055 = vst [vmem:[#allocation275_spill] sm:$0xff] %v7320_v17  ;;  %11056 = vst [vmem:[#allocation276_spill] sm:$0xff] %v7322_v18  ;;  %3230 = vperm.xlu1 %5451, %v5183_v1   ;;  %3225 = vperm.xlu0 %5450, %v5182_v2   ;;  %v5187_v18 = vld [vmem:[%s10776_s0 + $0xc8] sm:$0xff]  ;;  %v5186_v1 = vld [vmem:[%s10776_s0 + $0xc0] sm:$0xff] }
 0x315   :  { %v7330_v49 = vpop.permute.xlu1 %2722  ;;  %v7332_v50 = vpop.permute.xlu0 %2717 }
 0x316   :  { %11057 = vst [vmem:[#allocation277_spill] sm:$0xff] %v7330_v49  ;;  %11058 = vst [vmem:[#allocation278_spill] sm:$0xff] %v7332_v50  ;;  %3240 = vperm.xlu1 %5451, %v5185_v33   ;;  %3235 = vperm.xlu0 %5450, %v5184_v34   ;;  %v5189_v50 = vld [vmem:[%s10776_s0 + $0xe0] sm:$0xff]  ;;  %v5188_v33 = vld [vmem:[%s10776_s0 + $0xd8] sm:$0xff] }
 0x319   :  { %v7340_v2 = vpop.permute.xlu1 %2732  ;;  %v7342_v17 = vpop.permute.xlu0 %2727 }
 0x31a   :  { %11059 = vst [vmem:[#allocation279_spill] sm:$0xff] %v7340_v2  ;;  %11060 = vst [vmem:[#allocation280_spill] sm:$0xff] %v7342_v17  ;;  %3250 = vperm.xlu1 %5451, %v5187_v18   ;;  %3245 = vperm.xlu0 %5450, %v5186_v1   ;;  %v5191_v17 = vld [vmem:[%s10776_s0 + $0xf8] sm:$0xff]  ;;  %v5190_v18 = vld [vmem:[%s10776_s0 + $0xf0] sm:$0xff] }
 0x31d   :  { %v7350_v34 = vpop.permute.xlu1 %2742  ;;  %v7352_v49 = vpop.permute.xlu0 %2737 }
 0x31e   :  { %11061 = vst [vmem:[#allocation281_spill] sm:$0xff] %v7350_v34  ;;  %11062 = vst [vmem:[#allocation282_spill] sm:$0xff] %v7352_v49  ;;  %3260 = vperm.xlu1 %5451, %v5189_v50   ;;  %3255 = vperm.xlu0 %5450, %v5188_v33   ;;  %v5193_v49 = vld [vmem:[%s10776_s0 + $0x110] sm:$0xff]  ;;  %v5192_v50 = vld [vmem:[%s10776_s0 + $0x108] sm:$0xff] }
 0x321   :  { %v7360_v1 = vpop.permute.xlu1 %2752  ;;  %v7362_v2 = vpop.permute.xlu0 %2747 }
 0x322   :  { %11063 = vst [vmem:[#allocation283_spill] sm:$0xff] %v7360_v1  ;;  %11064 = vst [vmem:[#allocation284_spill] sm:$0xff] %v7362_v2  ;;  %3270 = vperm.xlu1 %5451, %v5191_v17   ;;  %3265 = vperm.xlu0 %5450, %v5190_v18   ;;  %v5195_v2 = vld [vmem:[%s10776_s0 + $0x128] sm:$0xff]  ;;  %v5194_v17 = vld [vmem:[%s10776_s0 + $0x120] sm:$0xff] }
 0x325   :  { %v7370_v33 = vpop.permute.xlu1 %2762  ;;  %v7372_v34 = vpop.permute.xlu0 %2757 }
 0x326   :  { %11065 = vst [vmem:[#allocation285_spill] sm:$0xff] %v7370_v33  ;;  %11066 = vst [vmem:[#allocation286_spill] sm:$0xff] %v7372_v34  ;;  %3280 = vperm.xlu1 %5451, %v5193_v49   ;;  %3275 = vperm.xlu0 %5450, %v5192_v50   ;;  %v5197_v34 = vld [vmem:[%s10776_s0 + $0x140] sm:$0xff]  ;;  %v5196_v49 = vld [vmem:[%s10776_s0 + $0x138] sm:$0xff] }
 0x329   :  { %v7380_v18 = vpop.permute.xlu1 %2772  ;;  %v7382_v1 = vpop.permute.xlu0 %2767 }
 0x32a   :  { %11067 = vst [vmem:[#allocation287_spill] sm:$0xff] %v7380_v18  ;;  %11068 = vst [vmem:[#allocation288_spill] sm:$0xff] %v7382_v1  ;;  %3290 = vperm.xlu1 %5451, %v5195_v2   ;;  %3285 = vperm.xlu0 %5450, %v5194_v17   ;;  %v5199_v1 = vld [vmem:[%s10776_s0 + $0x158] sm:$0xff]  ;;  %v5198_v2 = vld [vmem:[%s10776_s0 + $0x150] sm:$0xff] }
 0x32d   :  { %v7390_v50 = vpop.permute.xlu1 %2782  ;;  %v7392_v33 = vpop.permute.xlu0 %2777 }
 0x32e   :  { %11069 = vst [vmem:[#allocation289_spill] sm:$0xff] %v7390_v50  ;;  %11070 = vst [vmem:[#allocation290_spill] sm:$0xff] %v7392_v33  ;;  %3300 = vperm.xlu1 %5451, %v5197_v34   ;;  %3295 = vperm.xlu0 %5450, %v5196_v49   ;;  %v5201_v33 = vld [vmem:[%s10776_s0 + $0x170] sm:$0xff]  ;;  %v5200_v34 = vld [vmem:[%s10776_s0 + $0x168] sm:$0xff] }
 0x331   :  { %v7400_v17 = vpop.permute.xlu1 %2792  ;;  %v7402_v18 = vpop.permute.xlu0 %2787 }
 0x332   :  { %11071 = vst [vmem:[#allocation291_spill] sm:$0xff] %v7400_v17  ;;  %11072 = vst [vmem:[#allocation292_spill] sm:$0xff] %v7402_v18  ;;  %3310 = vperm.xlu1 %5451, %v5199_v1   ;;  %3305 = vperm.xlu0 %5450, %v5198_v2   ;;  %v5203_v18 = vld [vmem:[%s10776_s0 + $0x188] sm:$0xff]  ;;  %v5202_v1 = vld [vmem:[%s10776_s0 + $0x180] sm:$0xff] }
 0x335   :  { %v7410_v49 = vpop.permute.xlu1 %2802  ;;  %v7412_v50 = vpop.permute.xlu0 %2797 }
 0x336   :  { %11073 = vst [vmem:[#allocation293_spill] sm:$0xff] %v7410_v49  ;;  %11074 = vst [vmem:[#allocation294_spill] sm:$0xff] %v7412_v50  ;;  %3320 = vperm.xlu1 %5451, %v5201_v33   ;;  %3315 = vperm.xlu0 %5450, %v5200_v34   ;;  %v5205_v50 = vld [vmem:[%s10776_s0 + $0x1a0] sm:$0xff]  ;;  %v5204_v33 = vld [vmem:[%s10776_s0 + $0x198] sm:$0xff] }
 0x339   :  { %v7420_v2 = vpop.permute.xlu1 %2812  ;;  %v7422_v17 = vpop.permute.xlu0 %2807 }
 0x33a   :  { %11075 = vst [vmem:[#allocation295_spill] sm:$0xff] %v7420_v2  ;;  %11076 = vst [vmem:[#allocation296_spill] sm:$0xff] %v7422_v17  ;;  %3330 = vperm.xlu1 %5451, %v5203_v18   ;;  %3325 = vperm.xlu0 %5450, %v5202_v1   ;;  %v5207_v17 = vld [vmem:[%s10776_s0 + $0x1e8] sm:$0xff]  ;;  %v5206_v18 = vld [vmem:[%s10776_s0 + $0x1e0] sm:$0xff] }
 0x33d   :  { %v7430_v34 = vpop.permute.xlu1 %2822  ;;  %v7432_v49 = vpop.permute.xlu0 %2817 }
 0x33e   :  { %11077 = vst [vmem:[#allocation297_spill] sm:$0xff] %v7430_v34  ;;  %11078 = vst [vmem:[#allocation298_spill] sm:$0xff] %v7432_v49  ;;  %3340 = vperm.xlu1 %5451, %v5205_v50   ;;  %3335 = vperm.xlu0 %5450, %v5204_v33   ;;  %v5209_v49 = vld [vmem:[%s10776_s0 + $0x200] sm:$0xff]  ;;  %v5208_v50 = vld [vmem:[%s10776_s0 + $0x1f8] sm:$0xff] }
 0x341   :  { %v7440_v1 = vpop.permute.xlu1 %2832  ;;  %v7442_v2 = vpop.permute.xlu0 %2827 }
 0x342   :  { %11079 = vst [vmem:[#allocation299_spill] sm:$0xff] %v7440_v1  ;;  %11080 = vst [vmem:[#allocation300_spill] sm:$0xff] %v7442_v2  ;;  %3350 = vperm.xlu1 %5451, %v5207_v17   ;;  %3345 = vperm.xlu0 %5450, %v5206_v18   ;;  %v5211_v2 = vld [vmem:[%s10776_s0 + $0x218] sm:$0xff]  ;;  %v5210_v17 = vld [vmem:[%s10776_s0 + $0x210] sm:$0xff] }
 0x345   :  { %v7450_v33 = vpop.permute.xlu1 %2842  ;;  %v7452_v34 = vpop.permute.xlu0 %2837 }
 0x346   :  { %11081 = vst [vmem:[#allocation301_spill] sm:$0xff] %v7450_v33  ;;  %11082 = vst [vmem:[#allocation302_spill] sm:$0xff] %v7452_v34  ;;  %3360 = vperm.xlu1 %5451, %v5209_v49   ;;  %3355 = vperm.xlu0 %5450, %v5208_v50   ;;  %v5213_v34 = vld [vmem:[%s10776_s0 + $0x230] sm:$0xff]  ;;  %v5212_v49 = vld [vmem:[%s10776_s0 + $0x228] sm:$0xff] }
 0x349   :  { %v7460_v18 = vpop.permute.xlu1 %2852  ;;  %v7462_v1 = vpop.permute.xlu0 %2847 }
 0x34a   :  { %11083 = vst [vmem:[#allocation303_spill] sm:$0xff] %v7460_v18  ;;  %11084 = vst [vmem:[#allocation304_spill] sm:$0xff] %v7462_v1  ;;  %3370 = vperm.xlu1 %5451, %v5211_v2   ;;  %3365 = vperm.xlu0 %5450, %v5210_v17   ;;  %v5215_v1 = vld [vmem:[%s10776_s0 + $0x248] sm:$0xff]  ;;  %v5214_v2 = vld [vmem:[%s10776_s0 + $0x240] sm:$0xff] }
 0x34d   :  { %v7470_v50 = vpop.permute.xlu1 %2862  ;;  %v7472_v33 = vpop.permute.xlu0 %2857 }
 0x34e   :  { %11085 = vst [vmem:[#allocation305_spill] sm:$0xff] %v7470_v50  ;;  %11086 = vst [vmem:[#allocation306_spill] sm:$0xff] %v7472_v33  ;;  %3380 = vperm.xlu1 %5451, %v5213_v34   ;;  %3375 = vperm.xlu0 %5450, %v5212_v49   ;;  %v5217_v33 = vld [vmem:[%s10776_s0 + $0x260] sm:$0xff]  ;;  %v5216_v34 = vld [vmem:[%s10776_s0 + $0x258] sm:$0xff] }
 0x351   :  { %v7480_v17 = vpop.permute.xlu1 %2872  ;;  %v7482_v18 = vpop.permute.xlu0 %2867 }
 0x352   :  { %11087 = vst [vmem:[#allocation307_spill] sm:$0xff] %v7480_v17  ;;  %11088 = vst [vmem:[#allocation308_spill] sm:$0xff] %v7482_v18  ;;  %3390 = vperm.xlu1 %5451, %v5215_v1   ;;  %3385 = vperm.xlu0 %5450, %v5214_v2   ;;  %v5219_v18 = vld [vmem:[%s10776_s0 + $0x278] sm:$0xff]  ;;  %v5218_v1 = vld [vmem:[%s10776_s0 + $0x270] sm:$0xff] }
 0x355   :  { %v7490_v49 = vpop.permute.xlu1 %2882  ;;  %v7492_v50 = vpop.permute.xlu0 %2877 }
 0x356   :  { %11089 = vst [vmem:[#allocation309_spill] sm:$0xff] %v7490_v49  ;;  %11090 = vst [vmem:[#allocation310_spill] sm:$0xff] %v7492_v50  ;;  %3400 = vperm.xlu1 %5451, %v5217_v33   ;;  %3395 = vperm.xlu0 %5450, %v5216_v34   ;;  %v5221_v50 = vld [vmem:[%s10776_s0 + $0x290] sm:$0xff]  ;;  %v5220_v33 = vld [vmem:[%s10776_s0 + $0x288] sm:$0xff] }
 0x359   :  { %v7500_v2 = vpop.permute.xlu1 %2892  ;;  %v7502_v17 = vpop.permute.xlu0 %2887 }
 0x35a   :  { %11091 = vst [vmem:[#allocation311_spill] sm:$0xff] %v7500_v2  ;;  %11092 = vst [vmem:[#allocation312_spill] sm:$0xff] %v7502_v17  ;;  %3410 = vperm.xlu1 %5451, %v5219_v18   ;;  %3405 = vperm.xlu0 %5450, %v5218_v1   ;;  %v5223_v17 = vld [vmem:[%s10776_s0 + $0x2a8] sm:$0xff]  ;;  %v5222_v18 = vld [vmem:[%s10776_s0 + $0x2a0] sm:$0xff] }
 0x35d   :  { %v7510_v34 = vpop.permute.xlu1 %2902  ;;  %v7512_v49 = vpop.permute.xlu0 %2897 }
 0x35e   :  { %11093 = vst [vmem:[#allocation313_spill] sm:$0xff] %v7510_v34  ;;  %11094 = vst [vmem:[#allocation314_spill] sm:$0xff] %v7512_v49  ;;  %3420 = vperm.xlu1 %5451, %v5221_v50   ;;  %3415 = vperm.xlu0 %5450, %v5220_v33   ;;  %v5225_v49 = vld [vmem:[%s10776_s0 + $0x2c0] sm:$0xff]  ;;  %v5224_v50 = vld [vmem:[%s10776_s0 + $0x2b8] sm:$0xff] }
 0x361   :  { %v7520_v1 = vpop.permute.xlu1 %2912  ;;  %v7522_v2 = vpop.permute.xlu0 %2907 }
 0x362   :  { %11095 = vst [vmem:[#allocation315_spill] sm:$0xff] %v7520_v1  ;;  %11096 = vst [vmem:[#allocation316_spill] sm:$0xff] %v7522_v2  ;;  %3430 = vperm.xlu1 %5451, %v5223_v17   ;;  %3425 = vperm.xlu0 %5450, %v5222_v18   ;;  %v5227_v2 = vld [vmem:[%s10776_s0 + $0x2d8] sm:$0xff]  ;;  %v5226_v17 = vld [vmem:[%s10776_s0 + $0x2d0] sm:$0xff] }
 0x365   :  { %v7530_v33 = vpop.permute.xlu1 %2922  ;;  %v7532_v34 = vpop.permute.xlu0 %2917 }
 0x366   :  { %11097 = vst [vmem:[#allocation317_spill] sm:$0xff] %v7530_v33  ;;  %11098 = vst [vmem:[#allocation318_spill] sm:$0xff] %v7532_v34  ;;  %3440 = vperm.xlu1 %5451, %v5225_v49   ;;  %3435 = vperm.xlu0 %5450, %v5224_v50   ;;  %v5229_v34 = vld [vmem:[%s10776_s0 + $0x2f0] sm:$0xff]  ;;  %v5228_v49 = vld [vmem:[%s10776_s0 + $0x2e8] sm:$0xff] }
 0x369   :  { %v7540_v18 = vpop.permute.xlu1 %2932  ;;  %v7542_v1 = vpop.permute.xlu0 %2927 }
 0x36a   :  { %11099 = vst [vmem:[#allocation319_spill] sm:$0xff] %v7540_v18  ;;  %11100 = vst [vmem:[#allocation320_spill] sm:$0xff] %v7542_v1  ;;  %3450 = vperm.xlu1 %5451, %v5227_v2   ;;  %3445 = vperm.xlu0 %5450, %v5226_v17   ;;  %v5231_v1 = vld [vmem:[%s10776_s0 + $0x308] sm:$0xff]  ;;  %v5230_v2 = vld [vmem:[%s10776_s0 + $0x300] sm:$0xff] }
 0x36d   :  { %v7550_v50 = vpop.permute.xlu1 %2942  ;;  %v7552_v33 = vpop.permute.xlu0 %2937 }
 0x36e   :  { %11101 = vst [vmem:[#allocation321_spill] sm:$0xff] %v7550_v50  ;;  %11102 = vst [vmem:[#allocation322_spill] sm:$0xff] %v7552_v33  ;;  %3460 = vperm.xlu1 %5451, %v5229_v34   ;;  %3455 = vperm.xlu0 %5450, %v5228_v49   ;;  %v5233_v33 = vld [vmem:[%s10776_s0 + $0x320] sm:$0xff]  ;;  %v5232_v34 = vld [vmem:[%s10776_s0 + $0x318] sm:$0xff] }
 0x371   :  { %v7560_v17 = vpop.permute.xlu1 %2952  ;;  %v7562_v18 = vpop.permute.xlu0 %2947 }
 0x372   :  { %11103 = vst [vmem:[#allocation323_spill] sm:$0xff] %v7560_v17  ;;  %11104 = vst [vmem:[#allocation324_spill] sm:$0xff] %v7562_v18  ;;  %3470 = vperm.xlu1 %5451, %v5231_v1   ;;  %3465 = vperm.xlu0 %5450, %v5230_v2   ;;  %v5235_v18 = vld [vmem:[%s10776_s0 + $0x338] sm:$0xff]  ;;  %v5234_v1 = vld [vmem:[%s10776_s0 + $0x330] sm:$0xff] }
 0x375   :  { %v7570_v49 = vpop.permute.xlu1 %2962  ;;  %v7572_v50 = vpop.permute.xlu0 %2957 }
 0x376   :  { %11105 = vst [vmem:[#allocation325_spill] sm:$0xff] %v7570_v49  ;;  %11106 = vst [vmem:[#allocation326_spill] sm:$0xff] %v7572_v50  ;;  %3480 = vperm.xlu1 %5451, %v5233_v33   ;;  %3475 = vperm.xlu0 %5450, %v5232_v34   ;;  %v5237_v50 = vld [vmem:[%s10776_s0 + $0x350] sm:$0xff]  ;;  %v5236_v33 = vld [vmem:[%s10776_s0 + $0x348] sm:$0xff] }
 0x379   :  { %v7580_v2 = vpop.permute.xlu1 %2972  ;;  %v7582_v17 = vpop.permute.xlu0 %2967 }
 0x37a   :  { %11107 = vst [vmem:[#allocation327_spill] sm:$0xff] %v7580_v2  ;;  %11108 = vst [vmem:[#allocation328_spill] sm:$0xff] %v7582_v17  ;;  %3490 = vperm.xlu1 %5451, %v5235_v18   ;;  %3485 = vperm.xlu0 %5450, %v5234_v1   ;;  %v5240_v17 = vld [vmem:[%s10776_s0 + $0x39] sm:$0xff]  ;;  %v5239_v18 = vld [vmem:[%s10776_s0 + $0x31] sm:$0xff] }
 0x37d   :  { %v7590_v34 = vpop.permute.xlu1 %2982  ;;  %v7592_v49 = vpop.permute.xlu0 %2977 }
 0x37e   :  { %11109 = vst [vmem:[#allocation329_spill] sm:$0xff] %v7590_v34  ;;  %11110 = vst [vmem:[#allocation330_spill] sm:$0xff] %v7592_v49  ;;  %3500 = vperm.xlu1 %5451, %v5237_v50   ;;  %3495 = vperm.xlu0 %5450, %v5236_v33   ;;  %v5242_v49 = vld [vmem:[%s10776_s0 + $0x51] sm:$0xff]  ;;  %v5241_v50 = vld [vmem:[%s10776_s0 + $0x49] sm:$0xff] }
 0x381   :  { %v7600_v1 = vpop.permute.xlu1 %3190  ;;  %v7602_v2 = vpop.permute.xlu0 %3185 }
 0x382   :  { %11111 = vst [vmem:[#allocation331_spill] sm:$0xff] %v7600_v1  ;;  %11112 = vst [vmem:[#allocation332_spill] sm:$0xff] %v7602_v2  ;;  %3707 = vperm.xlu1 %5451, %v5240_v17   ;;  %3702 = vperm.xlu0 %5450, %v5239_v18   ;;  %v5244_v2 = vld [vmem:[%s10776_s0 + $0x69] sm:$0xff]  ;;  %v5243_v17 = vld [vmem:[%s10776_s0 + $0x61] sm:$0xff] }
 0x385   :  { %v7610_v33 = vpop.permute.xlu1 %3200  ;;  %v7612_v34 = vpop.permute.xlu0 %3195 }
 0x386   :  { %11113 = vst [vmem:[#allocation333_spill] sm:$0xff] %v7610_v33  ;;  %11114 = vst [vmem:[#allocation334_spill] sm:$0xff] %v7612_v34  ;;  %3717 = vperm.xlu1 %5451, %v5242_v49   ;;  %3712 = vperm.xlu0 %5450, %v5241_v50   ;;  %v5246_v34 = vld [vmem:[%s10776_s0 + $0x81] sm:$0xff]  ;;  %v5245_v49 = vld [vmem:[%s10776_s0 + $0x79] sm:$0xff] }
 0x389   :  { %v7620_v18 = vpop.permute.xlu1 %3210  ;;  %v7622_v1 = vpop.permute.xlu0 %3205 }
 0x38a   :  { %11115 = vst [vmem:[#allocation335_spill] sm:$0xff] %v7620_v18  ;;  %11116 = vst [vmem:[#allocation336_spill] sm:$0xff] %v7622_v1  ;;  %3727 = vperm.xlu1 %5451, %v5244_v2   ;;  %3722 = vperm.xlu0 %5450, %v5243_v17   ;;  %v5248_v1 = vld [vmem:[%s10776_s0 + $0x99] sm:$0xff]  ;;  %v5247_v2 = vld [vmem:[%s10776_s0 + $0x91] sm:$0xff] }
 0x38d   :  { %v7630_v50 = vpop.permute.xlu1 %3220  ;;  %v7632_v33 = vpop.permute.xlu0 %3215 }
 0x38e   :  { %11117 = vst [vmem:[#allocation337_spill] sm:$0xff] %v7630_v50  ;;  %11118 = vst [vmem:[#allocation338_spill] sm:$0xff] %v7632_v33  ;;  %3737 = vperm.xlu1 %5451, %v5246_v34   ;;  %3732 = vperm.xlu0 %5450, %v5245_v49   ;;  %v5250_v33 = vld [vmem:[%s10776_s0 + $0xb1] sm:$0xff]  ;;  %v5249_v34 = vld [vmem:[%s10776_s0 + $0xa9] sm:$0xff] }
 0x391   :  { %v7640_v17 = vpop.permute.xlu1 %3230  ;;  %v7642_v18 = vpop.permute.xlu0 %3225 }
 0x392   :  { %11119 = vst [vmem:[#allocation339_spill] sm:$0xff] %v7640_v17  ;;  %11120 = vst [vmem:[#allocation340_spill] sm:$0xff] %v7642_v18  ;;  %3747 = vperm.xlu1 %5451, %v5248_v1   ;;  %3742 = vperm.xlu0 %5450, %v5247_v2   ;;  %v5252_v18 = vld [vmem:[%s10776_s0 + $0xc9] sm:$0xff]  ;;  %v5251_v1 = vld [vmem:[%s10776_s0 + $0xc1] sm:$0xff] }
 0x395   :  { %v7650_v49 = vpop.permute.xlu1 %3240  ;;  %v7652_v50 = vpop.permute.xlu0 %3235 }
 0x396   :  { %11121 = vst [vmem:[#allocation341_spill] sm:$0xff] %v7650_v49  ;;  %11122 = vst [vmem:[#allocation342_spill] sm:$0xff] %v7652_v50  ;;  %3757 = vperm.xlu1 %5451, %v5250_v33   ;;  %3752 = vperm.xlu0 %5450, %v5249_v34   ;;  %v5254_v50 = vld [vmem:[%s10776_s0 + $0xe1] sm:$0xff]  ;;  %v5253_v33 = vld [vmem:[%s10776_s0 + $0xd9] sm:$0xff] }
 0x399   :  { %v7660_v2 = vpop.permute.xlu1 %3250  ;;  %v7662_v17 = vpop.permute.xlu0 %3245 }
 0x39a   :  { %11123 = vst [vmem:[#allocation343_spill] sm:$0xff] %v7660_v2  ;;  %11124 = vst [vmem:[#allocation344_spill] sm:$0xff] %v7662_v17  ;;  %3767 = vperm.xlu1 %5451, %v5252_v18   ;;  %3762 = vperm.xlu0 %5450, %v5251_v1   ;;  %v5256_v17 = vld [vmem:[%s10776_s0 + $0xf9] sm:$0xff]  ;;  %v5255_v18 = vld [vmem:[%s10776_s0 + $0xf1] sm:$0xff] }
 0x39d   :  { %v7670_v34 = vpop.permute.xlu1 %3260  ;;  %v7672_v49 = vpop.permute.xlu0 %3255 }
 0x39e   :  { %11125 = vst [vmem:[#allocation345_spill] sm:$0xff] %v7670_v34  ;;  %11126 = vst [vmem:[#allocation346_spill] sm:$0xff] %v7672_v49  ;;  %3777 = vperm.xlu1 %5451, %v5254_v50   ;;  %3772 = vperm.xlu0 %5450, %v5253_v33   ;;  %v5258_v49 = vld [vmem:[%s10776_s0 + $0x111] sm:$0xff]  ;;  %v5257_v50 = vld [vmem:[%s10776_s0 + $0x109] sm:$0xff] }
 0x3a1   :  { %v7680_v1 = vpop.permute.xlu1 %3270  ;;  %v7682_v2 = vpop.permute.xlu0 %3265 }
 0x3a2   :  { %11127 = vst [vmem:[#allocation347_spill] sm:$0xff] %v7680_v1  ;;  %11128 = vst [vmem:[#allocation348_spill] sm:$0xff] %v7682_v2  ;;  %3787 = vperm.xlu1 %5451, %v5256_v17   ;;  %3782 = vperm.xlu0 %5450, %v5255_v18   ;;  %v5260_v2 = vld [vmem:[%s10776_s0 + $0x129] sm:$0xff]  ;;  %v5259_v17 = vld [vmem:[%s10776_s0 + $0x121] sm:$0xff] }
 0x3a5   :  { %v7690_v33 = vpop.permute.xlu1 %3280  ;;  %v7692_v34 = vpop.permute.xlu0 %3275 }
 0x3a6   :  { %11129 = vst [vmem:[#allocation349_spill] sm:$0xff] %v7690_v33  ;;  %11130 = vst [vmem:[#allocation350_spill] sm:$0xff] %v7692_v34  ;;  %3797 = vperm.xlu1 %5451, %v5258_v49   ;;  %3792 = vperm.xlu0 %5450, %v5257_v50   ;;  %v5262_v34 = vld [vmem:[%s10776_s0 + $0x141] sm:$0xff]  ;;  %v5261_v49 = vld [vmem:[%s10776_s0 + $0x139] sm:$0xff] }
 0x3a9   :  { %v7700_v18 = vpop.permute.xlu1 %3290  ;;  %v7702_v1 = vpop.permute.xlu0 %3285 }
 0x3aa   :  { %11131 = vst [vmem:[#allocation351_spill] sm:$0xff] %v7700_v18  ;;  %11132 = vst [vmem:[#allocation352_spill] sm:$0xff] %v7702_v1  ;;  %3807 = vperm.xlu1 %5451, %v5260_v2   ;;  %3802 = vperm.xlu0 %5450, %v5259_v17   ;;  %v5264_v1 = vld [vmem:[%s10776_s0 + $0x159] sm:$0xff]  ;;  %v5263_v2 = vld [vmem:[%s10776_s0 + $0x151] sm:$0xff] }
 0x3ad   :  { %v7710_v50 = vpop.permute.xlu1 %3300  ;;  %v7712_v33 = vpop.permute.xlu0 %3295 }
 0x3ae   :  { %11133 = vst [vmem:[#allocation353_spill] sm:$0xff] %v7710_v50  ;;  %11134 = vst [vmem:[#allocation354_spill] sm:$0xff] %v7712_v33  ;;  %3817 = vperm.xlu1 %5451, %v5262_v34   ;;  %3812 = vperm.xlu0 %5450, %v5261_v49   ;;  %v5266_v33 = vld [vmem:[%s10776_s0 + $0x171] sm:$0xff]  ;;  %v5265_v34 = vld [vmem:[%s10776_s0 + $0x169] sm:$0xff] }
 0x3af   :  { %v7733_v49 = vld [vmem:[%s10777_s1] ss:$0 sm:$0xff] }
 0x3b0   :  { %v7751_v58 = vmul.f32 %v7733_v49, %v5682_v4  ;;  %v7771_v4 = vmul.f32 %v7733_v49, %v5710_v15  ;;  %v7791_v15 = vmul.f32 %v7733_v49, %v5730_v23  ;;  %v5269_v23 = vld [vmem:[%s10776_s0 + $0x199] sm:$0xff] }
 0x3b1   :  { %v7720_v17 = vpop.permute.xlu1 %3310  ;;  %v7722_v18 = vpop.permute.xlu0 %3305 }
 0x3b2   :  { %11135 = vst [vmem:[#allocation355_spill] sm:$0xff] %v7720_v17  ;;  %11136 = vst [vmem:[#allocation356_spill] sm:$0xff] %v7722_v18  ;;  %3827 = vperm.xlu1 %5451, %v5264_v1   ;;  %3822 = vperm.xlu0 %5450, %v5263_v2   ;;  %v5268_v1 = vld [vmem:[%s10776_s0 + $0x189] sm:$0xff]  ;;  %v5267_v2 = vld [vmem:[%s10776_s0 + $0x181] sm:$0xff]  ;;  %v7747_v18 = vmul.f32 %v7733_v49, %v5680_v3  ;;  %v7767_v3 = vmul.f32 %v7733_v49, %v5702_v12 }
 0x3b3   :  { %v7787_v12 = vmul.f32 %v7733_v49, %v5722_v20  ;;  %v5270_v20 = vld [vmem:[%s10776_s0 + $0x1a1] sm:$0xff] }
 0x3b5   :  { %v7735_v50 = vpop.permute.xlu1 %3320  ;;  %v7737_v17 = vpop.permute.xlu0 %3315 }
 0x3b6   :  { %11137 = vst [vmem:[#allocation357_spill] sm:$0xff] %v7735_v50  ;;  %11138 = vst [vmem:[#allocation358_spill] sm:$0xff] %v7737_v17  ;;  %3837 = vperm.xlu1 %5451, %v5266_v33   ;;  %3832 = vperm.xlu0 %5450, %v5265_v34   ;;  %v7755_v33 = vmul.f32 %v7733_v49, %v5690_v7  ;;  %v7759_v34 = vmul.f32 %v7733_v49, %v5692_v8 }
 0x3b7   :  { %v7763_v17 = vmul.f32 %v7733_v49, %v5700_v11  ;;  %v7779_v8 = vmul.f32 %v7733_v49, %v5712_v16  ;;  %v7783_v11 = vmul.f32 %v7733_v49, %v5720_v19  ;;  %v7799_v16 = vmul.f32 %v7733_v49, %v5740_v27 }
 0x3b8   :  { %v7803_v19 = vmul.f32 %v7733_v49, %v5742_v28  ;;  %v7817_v27 = vmul.f32 %v7733_v49, %v5752_v32  ;;  %v7821_v28 = vmul.f32 %v7733_v49, %v5760_v35  ;;  %v7837_v32 = vmul.f32 %v7733_v49, %v5780_v43 }
 0x3b9   :  { %v7773_v50 = vpop.permute.xlu1 %3330  ;;  %v7775_v7 = vpop.permute.xlu0 %3325  ;;  %v7841_v35 = vmul.f32 %v7733_v49, %v5782_v44  ;;  %v7857_v43 = vmul.f32 %v7733_v49, %v5800_v51  ;;  %v7861_v44 = vmul.f32 %v7733_v49, %v5802_v52  ;;  %v5272_v51 = vld [vmem:[%s10776_s0 + $0x1e9] sm:$0xff]  ;;  %v5271_v52 = vld [vmem:[%s10776_s0 + $0x1e1] sm:$0xff] }
 0x3ba   :  { %11139 = vst [vmem:[#allocation359_spill] sm:$0xff] %v7773_v50  ;;  %11140 = vst [vmem:[#allocation360_spill] sm:$0xff] %v7775_v7  ;;  %3847 = vperm.xlu1 %5451, %v5268_v1   ;;  %3842 = vperm.xlu0 %5450, %v5267_v2   ;;  %v7795_v7 = vmul.f32 %v7733_v49, %v5732_v24  ;;  %v7813_v24 = vmul.f32 %v7733_v49, %v5750_v31 }
 0x3bb   :  { %v7825_v1 = vmul.f32 %v7733_v49, %v5762_v36  ;;  %v7829_v2 = vmul.f32 %v7733_v49, %v5770_v39  ;;  %v7833_v31 = vmul.f32 %v7733_v49, %v5772_v40  ;;  %v7849_v39 = vmul.f32 %v7733_v49, %v5790_v47 }
 0x3bc   :  { %v7853_v40 = vmul.f32 %v7733_v49, %v5792_v48  ;;  %v7869_v47 = vmul.f32 %v7733_v49, %v5812_v56  ;;  %v7873_v48 = vmul.f32 %v7733_v49, %v5820_v59  ;;  %v7887_v56 = vmul.f32 %v7733_v49, %v5830_v63 }
 0x3bd   :  { %v7843_v50 = vpop.permute.xlu1 %3340  ;;  %v7845_v36 = vpop.permute.xlu0 %3335  ;;  %v7891_v59 = vmul.f32 %v7733_v49, %v5832_v0  ;;  %v7907_v63 = vmul.f32 %v7733_v49, %v5852_v14  ;;  %v7911_v0 = vmul.f32 %v7733_v49, %v5860_v21  ;;  %v7927_v14 = vmul.f32 %v7733_v49, %v5872_v30  ;;  %v5274_v30 = vld [vmem:[%s10776_s0 + $0x201] sm:$0xff] }
 0x3be   :  { %11141 = vst [vmem:[#allocation361_spill] sm:$0xff] %v7843_v50  ;;  %11142 = vst [vmem:[#allocation362_spill] sm:$0xff] %v7845_v36  ;;  %3857 = vperm.xlu1 %5451, %v5270_v20   ;;  %3852 = vperm.xlu0 %5450, %v5269_v23   ;;  %v7865_v36 = vmul.f32 %v7733_v49, %v5810_v55  ;;  %v7883_v55 = vmul.f32 %v7733_v49, %v5822_v60 }
 0x3bf   :  { %v7895_v20 = vmul.f32 %v7733_v49, %v5840_v5  ;;  %v7899_v23 = vmul.f32 %v7733_v49, %v5842_v6  ;;  %v7903_v60 = vmul.f32 %v7733_v49, %v5850_v13  ;;  %v7919_v6 = vmul.f32 %v7733_v49, %v5862_v22 }
 0x3c0   :  { %v7923_v13 = vmul.f32 %v7733_v49, %v5870_v29  ;;  %v7931_v21 = vmul.f32 %v7733_v49, %v5880_v37  ;;  %v7939_v22 = vmul.f32 %v7733_v49, %v5890_v45  ;;  %v7943_v29 = vmul.f32 %v7733_v49, %v5892_v46  ;;  %v5273_v37 = vld [vmem:[%s10776_s0 + $0x1f9] sm:$0xff] }
 0x3c1   :  { %v7913_v50 = vpop.permute.xlu1 %3350  ;;  %v7915_v5 = vpop.permute.xlu0 %3345  ;;  %v7957_v45 = vmul.f32 %v7733_v49, %v5902_v54  ;;  %v7961_v46 = vmul.f32 %v7733_v49, %v5910_v61  ;;  %v7977_v54 = vmul.f32 %v7733_v49, %v5930_v25  ;;  %v7981_v61 = vmul.f32 %v7733_v49, %v5932_v26 }
 0x3c2   :  { %11143 = vst [vmem:[#allocation363_spill] sm:$0xff] %v7913_v50  ;;  %11144 = vst [vmem:[#allocation364_spill] sm:$0xff] %v7915_v5  ;;  %3867 = vperm.xlu1 %5451, %v5272_v51   ;;  %3862 = vperm.xlu0 %5450, %v5271_v52   ;;  %v7935_v5 = vmul.f32 %v7733_v49, %v5882_v38  ;;  %v7953_v38 = vmul.f32 %v7733_v49, %v5900_v53 }
 0x3c3   :  { %11146 = vst [vmem:[#allocation366_spill] sm:$0xff] %v7939_v22  ;;  %11147 = vst [vmem:[#allocation367_spill] sm:$0xff] %v7943_v29  ;;  %v7965_v51 = vmul.f32 %v7733_v49, %v5912_v62  ;;  %v7969_v52 = vmul.f32 %v7733_v49, %v5920_v9  ;;  %v7973_v53 = vmul.f32 %v7733_v49, %v5922_v10  ;;  %v7986_v62 = vld [vmem:[%s10777_s1 + $0x1] ss:$0 sm:$0xff]  ;;  %v11182_v22 = vld [vmem:[#allocation19_spill] sm:$0xff] }
 0x3c4   :  { %11145 = vst [vmem:[#allocation365_spill] sm:$0xff] %v7935_v5  ;;  %11148 = vst [vmem:[#allocation368_spill] sm:$0xff] %v7953_v38  ;;  %v7994_v10 = vmul.f32 %v7733_v49, %v5940_v41  ;;  %v7998_v25 = vmul.f32 %v7733_v49, %v5942_v42  ;;  %v8002_v26 = vmul.f32 %v7733_v49, %v5950_v57  ;;  %v11165_v41 = vld [vmem:[#allocation4_spill] sm:$0xff]  ;;  %v11167_v42 = vld [vmem:[#allocation5_spill] sm:$0xff] }
 0x3c5   :  { %11149 = vst [vmem:[#allocation369_spill] sm:$0xff] %v7957_v45  ;;  %11150 = vst [vmem:[#allocation370_spill] sm:$0xff] %v7961_v46  ;;  %v7988_v50 = vpop.permute.xlu1 %3360  ;;  %v7990_v9 = vpop.permute.xlu0 %3355  ;;  %v5276_v57 = vld [vmem:[%s10776_s0 + $0x219] sm:$0xff] }
 0x3c6   :  { %11151 = vst [vmem:[#allocation371_spill] sm:$0xff] %v7965_v51  ;;  %11152 = vst [vmem:[#allocation372_spill] sm:$0xff] %v7969_v52  ;;  %3877 = vperm.xlu1 %5451, %v5274_v30   ;;  %3872 = vperm.xlu0 %5450, %v5273_v37   ;;  %v5275_v30 = vld [vmem:[%s10776_s0 + $0x211] sm:$0xff]  ;;  %v11169_v37 = vld [vmem:[#allocation11_spill] sm:$0xff] }
 0x3c7   :  { %11153 = vst [vmem:[#allocation373_spill] sm:$0xff] %v7973_v53  ;;  %11154 = vst [vmem:[#allocation374_spill] sm:$0xff] %v7977_v54  ;;  %v11174_v53 = vld [vmem:[#allocation16_spill] sm:$0xff]  ;;  %v11175_v51 = vld [vmem:[#allocation17_spill] sm:$0xff] }
 0x3c8   :  { %11155 = vst [vmem:[#allocation375_spill] sm:$0xff] %v7981_v61  ;;  %11156 = vst [vmem:[#allocation376_spill] sm:$0xff] %v7988_v50  ;;  %v11161_v61 = vld [vmem:[#allocation2_spill] sm:$0xff]  ;;  %v11163_v50 = vld [vmem:[#allocation3_spill] sm:$0xff]  ;;  %v924_v52 = vmul.f32 %v7986_v62, %v11174_v53  ;;  %v927_v46 = vmul.f32 %v7986_v62, %v11175_v51  ;;  %v929_v53 = vmul.f32 %v7986_v62, %v11182_v22 }
 0x3c9   :  { %11157 = vst [vmem:[#allocation377_spill] sm:$0xff] %v7990_v9  ;;  %11158 = vst [vmem:[#allocation378_spill] sm:$0xff] %v7994_v10  ;;  %v8006_v54 = vmul.f32 %v7733_v49, %v11161_v61  ;;  %v8010_v9 = vmul.f32 %v7733_v49, %v11163_v50  ;;  %v8014_v10 = vmul.f32 %v7733_v49, %v11165_v41  ;;  %v11170_v61 = vld [vmem:[#allocation12_spill] sm:$0xff]  ;;  %v11171_v41 = vld [vmem:[#allocation13_spill] sm:$0xff]  ;;  %v8042_v38 = vpop.permute.xlu1 %3370 }
 0x3ca   :  { %11159 = vst [vmem:[#allocation379_spill] sm:$0xff] %v7998_v25  ;;  %11160 = vst [vmem:[#allocation380_spill] sm:$0xff] %v8002_v26  ;;  %v8018_v25 = vmul.f32 %v7733_v49, %v11167_v42  ;;  %v921_v50 = vmul.f32 %v7986_v62, %v11169_v37  ;;  %v11176_v45 = vld [vmem:[#allocation18_spill] sm:$0xff]  ;;  %3887 = vperm.xlu1 %5451, %v5276_v57   ;;  %3882 = vperm.xlu0 %5450, %v5275_v30   ;;  %v11183_v51 = vld [vmem:[#allocation8_spill] sm:$0xff] }
 0x3cb   :  { %11162 = vst [vmem:[#allocation2_spill] sm:$0xff] %v8006_v54  ;;  %11164 = vst [vmem:[#allocation3_spill] sm:$0xff] %v8010_v9  ;;  %v920_v9 = vmul.f32 %v7986_v62, %v11170_v61  ;;  %v11172_v54 = vld [vmem:[#allocation14_spill] sm:$0xff]  ;;  %v926_v37 = vmul.f32 %v7986_v62, %v11176_v45  ;;  %v8044_v61 = vpop.permute.xlu0 %3365  ;;  %v8058_v45 = vmul.f32 %v7733_v49, %v11183_v51  ;;  %v5278_v22 = vld [vmem:[%s10776_s0 + $0x231] sm:$0xff] }
 0x3cc   :  { %11166 = vst [vmem:[#allocation4_spill] sm:$0xff] %v8014_v10  ;;  %11168 = vst [vmem:[#allocation5_spill] sm:$0xff] %v8018_v25  ;;  %v923_v10 = vmul.f32 %v7986_v62, %v11171_v41  ;;  %v922_v42 = vmul.f32 %v7986_v62, %v11172_v54  ;;  %v11173_v25 = vld [vmem:[#allocation15_spill] sm:$0xff]  ;;  %v11179_v41 = vld [vmem:[#allocation6_spill] sm:$0xff]  ;;  %v8077_v30 = vadd.f32 %v921_v50, %v7759_v34 }
 0x3cd   :  { %v925_v26 = vmul.f32 %v7986_v62, %v11173_v25  ;;  %11177 = vst [vmem:[#allocation11_spill] sm:$0xff] %v8042_v38  ;;  %11178 = vst [vmem:[#allocation12_spill] sm:$0xff] %v8044_v61  ;;  %v8048_v29 = vmul.f32 %v7733_v49, %v11179_v41  ;;  %v11181_v54 = vld [vmem:[#allocation7_spill] sm:$0xff]  ;;  %v11184_v38 = vld [vmem:[#allocation9_spill] sm:$0xff]  ;;  %v8092_v51 = vadd.f32 %v924_v52, %v7767_v3 }
 0x3ce   :  { %v8052_v25 = vmul.f32 %v7733_v49, %v11181_v54  ;;  %v8062_v61 = vmul.f32 %v7733_v49, %v11184_v38  ;;  %v11185_v5 = vld [vmem:[#allocation10_spill] sm:$0xff]  ;;  %v5277_v57 = vld [vmem:[%s10776_s0 + $0x229] sm:$0xff]  ;;  %v8080_v38 = vadd.f32 %v920_v9, %v7751_v58  ;;  %v8098_v34 = vadd.f32 %v926_v37, %v7779_v8  ;;  %v8100_v58 = vpop.permute.xlu1 %3380  ;;  %3897 = vperm.xlu1 %5451, %v5278_v22   ;;  %v11199_v50 = vld [vmem:[#allocation25_spill] sm:$0xff] }
 0x3cf   :  { %11180 = vst [vmem:[#allocation13_spill] sm:$0xff] %v8048_v29  ;;  %v8066_v41 = vmul.f32 %v7733_v49, %v11185_v5  ;;  %v11187_v29 = vld [vmem:[#allocation20_spill] sm:$0xff]  ;;  %v8083_v49 = vadd.f32 %v923_v10, %v7755_v33  ;;  %v8086_v5 = vadd.f32 %v922_v42, %v7747_v18  ;;  %11188 = vst [vmem:[#allocation15_spill] sm:$0xff] %v8092_v51  ;;  %v8102_v9 = vpop.permute.xlu0 %3375  ;;  %v11194_v18 = vld [vmem:[#allocation21_spill] sm:$0xff]  ;;  %3892 = vperm.xlu0 %5450, %v5277_v57  }
 0x3d0   :  { %v928_v54 = vmul.f32 %v7986_v62, %v11187_v29  ;;  %v8089_v29 = vadd.f32 %v925_v26, %v7763_v17  ;;  %11190 = vst [vmem:[#allocation17_spill] sm:$0xff] %v8098_v34  ;;  %11191 = vst [vmem:[#allocation18_spill] sm:$0xff] %v8100_v58  ;;  %v8105_v33 = vadd.f32 %v929_v53, %v7783_v11  ;;  %v11195_v10 = vld [vmem:[#allocation22_spill] sm:$0xff]  ;;  %v11197_v8 = vld [vmem:[#allocation23_spill] sm:$0xff] }
 0x3d1   :  { %11186 = vst [vmem:[#allocation14_spill] sm:$0xff] %v8066_v41  ;;  %v8095_v41 = vadd.f32 %v927_v46, %v7771_v4  ;;  %11192 = vst [vmem:[#allocation6_spill] sm:$0xff] %v8102_v9  ;;  %v931_v17 = vmul.f32 %v7986_v62, %v11194_v18  ;;  %v930_v3 = vmul.f32 %v7986_v62, %v11195_v10  ;;  %v11198_v52 = vld [vmem:[#allocation24_spill] sm:$0xff]  ;;  %v5279_v37 = vld [vmem:[%s10776_s0 + $0x241] sm:$0xff] }
 0x3d2   :  { %11193 = vst [vmem:[#allocation7_spill] sm:$0xff] %v8105_v33  ;;  %v8112_v4 = vadd.f32 %v928_v54, %v7787_v12  ;;  %v933_v46 = vmul.f32 %v7986_v62, %v11197_v8  ;;  %v932_v26 = vmul.f32 %v7986_v62, %v11198_v52  ;;  %v935_v11 = vmul.f32 %v7986_v62, %v11199_v50  ;;  %v5280_v42 = vld [vmem:[%s10776_s0 + $0x249] sm:$0xff]  ;;  %v11200_v53 = vld [vmem:[#allocation26_spill] sm:$0xff]  ;;  %v11203_v10 = vld [vmem:[#allocation29_spill] sm:$0xff] }
 0x3d3   :  { %11189 = vst [vmem:[#allocation16_spill] sm:$0xff] %v8095_v41  ;;  %v934_v12 = vmul.f32 %v7986_v62, %v11200_v53  ;;  %v11201_v54 = vld [vmem:[#allocation27_spill] sm:$0xff]  ;;  %v11202_v57 = vld [vmem:[#allocation28_spill] sm:$0xff]  ;;  %v939_v8 = vmul.f32 %v7986_v62, %v11203_v10  ;;  %v11204_v52 = vld [vmem:[#allocation30_spill] sm:$0xff]  ;;  %v8142_v41 = vpop.permute.xlu1 %3390  ;;  %v8150_v10 = vadd.f32 %v930_v3, %v7795_v7  ;;  %3907 = vperm.xlu1 %5451, %v5280_v42  }
 0x3d4   :  { %11196 = vst [vmem:[#allocation19_spill] sm:$0xff] %v8112_v4  ;;  %v937_v22 = vmul.f32 %v7986_v62, %v11201_v54  ;;  %v936_v18 = vmul.f32 %v7986_v62, %v11202_v57  ;;  %v938_v50 = vmul.f32 %v7986_v62, %v11204_v52  ;;  %v11205_v9 = vld [vmem:[#allocation31_spill] sm:$0xff]  ;;  %v11206_v4 = vld [vmem:[#allocation32_spill] sm:$0xff]  ;;  %v11207_v34 = vld [vmem:[#allocation33_spill] sm:$0xff]  ;;  %v8144_v54 = vpop.permute.xlu0 %3385  ;;  %v8147_v57 = vadd.f32 %v931_v17, %v7791_v15 }
 0x3d5   :  { %v941_v58 = vmul.f32 %v7986_v62, %v11205_v9  ;;  %v940_v33 = vmul.f32 %v7986_v62, %v11206_v4  ;;  %v943_v53 = vmul.f32 %v7986_v62, %v11207_v34  ;;  %11208 = vst [vmem:[#allocation8_spill] sm:$0xff] %v8142_v41  ;;  %11209 = vst [vmem:[#allocation9_spill] sm:$0xff] %v8144_v54  ;;  %v11210_v52 = vld [vmem:[#allocation34_spill] sm:$0xff]  ;;  %3902 = vperm.xlu0 %5450, %v5279_v37   ;;  %v11211_v54 = vld [vmem:[#allocation35_spill] sm:$0xff] }
 0x3d6   :  { %v942_v51 = vmul.f32 %v7986_v62, %v11210_v52  ;;  %v8155_v9 = vadd.f32 %v933_v46, %v7799_v16  ;;  %v8158_v34 = vadd.f32 %v932_v26, %v7803_v19  ;;  %v8161_v4 = vadd.f32 %v935_v11, %v7813_v24  ;;  %v5282_v7 = vld [vmem:[%s10776_s0 + $0x261] sm:$0xff]  ;;  %v5281_v17 = vld [vmem:[%s10776_s0 + $0x259] sm:$0xff] }
 0x3d7   :  { %v945_v15 = vmul.f32 %v7986_v62, %v11211_v54  ;;  %v8172_v16 = vadd.f32 %v934_v12, %v7817_v27  ;;  %v8175_v19 = vadd.f32 %v937_v22, %v7821_v28  ;;  %v8178_v24 = vadd.f32 %v936_v18, %v7825_v1  ;;  %v8195_v28 = vpop.permute.xlu1 %3400  ;;  %v11215_v37 = vld [vmem:[#allocation37_spill] sm:$0xff]  ;;  %3917 = vperm.xlu1 %5451, %v5282_v7   ;;  %v11218_v22 = vld [vmem:[#allocation40_spill] sm:$0xff]  ;;  %v11221_v54 = vld [vmem:[#allocation43_spill] sm:$0xff] }
 0x3d8   :  { %v8181_v3 = vadd.f32 %v939_v8, %v7829_v2  ;;  %v8184_v46 = vadd.f32 %v938_v50, %v7833_v31  ;;  %v8187_v26 = vadd.f32 %v941_v58, %v7837_v32  ;;  %v8190_v11 = vadd.f32 %v940_v33, %v7841_v35  ;;  %11212 = vst [vmem:[#allocation10_spill] sm:$0xff] %v8195_v28  ;;  %v8197_v42 = vpop.permute.xlu0 %3395  ;;  %v11214_v2 = vld [vmem:[#allocation36_spill] sm:$0xff]  ;;  %v11217_v33 = vld [vmem:[#allocation39_spill] sm:$0xff]  ;;  %v11219_v8 = vld [vmem:[#allocation41_spill] sm:$0xff] }
 0x3d9   :  { %v8193_v27 = vadd.f32 %v943_v53, %v7849_v39  ;;  %11213 = vst [vmem:[#allocation20_spill] sm:$0xff] %v8197_v42  ;;  %v8200_v1 = vadd.f32 %v942_v51, %v7853_v40  ;;  %v944_v31 = vmul.f32 %v7986_v62, %v11214_v2  ;;  %v947_v32 = vmul.f32 %v7986_v62, %v11215_v37  ;;  %v11216_v39 = vld [vmem:[#allocation38_spill] sm:$0xff]  ;;  %v5283_v18 = vld [vmem:[%s10776_s0 + $0x271] sm:$0xff] }
 0x3da   :  { %3912 = vperm.xlu0 %5450, %v5281_v17   ;;  %v8207_v35 = vadd.f32 %v945_v15, %v7857_v43  ;;  %v946_v58 = vmul.f32 %v7986_v62, %v11216_v39  ;;  %v949_v12 = vmul.f32 %v7986_v62, %v11217_v33  ;;  %v948_v40 = vmul.f32 %v7986_v62, %v11218_v22  ;;  %v5284_v51 = vld [vmem:[%s10776_s0 + $0x279] sm:$0xff]  ;;  %v11222_v15 = vld [vmem:[#allocation44_spill] sm:$0xff]  ;;  %v11225_v33 = vld [vmem:[#allocation47_spill] sm:$0xff] }
 0x3db   :  { %v951_v43 = vmul.f32 %v7986_v62, %v11219_v8  ;;  %v11220_v50 = vld [vmem:[#allocation42_spill] sm:$0xff]  ;;  %v953_v52 = vmul.f32 %v7986_v62, %v11221_v54  ;;  %v952_v7 = vmul.f32 %v7986_v62, %v11222_v15  ;;  %v11223_v17 = vld [vmem:[#allocation45_spill] sm:$0xff]  ;;  %v957_v22 = vmul.f32 %v7986_v62, %v11225_v33  ;;  %v11226_v42 = vld [vmem:[#allocation48_spill] sm:$0xff]  ;;  %v8237_v28 = vpop.permute.xlu1 %3410  ;;  %3927 = vperm.xlu1 %5451, %v5284_v51  }
 0x3dc   :  { %v950_v53 = vmul.f32 %v7986_v62, %v11220_v50  ;;  %v955_v2 = vmul.f32 %v7986_v62, %v11223_v17  ;;  %v11224_v37 = vld [vmem:[#allocation46_spill] sm:$0xff]  ;;  %v956_v8 = vmul.f32 %v7986_v62, %v11226_v42  ;;  %11227 = vst [vmem:[#allocation21_spill] sm:$0xff] %v8237_v28  ;;  %v8239_v50 = vpop.permute.xlu0 %3405  ;;  %v8242_v54 = vadd.f32 %v944_v31, %v7861_v44  ;;  %v11229_v17 = vld [vmem:[#allocation49_spill] sm:$0xff] }
 0x3dd   :  { %v954_v39 = vmul.f32 %v7986_v62, %v11224_v37  ;;  %11228 = vst [vmem:[#allocation22_spill] sm:$0xff] %v8239_v50  ;;  %v8245_v15 = vadd.f32 %v947_v32, %v7865_v36  ;;  %v959_v41 = vmul.f32 %v7986_v62, %v11229_v17  ;;  %v8250_v37 = vadd.f32 %v946_v58, %v7869_v47  ;;  %v11230_v50 = vld [vmem:[#allocation50_spill] sm:$0xff]  ;;  %v5304_v31 = vld [vmem:[%s10776_s0 + $0x32] sm:$0xff] }
 0x3de   :  { %3922 = vperm.xlu0 %5450, %v5283_v18   ;;  %v8253_v42 = vadd.f32 %v949_v12, %v7873_v48  ;;  %v8256_v33 = vadd.f32 %v948_v40, %v7883_v55  ;;  %v958_v44 = vmul.f32 %v7986_v62, %v11230_v50  ;;  %v5305_v36 = vld [vmem:[%s10776_s0 + $0x3a] sm:$0xff]  ;;  %v8267_v47 = vadd.f32 %v951_v43, %v7887_v56  ;;  %v11236_v18 = vld [vmem:[#allocation52_spill] sm:$0xff] }
 0x3df   :  { %v8270_v48 = vadd.f32 %v950_v53, %v7891_v59  ;;  %v8273_v55 = vadd.f32 %v953_v52, %v7895_v20  ;;  %v8276_v32 = vadd.f32 %v952_v7, %v7899_v23  ;;  %v8279_v58 = vadd.f32 %v955_v2, %v7903_v60  ;;  %v8290_v59 = vpop.permute.xlu1 %3420  ;;  %v11235_v23 = vld [vmem:[#allocation51_spill] sm:$0xff]  ;;  %4224 = vperm.xlu1 %5451, %v5305_v36   ;;  %v11239_v53 = vld [vmem:[#allocation54_spill] sm:$0xff] }
 0x3e0   :  { %v8282_v12 = vadd.f32 %v954_v39, %v7907_v63  ;;  %v8285_v40 = vadd.f32 %v957_v22, %v7911_v0  ;;  %v8288_v56 = vadd.f32 %v956_v8, %v7919_v6  ;;  %11232 = vst [vmem:[#allocation24_spill] sm:$0xff] %v8290_v59  ;;  %v8292_v51 = vpop.permute.xlu0 %3415  ;;  %v8295_v20 = vadd.f32 %v959_v41, %v7923_v13  ;;  %v11238_v6 = vld [vmem:[#allocation53_spill] sm:$0xff]  ;;  %v11240_v7 = vld [vmem:[#allocation55_spill] sm:$0xff]  ;;  %v11241_v39 = vld [vmem:[#allocation56_spill] sm:$0xff] }
 0x3e1   :  { %11233 = vst [vmem:[#allocation25_spill] sm:$0xff] %v8292_v51  ;;  %v961_v60 = vmul.f32 %v7986_v62, %v11235_v23  ;;  %v960_v63 = vmul.f32 %v7986_v62, %v11236_v18  ;;  %v8302_v0 = vadd.f32 %v958_v44, %v7927_v14  ;;  %v963_v43 = vmul.f32 %v7986_v62, %v11238_v6  ;;  %v5307_v41 = vld [vmem:[%s10776_s0 + $0x52] sm:$0xff]  ;;  %v5306_v2 = vld [vmem:[%s10776_s0 + $0x4a] sm:$0xff]  ;;  %v11243_v50 = vld [vmem:[#allocation58_spill] sm:$0xff] }
 0x3e2   :  { %11231 = vst [vmem:[#allocation23_spill] sm:$0xff] %v8288_v56  ;;  %11234 = vst [vmem:[#allocation26_spill] sm:$0xff] %v8295_v20  ;;  %4219 = vperm.xlu0 %5450, %v5304_v31   ;;  %v962_v52 = vmul.f32 %v7986_v62, %v11239_v53  ;;  %v965_v13 = vmul.f32 %v7986_v62, %v11240_v7  ;;  %v964_v14 = vmul.f32 %v7986_v62, %v11241_v39  ;;  %v11242_v22 = vld [vmem:[#allocation57_spill] sm:$0xff]  ;;  %v11244_v44 = vld [vmem:[#allocation59_spill] sm:$0xff] }
 0x3e3   :  { %11237 = vst [vmem:[#allocation27_spill] sm:$0xff] %v8302_v0  ;;  %v967_v8 = vmul.f32 %v7986_v62, %v11242_v22  ;;  %v966_v17 = vmul.f32 %v7986_v62, %v11243_v50  ;;  %v969_v36 = vmul.f32 %v7986_v62, %v11244_v44  ;;  %v11245_v31 = vld [vmem:[#allocation60_spill] sm:$0xff]  ;;  %v11246_v18 = vld [vmem:[#allocation61_spill] sm:$0xff]  ;;  %v11247_v53 = vld [vmem:[#allocation62_spill] sm:$0xff]  ;;  %v8332_v59 = vpop.permute.xlu1 %3430  ;;  %v8337_v50 = vadd.f32 %v961_v60, %v7931_v21 }
 0x3e4   :  { %v968_v23 = vmul.f32 %v7986_v62, %v11245_v31  ;;  %v971_v6 = vmul.f32 %v7986_v62, %v11246_v18  ;;  %v970_v7 = vmul.f32 %v7986_v62, %v11247_v53  ;;  %v11248_v51 = vld [vmem:[#allocation63_spill] sm:$0xff]  ;;  %11249 = vst [vmem:[#allocation28_spill] sm:$0xff] %v8332_v59  ;;  %v8334_v22 = vpop.permute.xlu0 %3425  ;;  %v11252_v44 = vld [vmem:[#allocation365_spill] sm:$0xff]  ;;  %v11254_v31 = vld [vmem:[#allocation64_spill] sm:$0xff]  ;;  %4234 = vperm.xlu1 %5451, %v5307_v41  }
 0x3e5   :  { %v973_v39 = vmul.f32 %v7986_v62, %v11248_v51  ;;  %11250 = vst [vmem:[#allocation29_spill] sm:$0xff] %v8334_v22  ;;  %11251 = vst [vmem:[#allocation30_spill] sm:$0xff] %v8337_v50  ;;  %v8340_v28 = vadd.f32 %v960_v63, %v11252_v44  ;;  %v972_v0 = vmul.f32 %v7986_v62, %v11254_v31  ;;  %v11255_v18 = vld [vmem:[#allocation366_spill] sm:$0xff]  ;;  %v11257_v20 = vld [vmem:[#allocation367_spill] sm:$0xff] }
 0x3e6   :  { %4229 = vperm.xlu0 %5450, %v5306_v2   ;;  %v8345_v53 = vadd.f32 %v963_v43, %v11255_v18  ;;  %v8348_v51 = vadd.f32 %v962_v52, %v11257_v20  ;;  %v11259_v59 = vld [vmem:[#allocation368_spill] sm:$0xff]  ;;  %v11261_v22 = vld [vmem:[#allocation65_spill] sm:$0xff]  ;;  %v5336_v63 = vld [vmem:[%s10776_s0 + $0x1e2] sm:$0xff] }
 0x3e7   :  { %11253 = vst [vmem:[#allocation31_spill] sm:$0xff] %v8340_v28  ;;  %v8351_v56 = vadd.f32 %v965_v13, %v11259_v59  ;;  %v975_v21 = vmul.f32 %v7986_v62, %v11261_v22  ;;  %v5337_v60 = vld [vmem:[%s10776_s0 + $0x1ea] sm:$0xff]  ;;  %v11262_v41 = vld [vmem:[#allocation369_spill] sm:$0xff]  ;;  %v11264_v2 = vld [vmem:[#allocation370_spill] sm:$0xff] }
 0x3e8   :  { %11256 = vst [vmem:[#allocation32_spill] sm:$0xff] %v8345_v53  ;;  %11258 = vst [vmem:[#allocation33_spill] sm:$0xff] %v8348_v51  ;;  %v8362_v43 = vadd.f32 %v964_v14, %v11262_v41  ;;  %v8365_v20 = vadd.f32 %v967_v8, %v11264_v2  ;;  %v11266_v52 = vld [vmem:[#allocation371_spill] sm:$0xff]  ;;  %v11268_v13 = vld [vmem:[#allocation372_spill] sm:$0xff]  ;;  %v8385_v8 = vpop.permute.xlu1 %3440  ;;  %v8387_v2 = vpop.permute.xlu0 %3435  ;;  %4384 = vperm.xlu1 %5451, %v5337_v60  }
 0x3e9   :  { %11260 = vst [vmem:[#allocation34_spill] sm:$0xff] %v8351_v56  ;;  %v8368_v59 = vadd.f32 %v966_v17, %v11266_v52  ;;  %v8371_v44 = vadd.f32 %v969_v36, %v11268_v13  ;;  %v11270_v22 = vld [vmem:[#allocation373_spill] sm:$0xff]  ;;  %v11272_v18 = vld [vmem:[#allocation374_spill] sm:$0xff]  ;;  %v11274_v51 = vld [vmem:[#allocation375_spill] sm:$0xff] }
 0x3ea   :  { %11263 = vst [vmem:[#allocation35_spill] sm:$0xff] %v8362_v43  ;;  %11265 = vst [vmem:[#allocation36_spill] sm:$0xff] %v8365_v20  ;;  %v8374_v31 = vadd.f32 %v968_v23, %v11270_v22  ;;  %v8377_v56 = vadd.f32 %v971_v6, %v11272_v18  ;;  %v8380_v53 = vadd.f32 %v970_v7, %v11274_v51  ;;  %v11276_v14 = vld [vmem:[#allocation378_spill] sm:$0xff]  ;;  %v11280_v17 = vld [vmem:[#allocation379_spill] sm:$0xff]  ;;  %4379 = vperm.xlu0 %5450, %v5336_v63  }
 0x3eb   :  { %11267 = vst [vmem:[#allocation37_spill] sm:$0xff] %v8368_v59  ;;  %11269 = vst [vmem:[#allocation38_spill] sm:$0xff] %v8371_v44  ;;  %v8383_v41 = vadd.f32 %v973_v39, %v11276_v14  ;;  %v8390_v52 = vadd.f32 %v972_v0, %v11280_v17  ;;  %v11282_v36 = vld [vmem:[#allocation66_spill] sm:$0xff]  ;;  %v11283_v13 = vld [vmem:[#allocation67_spill] sm:$0xff] }
 0x3ec   :  { %11271 = vst [vmem:[#allocation39_spill] sm:$0xff] %v8374_v31  ;;  %11273 = vst [vmem:[#allocation40_spill] sm:$0xff] %v8377_v56  ;;  %v974_v23 = vmul.f32 %v7986_v62, %v11282_v36  ;;  %v977_v6 = vmul.f32 %v7986_v62, %v11283_v13  ;;  %v8399_v7 = vld [vmem:[%s10777_s1 + $0x2] ss:$0 sm:$0xff]  ;;  %v11284_v39 = vld [vmem:[#allocation380_spill] sm:$0xff]  ;;  %v8432_v59 = vpop.permute.xlu1 %3450 }
 0x3ed   :  { %11275 = vst [vmem:[#allocation41_spill] sm:$0xff] %v8380_v53  ;;  %11277 = vst [vmem:[#allocation42_spill] sm:$0xff] %v8383_v41  ;;  %v8402_v51 = vadd.f32 %v975_v21, %v11284_v39  ;;  %v11286_v22 = vld [vmem:[#allocation68_spill] sm:$0xff]  ;;  %v11287_v18 = vld [vmem:[#allocation69_spill] sm:$0xff] }
 0x3ee   :  { %11278 = vst [vmem:[#allocation43_spill] sm:$0xff] %v8385_v8  ;;  %11279 = vst [vmem:[#allocation44_spill] sm:$0xff] %v8387_v2  ;;  %v976_v0 = vmul.f32 %v7986_v62, %v11286_v22  ;;  %v979_v14 = vmul.f32 %v7986_v62, %v11287_v18  ;;  %v11288_v17 = vld [vmem:[#allocation70_spill] sm:$0xff]  ;;  %v11289_v63 = vld [vmem:[#allocation71_spill] sm:$0xff] }
 0x3ef   :  { %11281 = vst [vmem:[#allocation45_spill] sm:$0xff] %v8390_v52  ;;  %11285 = vst [vmem:[#allocation46_spill] sm:$0xff] %v8402_v51  ;;  %v978_v36 = vmul.f32 %v7986_v62, %v11288_v17  ;;  %v5339_v13 = vld [vmem:[%s10776_s0 + $0x202] sm:$0xff]  ;;  %v5338_v60 = vld [vmem:[%s10776_s0 + $0x1fa] sm:$0xff]  ;;  %v981_v21 = vmul.f32 %v7986_v62, %v11289_v63 }
 0x3f0   :  { %v11290_v39 = vld [vmem:[#allocation72_spill] sm:$0xff]  ;;  %v11291_v2 = vld [vmem:[#allocation73_spill] sm:$0xff]  ;;  %v11292_v8 = vld [vmem:[#allocation74_spill] sm:$0xff]  ;;  %11297 = vst [vmem:[#allocation47_spill] sm:$0xff] %v8432_v59  ;;  %4394 = vperm.xlu1 %5451, %v5339_v13   ;;  %4389 = vperm.xlu0 %5450, %v5338_v60  }
 0x3f1   :  { %v980_v22 = vmul.f32 %v7986_v62, %v11290_v39  ;;  %v983_v18 = vmul.f32 %v7986_v62, %v11291_v2  ;;  %v982_v17 = vmul.f32 %v7986_v62, %v11292_v8  ;;  %v11293_v51 = vld [vmem:[#allocation75_spill] sm:$0xff]  ;;  %v11294_v41 = vld [vmem:[#allocation76_spill] sm:$0xff]  ;;  %v11295_v56 = vld [vmem:[#allocation77_spill] sm:$0xff]  ;;  %v8434_v39 = vpop.permute.xlu0 %3445 }
 0x3f2   :  { %v1438_v52 = vmul.f32 %v8399_v7, %v11293_v51  ;;  %v1437_v53 = vmul.f32 %v8399_v7, %v11294_v41  ;;  %v1440_v31 = vmul.f32 %v8399_v7, %v11295_v56  ;;  %v11296_v44 = vld [vmem:[#allocation78_spill] sm:$0xff]  ;;  %11298 = vst [vmem:[#allocation48_spill] sm:$0xff] %v8434_v39  ;;  %v11300_v62 = vld [vmem:[#allocation3_spill] sm:$0xff]  ;;  %v11302_v41 = vld [vmem:[#allocation4_spill] sm:$0xff] }
 0x3f3   :  { %v1439_v63 = vmul.f32 %v8399_v7, %v11296_v44  ;;  %v11299_v2 = vld [vmem:[#allocation2_spill] sm:$0xff]  ;;  %v8440_v8 = vadd.f32 %v977_v6, %v11300_v62  ;;  %v11301_v51 = vld [vmem:[#allocation79_spill] sm:$0xff]  ;;  %v8445_v56 = vadd.f32 %v976_v0, %v11302_v41  ;;  %v11303_v28 = vld [vmem:[#allocation5_spill] sm:$0xff]  ;;  %v8462_v0 = vadd.f32 %v981_v21, %v8052_v25 }
 0x3f4   :  { %v8437_v20 = vadd.f32 %v974_v23, %v11299_v2  ;;  %v1442_v43 = vmul.f32 %v8399_v7, %v11301_v51  ;;  %v8448_v44 = vadd.f32 %v979_v14, %v11303_v28  ;;  %v11304_v59 = vld [vmem:[#allocation13_spill] sm:$0xff]  ;;  %v11305_v39 = vld [vmem:[#allocation80_spill] sm:$0xff]  ;;  %v5308_v13 = vld [vmem:[%s10776_s0 + $0x62] sm:$0xff]  ;;  %v8465_v28 = vadd.f32 %v980_v22, %v8058_v45  ;;  %v8485_v45 = vpop.permute.xlu1 %3460 }
 0x3f5   :  { %v8451_v50 = vadd.f32 %v978_v36, %v11304_v59  ;;  %v1441_v23 = vmul.f32 %v8399_v7, %v11305_v39  ;;  %v5309_v6 = vld [vmem:[%s10776_s0 + $0x6a] sm:$0xff]  ;;  %v8468_v59 = vadd.f32 %v983_v18, %v8062_v61  ;;  %v11306_v14 = vld [vmem:[#allocation14_spill] sm:$0xff]  ;;  %v8474_v60 = vadd.f32 %v1438_v52, %v8077_v30  ;;  %11311 = vst [vmem:[#allocation53_spill] sm:$0xff] %v8485_v45  ;;  %v8487_v21 = vpop.permute.xlu0 %3455  ;;  %v11314_v22 = vld [vmem:[#allocation81_spill] sm:$0xff] }
 0x3f6   :  { %v8471_v36 = vadd.f32 %v982_v17, %v11306_v14  ;;  %v8477_v39 = vadd.f32 %v1437_v53, %v8080_v38  ;;  %v8480_v2 = vadd.f32 %v1440_v31, %v8083_v49  ;;  %v8483_v25 = vadd.f32 %v1439_v63, %v8086_v5  ;;  %11312 = vst [vmem:[#allocation54_spill] sm:$0xff] %v8487_v21  ;;  %v11315_v52 = vld [vmem:[#allocation82_spill] sm:$0xff]  ;;  %v11316_v49 = vld [vmem:[#allocation15_spill] sm:$0xff]  ;;  %v11319_v18 = vld [vmem:[#allocation84_spill] sm:$0xff] }
 0x3f7   :  { %11307 = vst [vmem:[#allocation49_spill] sm:$0xff] %v8474_v60  ;;  %v8490_v61 = vadd.f32 %v1442_v43, %v8089_v29  ;;  %v1444_v30 = vmul.f32 %v8399_v7, %v11314_v22  ;;  %v1443_v38 = vmul.f32 %v8399_v7, %v11315_v52  ;;  %4244 = vperm.xlu1 %5451, %v5309_v6   ;;  %v11318_v5 = vld [vmem:[#allocation83_spill] sm:$0xff]  ;;  %v11320_v63 = vld [vmem:[#allocation85_spill] sm:$0xff]  ;;  %v11321_v51 = vld [vmem:[#allocation86_spill] sm:$0xff] }
 0x3f8   :  { %11308 = vst [vmem:[#allocation50_spill] sm:$0xff] %v8477_v39  ;;  %11309 = vst [vmem:[#allocation51_spill] sm:$0xff] %v8480_v2  ;;  %4239 = vperm.xlu0 %5450, %v5308_v13   ;;  %v8497_v53 = vadd.f32 %v1441_v23, %v11316_v49  ;;  %v1446_v31 = vmul.f32 %v8399_v7, %v11318_v5  ;;  %v1445_v17 = vmul.f32 %v8399_v7, %v11319_v18  ;;  %v5341_v43 = vld [vmem:[%s10776_s0 + $0x21a] sm:$0xff]  ;;  %v5340_v62 = vld [vmem:[%s10776_s0 + $0x212] sm:$0xff] }
 0x3f9   :  { %11310 = vst [vmem:[#allocation52_spill] sm:$0xff] %v8483_v25  ;;  %11313 = vst [vmem:[#allocation55_spill] sm:$0xff] %v8490_v61  ;;  %v1448_v29 = vmul.f32 %v8399_v7, %v11320_v63  ;;  %v1447_v41 = vmul.f32 %v8399_v7, %v11321_v51  ;;  %v11322_v23 = vld [vmem:[#allocation87_spill] sm:$0xff]  ;;  %v11323_v13 = vld [vmem:[#allocation88_spill] sm:$0xff]  ;;  %v8527_v61 = vpop.permute.xlu1 %3470 }
 0x3fa   :  { %11317 = vst [vmem:[#allocation56_spill] sm:$0xff] %v8497_v53  ;;  %v1450_v6 = vmul.f32 %v8399_v7, %v11322_v23  ;;  %v1449_v14 = vmul.f32 %v8399_v7, %v11323_v13  ;;  %v11324_v22 = vld [vmem:[#allocation89_spill] sm:$0xff]  ;;  %v11325_v49 = vld [vmem:[#allocation90_spill] sm:$0xff]  ;;  %v11326_v18 = vld [vmem:[#allocation91_spill] sm:$0xff]  ;;  %v8529_v23 = vpop.permute.xlu0 %3465 }
 0x3fb   :  { %v1452_v52 = vmul.f32 %v8399_v7, %v11324_v22  ;;  %v1451_v5 = vmul.f32 %v8399_v7, %v11325_v49  ;;  %v1454_v63 = vmul.f32 %v8399_v7, %v11326_v18  ;;  %v11327_v21 = vld [vmem:[#allocation92_spill] sm:$0xff]  ;;  %v11328_v53 = vld [vmem:[#allocation93_spill] sm:$0xff]  ;;  %11329 = vst [vmem:[#allocation57_spill] sm:$0xff] %v8527_v61  ;;  %11330 = vst [vmem:[#allocation58_spill] sm:$0xff] %v8529_v23  ;;  %4404 = vperm.xlu1 %5451, %v5341_v43  }
 0x3fc   :  { %v1453_v45 = vmul.f32 %v8399_v7, %v11327_v21  ;;  %v1456_v51 = vmul.f32 %v8399_v7, %v11328_v53  ;;  %v11331_v13 = vld [vmem:[#allocation16_spill] sm:$0xff]  ;;  %v11332_v22 = vld [vmem:[#allocation17_spill] sm:$0xff]  ;;  %v11333_v49 = vld [vmem:[#allocation94_spill] sm:$0xff]  ;;  %4399 = vperm.xlu0 %5450, %v5340_v62   ;;  %v8546_v61 = vadd.f32 %v1448_v29, %v8147_v57  ;;  %v8563_v57 = vadd.f32 %v1449_v14, %v8158_v34 }
 0x3fd   :  { %v8532_v25 = vadd.f32 %v1444_v30, %v11331_v13  ;;  %v8535_v2 = vadd.f32 %v1443_v38, %v11332_v22  ;;  %v1455_v39 = vmul.f32 %v8399_v7, %v11333_v49  ;;  %v11334_v18 = vld [vmem:[#allocation7_spill] sm:$0xff]  ;;  %v5310_v43 = vld [vmem:[%s10776_s0 + $0x7a] sm:$0xff]  ;;  %v8569_v29 = vadd.f32 %v1451_v5, %v8172_v16  ;;  %v11344_v5 = vld [vmem:[#allocation100_spill] sm:$0xff] }
 0x3fe   :  { %v8540_v21 = vadd.f32 %v1446_v31, %v11334_v18  ;;  %v11335_v60 = vld [vmem:[#allocation19_spill] sm:$0xff]  ;;  %v8557_v31 = vadd.f32 %v1447_v41, %v8150_v10  ;;  %v8572_v62 = vadd.f32 %v1454_v63, %v8175_v19  ;;  %v8578_v10 = vadd.f32 %v1456_v51, %v8181_v3  ;;  %v8582_v41 = vpop.permute.xlu0 %3475  ;;  %v11342_v3 = vld [vmem:[#allocation98_spill] sm:$0xff]  ;;  %v11345_v51 = vld [vmem:[#allocation101_spill] sm:$0xff] }
 0x3ff   :  { %v8543_v53 = vadd.f32 %v1445_v17, %v11335_v60  ;;  %v11336_v23 = vld [vmem:[#allocation95_spill] sm:$0xff]  ;;  %v8560_v60 = vadd.f32 %v1450_v6, %v8155_v9  ;;  %v8566_v17 = vadd.f32 %v1452_v52, %v8161_v4  ;;  %v8580_v9 = vpop.permute.xlu1 %3480  ;;  %11338 = vst [vmem:[#allocation60_spill] sm:$0xff] %v8582_v41  ;;  %v8585_v34 = vadd.f32 %v1455_v39, %v8184_v46  ;;  %v11339_v4 = vld [vmem:[#allocation96_spill] sm:$0xff]  ;;  %v11340_v6 = vld [vmem:[#allocation97_spill] sm:$0xff] }
 0x400   :  { %v1458_v30 = vmul.f32 %v8399_v7, %v11336_v23  ;;  %v5311_v38 = vld [vmem:[%s10776_s0 + $0x82] sm:$0xff]  ;;  %v8575_v23 = vadd.f32 %v1453_v45, %v8178_v24  ;;  %11337 = vst [vmem:[#allocation59_spill] sm:$0xff] %v8580_v9  ;;  %v1457_v16 = vmul.f32 %v8399_v7, %v11339_v4  ;;  %v1460_v19 = vmul.f32 %v8399_v7, %v11340_v6  ;;  %v5343_v39 = vld [vmem:[%s10776_s0 + $0x232] sm:$0xff]  ;;  %v5342_v63 = vld [vmem:[%s10776_s0 + $0x22a] sm:$0xff] }
 0x401   :  { %4254 = vperm.xlu1 %5451, %v5311_v38   ;;  %4249 = vperm.xlu0 %5450, %v5310_v43   ;;  %v1459_v45 = vmul.f32 %v8399_v7, %v11342_v3  ;;  %v11343_v14 = vld [vmem:[#allocation99_spill] sm:$0xff]  ;;  %v1461_v46 = vmul.f32 %v8399_v7, %v11344_v5  ;;  %v11346_v13 = vld [vmem:[#allocation102_spill] sm:$0xff]  ;;  %v11349_v43 = vld [vmem:[#allocation105_spill] sm:$0xff] }
 0x402   :  { %v8592_v24 = vadd.f32 %v1458_v30, %v8187_v26  ;;  %v1462_v52 = vmul.f32 %v8399_v7, %v11343_v14  ;;  %v1464_v26 = vmul.f32 %v8399_v7, %v11345_v51  ;;  %v1463_v22 = vmul.f32 %v8399_v7, %v11346_v13  ;;  %v11347_v49 = vld [vmem:[#allocation103_spill] sm:$0xff]  ;;  %v11348_v30 = vld [vmem:[#allocation104_spill] sm:$0xff]  ;;  %v11350_v6 = vld [vmem:[#allocation106_spill] sm:$0xff]  ;;  %v8624_v13 = vpop.permute.xlu0 %3485 }
 0x403   :  { %v1466_v18 = vmul.f32 %v8399_v7, %v11347_v49  ;;  %v1465_v38 = vmul.f32 %v8399_v7, %v11348_v30  ;;  %v1468_v4 = vmul.f32 %v8399_v7, %v11349_v43  ;;  %v1467_v3 = vmul.f32 %v8399_v7, %v11350_v6  ;;  %v11351_v14 = vld [vmem:[#allocation107_spill] sm:$0xff]  ;;  %v11352_v41 = vld [vmem:[#allocation108_spill] sm:$0xff]  ;;  %v8622_v9 = vpop.permute.xlu1 %3490  ;;  %11354 = vst [vmem:[#allocation63_spill] sm:$0xff] %v8624_v13  ;;  %v11355_v43 = vld [vmem:[#allocation109_spill] sm:$0xff] }
 0x404   :  { %11341 = vst [vmem:[#allocation61_spill] sm:$0xff] %v8592_v24  ;;  %v1470_v5 = vmul.f32 %v8399_v7, %v11351_v14  ;;  %v1469_v51 = vmul.f32 %v8399_v7, %v11352_v41  ;;  %11353 = vst [vmem:[#allocation62_spill] sm:$0xff] %v8622_v9  ;;  %v8627_v49 = vadd.f32 %v1457_v16, %v8190_v11  ;;  %v11356_v13 = vld [vmem:[#allocation110_spill] sm:$0xff]  ;;  %v5312_v16 = vld [vmem:[%s10776_s0 + $0x92] sm:$0xff] }
 0x405   :  { %v8630_v30 = vadd.f32 %v1460_v19, %v8193_v27  ;;  %v1472_v24 = vmul.f32 %v8399_v7, %v11355_v43  ;;  %4414 = vperm.xlu1 %5451, %v5343_v39   ;;  %4409 = vperm.xlu0 %5450, %v5342_v63   ;;  %v8635_v6 = vadd.f32 %v1459_v45, %v8200_v1  ;;  %v5313_v27 = vld [vmem:[%s10776_s0 + $0x9a] sm:$0xff]  ;;  %v11362_v63 = vld [vmem:[#allocation112_spill] sm:$0xff] }
 0x406   :  { %v8638_v41 = vadd.f32 %v1462_v52, %v8207_v35  ;;  %v8641_v14 = vadd.f32 %v1461_v46, %v8242_v54  ;;  %v1471_v11 = vmul.f32 %v8399_v7, %v11356_v13  ;;  %v8652_v1 = vadd.f32 %v1464_v26, %v8245_v15  ;;  %v8677_v39 = vpop.permute.xlu0 %3495  ;;  %v11369_v13 = vld [vmem:[#allocation118_spill] sm:$0xff] }
 0x407   :  { %v8655_v35 = vadd.f32 %v1463_v22, %v8250_v37  ;;  %v8658_v54 = vadd.f32 %v1466_v18, %v8253_v42  ;;  %v8661_v19 = vadd.f32 %v1465_v38, %v8256_v33  ;;  %v8664_v45 = vadd.f32 %v1468_v4, %v8267_v47  ;;  %v8675_v37 = vpop.permute.xlu1 %3500  ;;  %11359 = vst [vmem:[#allocation366_spill] sm:$0xff] %v8677_v39  ;;  %v11361_v33 = vld [vmem:[#allocation111_spill] sm:$0xff]  ;;  %v11365_v22 = vld [vmem:[#allocation114_spill] sm:$0xff] }
 0x408   :  { %v8667_v52 = vadd.f32 %v1467_v3, %v8270_v48  ;;  %v8670_v46 = vadd.f32 %v1470_v5, %v8273_v55  ;;  %v8673_v15 = vadd.f32 %v1469_v51, %v8276_v32  ;;  %11358 = vst [vmem:[#allocation64_spill] sm:$0xff] %v8675_v37  ;;  %v8680_v42 = vadd.f32 %v1472_v24, %v8279_v58  ;;  %v11364_v32 = vld [vmem:[#allocation113_spill] sm:$0xff]  ;;  %v11366_v38 = vld [vmem:[#allocation115_spill] sm:$0xff]  ;;  %v11367_v3 = vld [vmem:[#allocation116_spill] sm:$0xff] }
 0x409   :  { %v1474_v47 = vmul.f32 %v8399_v7, %v11361_v33  ;;  %v1473_v48 = vmul.f32 %v8399_v7, %v11362_v63  ;;  %4264 = vperm.xlu1 %5451, %v5313_v27   ;;  %4259 = vperm.xlu0 %5450, %v5312_v16   ;;  %v8687_v55 = vadd.f32 %v1471_v11, %v8282_v12  ;;  %v5345_v24 = vld [vmem:[%s10776_s0 + $0x24a] sm:$0xff]  ;;  %v5344_v4 = vld [vmem:[%s10776_s0 + $0x242] sm:$0xff]  ;;  %v11368_v5 = vld [vmem:[#allocation117_spill] sm:$0xff] }
 0x40a   :  { %11357 = vst [vmem:[#allocation365_spill] sm:$0xff] %v8673_v15  ;;  %11360 = vst [vmem:[#allocation367_spill] sm:$0xff] %v8680_v42  ;;  %v1476_v26 = vmul.f32 %v8399_v7, %v11364_v32  ;;  %v1475_v18 = vmul.f32 %v8399_v7, %v11365_v22  ;;  %v1478_v58 = vmul.f32 %v8399_v7, %v11366_v38  ;;  %v11370_v11 = vld [vmem:[#allocation119_spill] sm:$0xff]  ;;  %v11371_v16 = vld [vmem:[#allocation120_spill] sm:$0xff] }
 0x40b   :  { %11363 = vst [vmem:[#allocation368_spill] sm:$0xff] %v8687_v55  ;;  %v1477_v12 = vmul.f32 %v8399_v7, %v11367_v3  ;;  %v1480_v51 = vmul.f32 %v8399_v7, %v11368_v5  ;;  %v1479_v43 = vmul.f32 %v8399_v7, %v11369_v13  ;;  %v1482_v27 = vmul.f32 %v8399_v7, %v11370_v11  ;;  %v11372_v63 = vld [vmem:[#allocation121_spill] sm:$0xff]  ;;  %v11373_v22 = vld [vmem:[#allocation122_spill] sm:$0xff]  ;;  %v11374_v39 = vld [vmem:[#allocation123_spill] sm:$0xff]  ;;  %v8717_v37 = vpop.permute.xlu1 %3707  ;;  %v8719_v5 = vpop.permute.xlu0 %3702 }
 0x40c   :  { %v1481_v33 = vmul.f32 %v8399_v7, %v11371_v16  ;;  %v1484_v32 = vmul.f32 %v8399_v7, %v11372_v63  ;;  %v1483_v38 = vmul.f32 %v8399_v7, %v11373_v22  ;;  %v1486_v3 = vmul.f32 %v8399_v7, %v11374_v39  ;;  %11375 = vst [vmem:[#allocation65_spill] sm:$0xff] %v8717_v37  ;;  %v11378_v11 = vld [vmem:[#allocation23_spill] sm:$0xff]  ;;  %v11380_v16 = vld [vmem:[#allocation124_spill] sm:$0xff]  ;;  %v11381_v63 = vld [vmem:[#allocation26_spill] sm:$0xff] }
 0x40d   :  { %11376 = vst [vmem:[#allocation369_spill] sm:$0xff] %v8719_v5  ;;  %v8722_v13 = vadd.f32 %v1474_v47, %v8285_v40  ;;  %v8725_v9 = vadd.f32 %v1473_v48, %v11378_v11  ;;  %v1485_v55 = vmul.f32 %v8399_v7, %v11380_v16  ;;  %4424 = vperm.xlu1 %5451, %v5345_v24   ;;  %v11383_v42 = vld [vmem:[#allocation27_spill] sm:$0xff]  ;;  %v11385_v37 = vld [vmem:[#allocation30_spill] sm:$0xff]  ;;  %v11387_v5 = vld [vmem:[#allocation125_spill] sm:$0xff] }
 0x40e   :  { %4419 = vperm.xlu0 %5450, %v5344_v4   ;;  %v8730_v22 = vadd.f32 %v1476_v26, %v11381_v63  ;;  %v8733_v39 = vadd.f32 %v1475_v18, %v11383_v42  ;;  %v8736_v15 = vadd.f32 %v1478_v58, %v11385_v37  ;;  %v1488_v40 = vmul.f32 %v8399_v7, %v11387_v5  ;;  %v5315_v47 = vld [vmem:[%s10776_s0 + $0xb2] sm:$0xff]  ;;  %v5314_v48 = vld [vmem:[%s10776_s0 + $0xaa] sm:$0xff]  ;;  %v11394_v58 = vld [vmem:[#allocation34_spill] sm:$0xff] }
 0x40f   :  { %11377 = vst [vmem:[#allocation370_spill] sm:$0xff] %v8722_v13  ;;  %11379 = vst [vmem:[#allocation371_spill] sm:$0xff] %v8725_v9  ;;  %v11388_v24 = vld [vmem:[#allocation31_spill] sm:$0xff]  ;;  %v11390_v4 = vld [vmem:[#allocation32_spill] sm:$0xff]  ;;  %v8756_v11 = vadd.f32 %v1482_v27, %v11394_v58 }
 0x410   :  { %11382 = vst [vmem:[#allocation372_spill] sm:$0xff] %v8730_v22  ;;  %11384 = vst [vmem:[#allocation373_spill] sm:$0xff] %v8733_v39  ;;  %v8747_v26 = vadd.f32 %v1477_v12, %v11388_v24  ;;  %v8750_v42 = vadd.f32 %v1480_v51, %v11390_v4  ;;  %v11392_v18 = vld [vmem:[#allocation33_spill] sm:$0xff]  ;;  %v11396_v5 = vld [vmem:[#allocation35_spill] sm:$0xff]  ;;  %v8770_v51 = vpop.permute.xlu1 %3717  ;;  %v8772_v4 = vpop.permute.xlu0 %3712 }
 0x411   :  { %11386 = vst [vmem:[#allocation374_spill] sm:$0xff] %v8736_v15  ;;  %v8753_v37 = vadd.f32 %v1479_v43, %v11392_v18  ;;  %11395 = vst [vmem:[#allocation66_spill] sm:$0xff] %v8756_v11  ;;  %v8759_v16 = vadd.f32 %v1481_v33, %v11396_v5  ;;  %v11398_v63 = vld [vmem:[#allocation36_spill] sm:$0xff]  ;;  %v11400_v39 = vld [vmem:[#allocation37_spill] sm:$0xff]  ;;  %4274 = vperm.xlu1 %5451, %v5315_v47  }
 0x412   :  { %11389 = vst [vmem:[#allocation375_spill] sm:$0xff] %v8747_v26  ;;  %11391 = vst [vmem:[#allocation378_spill] sm:$0xff] %v8750_v42  ;;  %v8762_v15 = vadd.f32 %v1484_v32, %v11398_v63  ;;  %v8765_v22 = vadd.f32 %v1483_v38, %v11400_v39  ;;  %v11402_v12 = vld [vmem:[#allocation38_spill] sm:$0xff]  ;;  %v11406_v43 = vld [vmem:[#allocation39_spill] sm:$0xff]  ;;  %4269 = vperm.xlu0 %5450, %v5314_v48  }
 0x413   :  { %11393 = vst [vmem:[#allocation379_spill] sm:$0xff] %v8753_v37  ;;  %11397 = vst [vmem:[#allocation67_spill] sm:$0xff] %v8759_v16  ;;  %v8768_v24 = vadd.f32 %v1486_v3, %v11402_v12  ;;  %v8775_v18 = vadd.f32 %v1485_v55, %v11406_v43  ;;  %v11408_v27 = vld [vmem:[#allocation126_spill] sm:$0xff]  ;;  %v11409_v58 = vld [vmem:[#allocation127_spill] sm:$0xff] }
 0x414   :  { %11399 = vst [vmem:[#allocation380_spill] sm:$0xff] %v8762_v15  ;;  %11401 = vst [vmem:[#allocation68_spill] sm:$0xff] %v8765_v22  ;;  %v1487_v33 = vmul.f32 %v8399_v7, %v11408_v27  ;;  %v1490_v32 = vmul.f32 %v8399_v7, %v11409_v58  ;;  %v11410_v38 = vld [vmem:[#allocation40_spill] sm:$0xff]  ;;  %v11413_v63 = vld [vmem:[#allocation129_spill] sm:$0xff]  ;;  %v8817_v37 = vpop.permute.xlu1 %3727 }
 0x415   :  { %11403 = vst [vmem:[#allocation69_spill] sm:$0xff] %v8768_v24  ;;  %11404 = vst [vmem:[#allocation70_spill] sm:$0xff] %v8770_v51  ;;  %v8782_v39 = vadd.f32 %v1488_v40, %v11410_v38  ;;  %v11412_v3 = vld [vmem:[#allocation128_spill] sm:$0xff]  ;;  %v1492_v12 = vmul.f32 %v8399_v7, %v11413_v63  ;;  %v8793_v43 = vld [vmem:[%s10777_s1 + $0x3] ss:$0 sm:$0xff] }
 0x416   :  { %11405 = vst [vmem:[#allocation71_spill] sm:$0xff] %v8772_v4  ;;  %11407 = vst [vmem:[#allocation72_spill] sm:$0xff] %v8775_v18  ;;  %v1489_v5 = vmul.f32 %v8399_v7, %v11412_v3  ;;  %v11414_v4 = vld [vmem:[#allocation130_spill] sm:$0xff]  ;;  %v11415_v48 = vld [vmem:[#allocation131_spill] sm:$0xff] }
 0x417   :  { %11411 = vst [vmem:[#allocation73_spill] sm:$0xff] %v8782_v39  ;;  %v1491_v55 = vmul.f32 %v8399_v7, %v11414_v4  ;;  %v5347_v47 = vld [vmem:[%s10776_s0 + $0x262] sm:$0xff]  ;;  %v5346_v40 = vld [vmem:[%s10776_s0 + $0x25a] sm:$0xff]  ;;  %v1494_v27 = vmul.f32 %v8399_v7, %v11415_v48  ;;  %v11416_v58 = vld [vmem:[#allocation132_spill] sm:$0xff] }
 0x418   :  { %v1493_v38 = vmul.f32 %v8399_v7, %v11416_v58  ;;  %v11417_v4 = vld [vmem:[#allocation133_spill] sm:$0xff]  ;;  %v11418_v63 = vld [vmem:[#allocation134_spill] sm:$0xff]  ;;  %v11419_v39 = vld [vmem:[#allocation135_spill] sm:$0xff]  ;;  %11423 = vst [vmem:[#allocation74_spill] sm:$0xff] %v8817_v37  ;;  %v8819_v58 = vpop.permute.xlu0 %3722  ;;  %4434 = vperm.xlu1 %5451, %v5347_v47   ;;  %4429 = vperm.xlu0 %5450, %v5346_v40  }
 0x419   :  { %v1496_v3 = vmul.f32 %v8399_v7, %v11417_v4  ;;  %v1495_v51 = vmul.f32 %v8399_v7, %v11418_v63  ;;  %v1498_v18 = vmul.f32 %v8399_v7, %v11419_v39  ;;  %v11420_v24 = vld [vmem:[#allocation136_spill] sm:$0xff]  ;;  %v11421_v15 = vld [vmem:[#allocation137_spill] sm:$0xff]  ;;  %v11422_v11 = vld [vmem:[#allocation138_spill] sm:$0xff]  ;;  %11424 = vst [vmem:[#allocation75_spill] sm:$0xff] %v8819_v58 }
 0x41a   :  { %v1497_v22 = vmul.f32 %v8399_v7, %v11420_v24  ;;  %v1500_v16 = vmul.f32 %v8399_v7, %v11421_v15  ;;  %v1499_v48 = vmul.f32 %v8399_v7, %v11422_v11  ;;  %v11425_v4 = vld [vmem:[#allocation41_spill] sm:$0xff]  ;;  %v11426_v63 = vld [vmem:[#allocation42_spill] sm:$0xff]  ;;  %v11427_v39 = vld [vmem:[#allocation139_spill] sm:$0xff]  ;;  %v8836_v11 = vadd.f32 %v1491_v55, %v8437_v20 }
 0x41b   :  { %v8822_v42 = vadd.f32 %v1487_v33, %v11425_v4  ;;  %v8825_v26 = vadd.f32 %v1490_v32, %v11426_v63  ;;  %v1956_v9 = vmul.f32 %v8793_v43, %v11427_v39  ;;  %v11428_v24 = vld [vmem:[#allocation45_spill] sm:$0xff]  ;;  %v11429_v13 = vld [vmem:[#allocation46_spill] sm:$0xff]  ;;  %v11430_v58 = vld [vmem:[#allocation140_spill] sm:$0xff]  ;;  %v8853_v20 = vadd.f32 %v1496_v3, %v8448_v44 }
 0x41c   :  { %v8830_v15 = vadd.f32 %v1489_v5, %v11428_v24  ;;  %v8833_v7 = vadd.f32 %v1492_v12, %v11429_v13  ;;  %v1955_v33 = vmul.f32 %v8793_v43, %v11430_v58  ;;  %v5286_v32 = vld [vmem:[%s10776_s0 + $0x291] sm:$0xff]  ;;  %v5285_v47 = vld [vmem:[%s10776_s0 + $0x289] sm:$0xff]  ;;  %v8847_v5 = vadd.f32 %v1494_v27, %v8440_v8  ;;  %v8872_v27 = vpop.permute.xlu0 %3732  ;;  %v11445_v39 = vld [vmem:[#allocation146_spill] sm:$0xff] }
 0x41d   :  { %v8850_v13 = vadd.f32 %v1493_v38, %v8445_v56  ;;  %v8856_v12 = vadd.f32 %v1495_v51, %v8451_v50  ;;  %v8859_v55 = vadd.f32 %v1498_v18, %v8462_v0  ;;  %v8862_v40 = vadd.f32 %v1497_v22, %v8465_v28  ;;  %v8870_v56 = vpop.permute.xlu1 %3737  ;;  %11435 = vst [vmem:[#allocation3_spill] sm:$0xff] %v8872_v27  ;;  %v11436_v44 = vld [vmem:[#allocation49_spill] sm:$0xff]  ;;  %v11439_v51 = vld [vmem:[#allocation142_spill] sm:$0xff]  ;;  %v11443_v18 = vld [vmem:[#allocation144_spill] sm:$0xff] }
 0x41e   :  { %v8865_v58 = vadd.f32 %v1500_v16, %v8468_v59  ;;  %v8868_v8 = vadd.f32 %v1499_v48, %v8471_v36  ;;  %11434 = vst [vmem:[#allocation2_spill] sm:$0xff] %v8870_v56  ;;  %v8875_v38 = vadd.f32 %v1956_v9, %v11436_v44  ;;  %v11438_v50 = vld [vmem:[#allocation141_spill] sm:$0xff]  ;;  %v1957_v28 = vmul.f32 %v8793_v43, %v11439_v51  ;;  %v11440_v59 = vld [vmem:[#allocation50_spill] sm:$0xff]  ;;  %v11442_v36 = vld [vmem:[#allocation143_spill] sm:$0xff] }
 0x41f   :  { %11431 = vst [vmem:[#allocation76_spill] sm:$0xff] %v8862_v40  ;;  %v1958_v0 = vmul.f32 %v8793_v43, %v11438_v50  ;;  %3937 = vperm.xlu1 %5451, %v5286_v32   ;;  %3932 = vperm.xlu0 %5450, %v5285_v47   ;;  %v8882_v22 = vadd.f32 %v1955_v33, %v11440_v59  ;;  %v11444_v48 = vld [vmem:[#allocation145_spill] sm:$0xff]  ;;  %v5317_v4 = vld [vmem:[%s10776_s0 + $0xca] sm:$0xff]  ;;  %v5316_v63 = vld [vmem:[%s10776_s0 + $0xc2] sm:$0xff] }
 0x420   :  { %11432 = vst [vmem:[#allocation77_spill] sm:$0xff] %v8865_v58  ;;  %11433 = vst [vmem:[#allocation78_spill] sm:$0xff] %v8868_v8  ;;  %v1960_v16 = vmul.f32 %v8793_v43, %v11442_v36  ;;  %v1959_v3 = vmul.f32 %v8793_v43, %v11443_v18  ;;  %v1962_v9 = vmul.f32 %v8793_v43, %v11444_v48  ;;  %v11446_v33 = vld [vmem:[#allocation147_spill] sm:$0xff]  ;;  %v11447_v47 = vld [vmem:[#allocation148_spill] sm:$0xff] }
 0x421   :  { %11437 = vst [vmem:[#allocation79_spill] sm:$0xff] %v8875_v38  ;;  %11441 = vst [vmem:[#allocation4_spill] sm:$0xff] %v8882_v22  ;;  %v1961_v24 = vmul.f32 %v8793_v43, %v11445_v39  ;;  %v1964_v32 = vmul.f32 %v8793_v43, %v11446_v33  ;;  %v1963_v44 = vmul.f32 %v8793_v43, %v11447_v47  ;;  %v11448_v50 = vld [vmem:[#allocation149_spill] sm:$0xff]  ;;  %v11449_v59 = vld [vmem:[#allocation150_spill] sm:$0xff]  ;;  %v8912_v22 = vpop.permute.xlu1 %3747  ;;  %v8914_v33 = vpop.permute.xlu0 %3742 }
 0x422   :  { %v1966_v51 = vmul.f32 %v8793_v43, %v11448_v50  ;;  %v1965_v36 = vmul.f32 %v8793_v43, %v11449_v59  ;;  %v11450_v18 = vld [vmem:[#allocation151_spill] sm:$0xff]  ;;  %v11451_v27 = vld [vmem:[#allocation152_spill] sm:$0xff]  ;;  %v11452_v37 = vld [vmem:[#allocation153_spill] sm:$0xff]  ;;  %11453 = vst [vmem:[#allocation5_spill] sm:$0xff] %v8912_v22  ;;  %v8931_v22 = vadd.f32 %v1962_v9, %v8532_v25 }
 0x423   :  { %v1968_v48 = vmul.f32 %v8793_v43, %v11450_v18  ;;  %v1967_v56 = vmul.f32 %v8793_v43, %v11451_v27  ;;  %v1970_v39 = vmul.f32 %v8793_v43, %v11452_v37  ;;  %11454 = vst [vmem:[#allocation13_spill] sm:$0xff] %v8914_v33  ;;  %v11455_v47 = vld [vmem:[#allocation51_spill] sm:$0xff]  ;;  %v11456_v50 = vld [vmem:[#allocation52_spill] sm:$0xff]  ;;  %v11457_v59 = vld [vmem:[#allocation154_spill] sm:$0xff]  ;;  %4284 = vperm.xlu1 %5451, %v5317_v4  }
 0x424   :  { %v8917_v38 = vadd.f32 %v1958_v0, %v11455_v47  ;;  %v8920_v8 = vadd.f32 %v1957_v28, %v11456_v50  ;;  %v1969_v58 = vmul.f32 %v8793_v43, %v11457_v59  ;;  %4279 = vperm.xlu0 %5450, %v5316_v63   ;;  %v11458_v18 = vld [vmem:[#allocation55_spill] sm:$0xff]  ;;  %v11459_v40 = vld [vmem:[#allocation56_spill] sm:$0xff]  ;;  %v5349_v28 = vld [vmem:[%s10776_s0 + $0x27a] sm:$0xff]  ;;  %v8948_v25 = vadd.f32 %v1963_v44, %v8543_v53 }
 0x425   :  { %v8925_v27 = vadd.f32 %v1960_v16, %v11458_v18  ;;  %v8928_v37 = vadd.f32 %v1959_v3, %v11459_v40  ;;  %v11460_v33 = vld [vmem:[#allocation155_spill] sm:$0xff]  ;;  %v5348_v4 = vld [vmem:[%s10776_s0 + $0x272] sm:$0xff]  ;;  %v8942_v16 = vadd.f32 %v1961_v24, %v8535_v2  ;;  %v8945_v40 = vadd.f32 %v1964_v32, %v8540_v21  ;;  %v8965_v21 = vpop.permute.xlu1 %3757  ;;  %v8967_v24 = vpop.permute.xlu0 %3752  ;;  %v11470_v47 = vld [vmem:[#allocation162_spill] sm:$0xff] }
 0x426   :  { %v1972_v0 = vmul.f32 %v8793_v43, %v11460_v33  ;;  %v8951_v3 = vadd.f32 %v1966_v51, %v8546_v61  ;;  %v8954_v9 = vadd.f32 %v1965_v36, %v8557_v31  ;;  %v8957_v63 = vadd.f32 %v1968_v48, %v8560_v60  ;;  %11461 = vst [vmem:[#allocation80_spill] sm:$0xff] %v8965_v21  ;;  %v11463_v61 = vld [vmem:[#allocation156_spill] sm:$0xff]  ;;  %v11464_v32 = vld [vmem:[#allocation157_spill] sm:$0xff]  ;;  %v11467_v44 = vld [vmem:[#allocation159_spill] sm:$0xff] }
 0x427   :  { %v8960_v33 = vadd.f32 %v1967_v56, %v8563_v57  ;;  %v8963_v2 = vadd.f32 %v1970_v39, %v8566_v17  ;;  %11462 = vst [vmem:[#allocation14_spill] sm:$0xff] %v8967_v24  ;;  %v8970_v53 = vadd.f32 %v1969_v58, %v8569_v29  ;;  %v1971_v31 = vmul.f32 %v8793_v43, %v11463_v61  ;;  %v11466_v17 = vld [vmem:[#allocation158_spill] sm:$0xff]  ;;  %v11468_v36 = vld [vmem:[#allocation160_spill] sm:$0xff]  ;;  %v11469_v39 = vld [vmem:[#allocation161_spill] sm:$0xff] }
 0x428   :  { %v1974_v60 = vmul.f32 %v8793_v43, %v11464_v32  ;;  %4444 = vperm.xlu1 %5451, %v5349_v28   ;;  %4439 = vperm.xlu0 %5450, %v5348_v4   ;;  %v8977_v57 = vadd.f32 %v1972_v0, %v8572_v62  ;;  %v1973_v56 = vmul.f32 %v8793_v43, %v11466_v17  ;;  %v5288_v58 = vld [vmem:[%s10776_s0 + $0x2a9] sm:$0xff]  ;;  %v5287_v48 = vld [vmem:[%s10776_s0 + $0x2a1] sm:$0xff]  ;;  %v11473_v4 = vld [vmem:[#allocation165_spill] sm:$0xff] }
 0x429   :  { %v1976_v51 = vmul.f32 %v8793_v43, %v11467_v44  ;;  %v1975_v29 = vmul.f32 %v8793_v43, %v11468_v36  ;;  %v1978_v62 = vmul.f32 %v8793_v43, %v11469_v39  ;;  %v1977_v50 = vmul.f32 %v8793_v43, %v11470_v47  ;;  %v11471_v59 = vld [vmem:[#allocation163_spill] sm:$0xff]  ;;  %v11472_v0 = vld [vmem:[#allocation164_spill] sm:$0xff]  ;;  %v11474_v32 = vld [vmem:[#allocation166_spill] sm:$0xff]  ;;  %v9007_v21 = vpop.permute.xlu1 %3767  ;;  %v9009_v47 = vpop.permute.xlu0 %3762 }
 0x42a   :  { %11465 = vst [vmem:[#allocation81_spill] sm:$0xff] %v8977_v57  ;;  %v1980_v18 = vmul.f32 %v8793_v43, %v11471_v59  ;;  %v1979_v28 = vmul.f32 %v8793_v43, %v11472_v0  ;;  %v1982_v61 = vmul.f32 %v8793_v43, %v11473_v4  ;;  %v1981_v17 = vmul.f32 %v8793_v43, %v11474_v32  ;;  %v11475_v44 = vld [vmem:[#allocation167_spill] sm:$0xff]  ;;  %v11476_v24 = vld [vmem:[#allocation168_spill] sm:$0xff]  ;;  %v11479_v4 = vld [vmem:[#allocation169_spill] sm:$0xff] }
 0x42b   :  { %v1984_v36 = vmul.f32 %v8793_v43, %v11475_v44  ;;  %v1983_v39 = vmul.f32 %v8793_v43, %v11476_v24  ;;  %11477 = vst [vmem:[#allocation82_spill] sm:$0xff] %v9007_v21  ;;  %11478 = vst [vmem:[#allocation15_spill] sm:$0xff] %v9009_v47  ;;  %v9012_v59 = vadd.f32 %v1971_v31, %v8575_v23  ;;  %v11480_v44 = vld [vmem:[#allocation61_spill] sm:$0xff]  ;;  %v11481_v47 = vld [vmem:[#allocation170_spill] sm:$0xff] }
 0x42c   :  { %v9015_v0 = vadd.f32 %v1974_v60, %v8578_v10  ;;  %v1986_v57 = vmul.f32 %v8793_v43, %v11479_v4  ;;  %3947 = vperm.xlu1 %5451, %v5288_v58   ;;  %3942 = vperm.xlu0 %5450, %v5287_v48   ;;  %v9020_v32 = vadd.f32 %v1973_v56, %v8585_v34  ;;  %v5319_v10 = vld [vmem:[%s10776_s0 + $0xe2] sm:$0xff]  ;;  %v5318_v31 = vld [vmem:[%s10776_s0 + $0xda] sm:$0xff] }
 0x42d   :  { %v9023_v24 = vadd.f32 %v1976_v51, %v11480_v44  ;;  %v9026_v21 = vadd.f32 %v1975_v29, %v8627_v49  ;;  %v1985_v23 = vmul.f32 %v8793_v43, %v11481_v47  ;;  %v9037_v34 = vadd.f32 %v1978_v62, %v8630_v30  ;;  %v9062_v48 = vpop.permute.xlu0 %3772  ;;  %v11488_v62 = vld [vmem:[#allocation172_spill] sm:$0xff]  ;;  %v11495_v4 = vld [vmem:[#allocation178_spill] sm:$0xff] }
 0x42e   :  { %v9040_v60 = vadd.f32 %v1977_v50, %v8635_v6  ;;  %v9043_v49 = vadd.f32 %v1980_v18, %v8638_v41  ;;  %v9046_v56 = vadd.f32 %v1979_v28, %v8641_v14  ;;  %v9049_v51 = vadd.f32 %v1982_v61, %v8652_v1  ;;  %v9060_v6 = vpop.permute.xlu1 %3777  ;;  %11485 = vst [vmem:[#allocation86_spill] sm:$0xff] %v9062_v48  ;;  %v11487_v14 = vld [vmem:[#allocation171_spill] sm:$0xff]  ;;  %v11491_v18 = vld [vmem:[#allocation174_spill] sm:$0xff]  ;;  %v11508_v48 = vld [vmem:[#allocation368_spill] sm:$0xff] }
 0x42f   :  { %v9052_v29 = vadd.f32 %v1981_v17, %v8655_v35  ;;  %v9055_v58 = vadd.f32 %v1984_v36, %v8658_v54  ;;  %v9058_v30 = vadd.f32 %v1983_v39, %v8661_v19  ;;  %11484 = vst [vmem:[#allocation85_spill] sm:$0xff] %v9060_v6  ;;  %v9065_v41 = vadd.f32 %v1986_v57, %v8664_v45  ;;  %v11490_v19 = vld [vmem:[#allocation173_spill] sm:$0xff]  ;;  %v11492_v61 = vld [vmem:[#allocation175_spill] sm:$0xff]  ;;  %v11493_v36 = vld [vmem:[#allocation176_spill] sm:$0xff] }
 0x430   :  { %v1988_v1 = vmul.f32 %v8793_v43, %v11487_v14  ;;  %v1987_v35 = vmul.f32 %v8793_v43, %v11488_v62  ;;  %4294 = vperm.xlu1 %5451, %v5319_v10   ;;  %4289 = vperm.xlu0 %5450, %v5318_v31   ;;  %v9072_v54 = vadd.f32 %v1985_v23, %v8667_v52  ;;  %v5351_v57 = vld [vmem:[%s10776_s0 + $0x292] sm:$0xff]  ;;  %v5350_v17 = vld [vmem:[%s10776_s0 + $0x28a] sm:$0xff] }
 0x431   :  { %11482 = vst [vmem:[#allocation83_spill] sm:$0xff] %v9055_v58  ;;  %11483 = vst [vmem:[#allocation84_spill] sm:$0xff] %v9058_v30  ;;  %v1990_v50 = vmul.f32 %v8793_v43, %v11490_v19  ;;  %v1989_v28 = vmul.f32 %v8793_v43, %v11491_v18  ;;  %v1992_v45 = vmul.f32 %v8793_v43, %v11492_v61  ;;  %v11494_v39 = vld [vmem:[#allocation177_spill] sm:$0xff]  ;;  %v11496_v23 = vld [vmem:[#allocation179_spill] sm:$0xff] }
 0x432   :  { %11486 = vst [vmem:[#allocation87_spill] sm:$0xff] %v9065_v41  ;;  %11489 = vst [vmem:[#allocation88_spill] sm:$0xff] %v9072_v54  ;;  %v1991_v52 = vmul.f32 %v8793_v43, %v11493_v36  ;;  %v1994_v47 = vmul.f32 %v8793_v43, %v11494_v39  ;;  %v1993_v44 = vmul.f32 %v8793_v43, %v11495_v4  ;;  %v11497_v31 = vld [vmem:[#allocation180_spill] sm:$0xff]  ;;  %v11498_v62 = vld [vmem:[#allocation181_spill] sm:$0xff]  ;;  %v9102_v41 = vpop.permute.xlu1 %3787  ;;  %v9104_v39 = vpop.permute.xlu0 %3782 }
 0x433   :  { %v1996_v10 = vmul.f32 %v8793_v43, %v11496_v23  ;;  %v1995_v14 = vmul.f32 %v8793_v43, %v11497_v31  ;;  %v1998_v19 = vmul.f32 %v8793_v43, %v11498_v62  ;;  %v11499_v18 = vld [vmem:[#allocation182_spill] sm:$0xff]  ;;  %v11500_v54 = vld [vmem:[#allocation183_spill] sm:$0xff]  ;;  %11501 = vst [vmem:[#allocation89_spill] sm:$0xff] %v9102_v41  ;;  %11502 = vst [vmem:[#allocation90_spill] sm:$0xff] %v9104_v39 }
 0x434   :  { %v1997_v61 = vmul.f32 %v8793_v43, %v11499_v18  ;;  %v2000_v36 = vmul.f32 %v8793_v43, %v11500_v54  ;;  %v9107_v4 = vadd.f32 %v1988_v1, %v8670_v46  ;;  %v11503_v23 = vld [vmem:[#allocation365_spill] sm:$0xff]  ;;  %v11505_v31 = vld [vmem:[#allocation184_spill] sm:$0xff]  ;;  %4454 = vperm.xlu1 %5451, %v5351_v57   ;;  %4449 = vperm.xlu0 %5450, %v5350_v17   ;;  %v11506_v62 = vld [vmem:[#allocation367_spill] sm:$0xff] }
 0x435   :  { %v9110_v30 = vadd.f32 %v1987_v35, %v11503_v23  ;;  %v1999_v58 = vmul.f32 %v8793_v43, %v11505_v31  ;;  %v9115_v18 = vadd.f32 %v1990_v50, %v11506_v62  ;;  %v9118_v54 = vadd.f32 %v1989_v28, %v11508_v48  ;;  %v11510_v41 = vld [vmem:[#allocation370_spill] sm:$0xff]  ;;  %v11512_v39 = vld [vmem:[#allocation185_spill] sm:$0xff]  ;;  %v11513_v57 = vld [vmem:[#allocation371_spill] sm:$0xff] }
 0x436   :  { %v9121_v6 = vadd.f32 %v1992_v45, %v11510_v41  ;;  %v2002_v46 = vmul.f32 %v8793_v43, %v11512_v39  ;;  %v5290_v1 = vld [vmem:[%s10776_s0 + $0x2c1] sm:$0xff]  ;;  %v5289_v35 = vld [vmem:[%s10776_s0 + $0x2b9] sm:$0xff]  ;;  %v9132_v50 = vadd.f32 %v1991_v52, %v11513_v57  ;;  %v11515_v17 = vld [vmem:[#allocation372_spill] sm:$0xff] }
 0x437   :  { %11504 = vst [vmem:[#allocation91_spill] sm:$0xff] %v9110_v30  ;;  %11507 = vst [vmem:[#allocation92_spill] sm:$0xff] %v9115_v18  ;;  %v9135_v48 = vadd.f32 %v1994_v47, %v11515_v17  ;;  %v11517_v28 = vld [vmem:[#allocation373_spill] sm:$0xff]  ;;  %v11519_v45 = vld [vmem:[#allocation374_spill] sm:$0xff]  ;;  %v9155_v47 = vpop.permute.xlu1 %3797  ;;  %v9157_v17 = vpop.permute.xlu0 %3792 }
 0x438   :  { %11509 = vst [vmem:[#allocation93_spill] sm:$0xff] %v9118_v54  ;;  %11511 = vst [vmem:[#allocation16_spill] sm:$0xff] %v9121_v6  ;;  %v9138_v41 = vadd.f32 %v1993_v44, %v11517_v28  ;;  %v9141_v23 = vadd.f32 %v1996_v10, %v11519_v45  ;;  %v11521_v39 = vld [vmem:[#allocation375_spill] sm:$0xff]  ;;  %v11523_v62 = vld [vmem:[#allocation378_spill] sm:$0xff]  ;;  %3957 = vperm.xlu1 %5451, %v5290_v1   ;;  %3952 = vperm.xlu0 %5450, %v5289_v35  }
 0x439   :  { %11514 = vst [vmem:[#allocation17_spill] sm:$0xff] %v9132_v50  ;;  %11516 = vst [vmem:[#allocation94_spill] sm:$0xff] %v9135_v48  ;;  %v9144_v31 = vadd.f32 %v1995_v14, %v11521_v39  ;;  %v9147_v6 = vadd.f32 %v1998_v19, %v11523_v62  ;;  %v11525_v54 = vld [vmem:[#allocation379_spill] sm:$0xff]  ;;  %v11527_v52 = vld [vmem:[#allocation66_spill] sm:$0xff] }
 0x43a   :  { %11518 = vst [vmem:[#allocation7_spill] sm:$0xff] %v9138_v41  ;;  %11520 = vst [vmem:[#allocation19_spill] sm:$0xff] %v9141_v23  ;;  %v9150_v18 = vadd.f32 %v1997_v61, %v11525_v54  ;;  %v9153_v57 = vadd.f32 %v2000_v36, %v11527_v52  ;;  %v11531_v44 = vld [vmem:[#allocation67_spill] sm:$0xff]  ;;  %v11533_v10 = vld [vmem:[#allocation186_spill] sm:$0xff] }
 0x43b   :  { %11522 = vst [vmem:[#allocation95_spill] sm:$0xff] %v9144_v31  ;;  %11524 = vst [vmem:[#allocation96_spill] sm:$0xff] %v9147_v6  ;;  %v9160_v28 = vadd.f32 %v1999_v58, %v11531_v44  ;;  %v2001_v14 = vmul.f32 %v8793_v43, %v11533_v10  ;;  %v11534_v45 = vld [vmem:[#allocation187_spill] sm:$0xff]  ;;  %v11535_v61 = vld [vmem:[#allocation380_spill] sm:$0xff]  ;;  %v9197_v23 = vpop.permute.xlu1 %3807 }
 0x43c   :  { %11526 = vst [vmem:[#allocation97_spill] sm:$0xff] %v9150_v18  ;;  %11528 = vst [vmem:[#allocation98_spill] sm:$0xff] %v9153_v57  ;;  %v2004_v19 = vmul.f32 %v8793_v43, %v11534_v45  ;;  %v9167_v54 = vadd.f32 %v2002_v46, %v11535_v61  ;;  %v11537_v36 = vld [vmem:[#allocation188_spill] sm:$0xff]  ;;  %v11538_v62 = vld [vmem:[#allocation189_spill] sm:$0xff] }
 0x43d   :  { %11529 = vst [vmem:[#allocation99_spill] sm:$0xff] %v9155_v47  ;;  %11530 = vst [vmem:[#allocation100_spill] sm:$0xff] %v9157_v17  ;;  %v2003_v39 = vmul.f32 %v8793_v43, %v11537_v36  ;;  %v2006_v52 = vmul.f32 %v8793_v43, %v11538_v62  ;;  %v11539_v17 = vld [vmem:[#allocation190_spill] sm:$0xff]  ;;  %v5320_v1 = vld [vmem:[%s10776_s0 + $0xf2] sm:$0xff] }
 0x43e   :  { %11532 = vst [vmem:[#allocation101_spill] sm:$0xff] %v9160_v28  ;;  %11536 = vst [vmem:[#allocation102_spill] sm:$0xff] %v9167_v54  ;;  %v2005_v58 = vmul.f32 %v8793_v43, %v11539_v17  ;;  %v5321_v44 = vld [vmem:[%s10776_s0 + $0xfa] sm:$0xff]  ;;  %v11540_v35 = vld [vmem:[#allocation191_spill] sm:$0xff]  ;;  %4299 = vperm.xlu0 %5450, %v5320_v1  }
 0x43f   :  { %v2008_v46 = vmul.f32 %v8793_v43, %v11540_v35  ;;  %v11541_v10 = vld [vmem:[#allocation192_spill] sm:$0xff]  ;;  %v11542_v61 = vld [vmem:[#allocation193_spill] sm:$0xff]  ;;  %v11543_v62 = vld [vmem:[#allocation194_spill] sm:$0xff]  ;;  %11548 = vst [vmem:[#allocation103_spill] sm:$0xff] %v9197_v23  ;;  %4304 = vperm.xlu1 %5451, %v5321_v44  }
 0x440   :  { %v2007_v45 = vmul.f32 %v8793_v43, %v11541_v10  ;;  %v2010_v36 = vmul.f32 %v8793_v43, %v11542_v61  ;;  %v2009_v17 = vmul.f32 %v8793_v43, %v11543_v62  ;;  %v11544_v47 = vld [vmem:[#allocation195_spill] sm:$0xff]  ;;  %v11545_v28 = vld [vmem:[#allocation196_spill] sm:$0xff]  ;;  %v11546_v18 = vld [vmem:[#allocation197_spill] sm:$0xff]  ;;  %v9199_v10 = vpop.permute.xlu0 %3802  ;;  %v9216_v23 = vadd.f32 %v2005_v58, %v8822_v42 }
 0x441   :  { %v2012_v54 = vmul.f32 %v8793_v43, %v11544_v47  ;;  %v2011_v57 = vmul.f32 %v8793_v43, %v11545_v28  ;;  %v2014_v6 = vmul.f32 %v8793_v43, %v11546_v18  ;;  %v11547_v31 = vld [vmem:[#allocation198_spill] sm:$0xff]  ;;  %11549 = vst [vmem:[#allocation104_spill] sm:$0xff] %v9199_v10  ;;  %v11550_v61 = vld [vmem:[#allocation68_spill] sm:$0xff]  ;;  %v11552_v62 = vld [vmem:[#allocation69_spill] sm:$0xff] }
 0x442   :  { %v2013_v35 = vmul.f32 %v8793_v43, %v11547_v31  ;;  %v9202_v41 = vadd.f32 %v2001_v14, %v11550_v61  ;;  %v9205_v48 = vadd.f32 %v2004_v19, %v11552_v62  ;;  %v11554_v47 = vld [vmem:[#allocation199_spill] sm:$0xff]  ;;  %v11555_v28 = vld [vmem:[#allocation72_spill] sm:$0xff]  ;;  %v11557_v30 = vld [vmem:[#allocation73_spill] sm:$0xff]  ;;  %11559 = vst [vmem:[#allocation109_spill] sm:$0xff] %v9216_v23  ;;  %v9233_v42 = vadd.f32 %v2010_v36, %v8833_v7 }
 0x443   :  { %v2016_v50 = vmul.f32 %v8793_v43, %v11554_v47  ;;  %v9210_v18 = vadd.f32 %v2003_v39, %v11555_v28  ;;  %v9213_v31 = vadd.f32 %v2006_v52, %v11557_v30  ;;  %v11560_v10 = vld [vmem:[#allocation200_spill] sm:$0xff]  ;;  %v5352_v44 = vld [vmem:[%s10776_s0 + $0x2a2] sm:$0xff]  ;;  %v9227_v39 = vadd.f32 %v2008_v46, %v8825_v26  ;;  %v9255_v46 = vpop.permute.xlu1 %3817  ;;  %v11572_v36 = vld [vmem:[#allocation201_spill] sm:$0xff] }
 0x444   :  { %11551 = vst [vmem:[#allocation105_spill] sm:$0xff] %v9202_v41  ;;  %11553 = vst [vmem:[#allocation106_spill] sm:$0xff] %v9205_v48  ;;  %v2015_v14 = vmul.f32 %v8793_v43, %v11560_v10  ;;  %v5353_v19 = vld [vmem:[%s10776_s0 + $0x2aa] sm:$0xff]  ;;  %v9230_v30 = vadd.f32 %v2007_v45, %v8830_v15  ;;  %v9236_v52 = vadd.f32 %v2009_v17, %v8836_v11  ;;  %v9241_v58 = vld [vmem:[%s10777_s1 + $0x4] ss:$0 sm:$0xff]  ;;  %v9257_v11 = vpop.permute.xlu0 %3812  ;;  %4459 = vperm.xlu0 %5450, %v5352_v44  }
 0x445   :  { %11556 = vst [vmem:[#allocation107_spill] sm:$0xff] %v9210_v18  ;;  %11558 = vst [vmem:[#allocation108_spill] sm:$0xff] %v9213_v31  ;;  %v9244_v1 = vadd.f32 %v2012_v54, %v8847_v5  ;;  %v9247_v26 = vadd.f32 %v2011_v57, %v8850_v13  ;;  %v9250_v15 = vadd.f32 %v2014_v6, %v8853_v20  ;;  %v11573_v54 = vld [vmem:[#allocation202_spill] sm:$0xff]  ;;  %4464 = vperm.xlu1 %5451, %v5353_v19   ;;  %v11574_v20 = vld [vmem:[#allocation76_spill] sm:$0xff] }
 0x446   :  { %11561 = vst [vmem:[#allocation110_spill] sm:$0xff] %v9227_v39  ;;  %11562 = vst [vmem:[#allocation111_spill] sm:$0xff] %v9230_v30  ;;  %v9253_v7 = vadd.f32 %v2013_v35, %v8856_v12  ;;  %v9260_v45 = vadd.f32 %v2016_v50, %v8859_v55  ;;  %v2018_v5 = vmul.f32 %v8793_v43, %v11572_v36  ;;  %v11576_v12 = vld [vmem:[#allocation203_spill] sm:$0xff]  ;;  %v11577_v17 = vld [vmem:[#allocation204_spill] sm:$0xff] }
 0x447   :  { %11563 = vst [vmem:[#allocation112_spill] sm:$0xff] %v9233_v42  ;;  %11564 = vst [vmem:[#allocation113_spill] sm:$0xff] %v9236_v52  ;;  %v2017_v13 = vmul.f32 %v8793_v43, %v11573_v54  ;;  %v9267_v6 = vadd.f32 %v2015_v14, %v11574_v20  ;;  %v2473_v57 = vmul.f32 %v9241_v58, %v11576_v12  ;;  %v11578_v10 = vld [vmem:[#allocation205_spill] sm:$0xff]  ;;  %v11579_v61 = vld [vmem:[#allocation206_spill] sm:$0xff] }
 0x448   :  { %11565 = vst [vmem:[#allocation114_spill] sm:$0xff] %v9244_v1  ;;  %11566 = vst [vmem:[#allocation115_spill] sm:$0xff] %v9247_v26  ;;  %v2472_v35 = vmul.f32 %v9241_v58, %v11577_v17  ;;  %v2475_v55 = vmul.f32 %v9241_v58, %v11578_v10  ;;  %v5292_v50 = vld [vmem:[%s10776_s0 + $0x2d9] sm:$0xff]  ;;  %v5291_v43 = vld [vmem:[%s10776_s0 + $0x2d1] sm:$0xff]  ;;  %v2474_v62 = vmul.f32 %v9241_v58, %v11579_v61 }
 0x449   :  { %11567 = vst [vmem:[#allocation116_spill] sm:$0xff] %v9250_v15  ;;  %11568 = vst [vmem:[#allocation117_spill] sm:$0xff] %v9253_v7  ;;  %v11580_v47 = vld [vmem:[#allocation207_spill] sm:$0xff]  ;;  %v11581_v14 = vld [vmem:[#allocation208_spill] sm:$0xff]  ;;  %3967 = vperm.xlu1 %5451, %v5292_v50   ;;  %3962 = vperm.xlu0 %5450, %v5291_v43  }
 0x44a   :  { %11569 = vst [vmem:[#allocation118_spill] sm:$0xff] %v9255_v46  ;;  %11570 = vst [vmem:[#allocation119_spill] sm:$0xff] %v9257_v11  ;;  %v2477_v28 = vmul.f32 %v9241_v58, %v11580_v47  ;;  %v2476_v19 = vmul.f32 %v9241_v58, %v11581_v14  ;;  %v11582_v44 = vld [vmem:[#allocation209_spill] sm:$0xff]  ;;  %v11583_v54 = vld [vmem:[#allocation210_spill] sm:$0xff]  ;;  %v9299_v47 = vpop.permute.xlu0 %3822 }
 0x44b   :  { %11571 = vst [vmem:[#allocation120_spill] sm:$0xff] %v9260_v45  ;;  %11575 = vst [vmem:[#allocation121_spill] sm:$0xff] %v9267_v6  ;;  %v2479_v36 = vmul.f32 %v9241_v58, %v11582_v44  ;;  %v2478_v20 = vmul.f32 %v9241_v58, %v11583_v54  ;;  %v11584_v12 = vld [vmem:[#allocation211_spill] sm:$0xff]  ;;  %v11585_v10 = vld [vmem:[#allocation212_spill] sm:$0xff]  ;;  %v9297_v6 = vpop.permute.xlu1 %3827 }
 0x44c   :  { %v2481_v17 = vmul.f32 %v9241_v58, %v11584_v12  ;;  %v2480_v11 = vmul.f32 %v9241_v58, %v11585_v10  ;;  %v11586_v46 = vld [vmem:[#allocation213_spill] sm:$0xff]  ;;  %11587 = vst [vmem:[#allocation122_spill] sm:$0xff] %v9297_v6  ;;  %11588 = vst [vmem:[#allocation123_spill] sm:$0xff] %v9299_v47  ;;  %v11591_v44 = vld [vmem:[#allocation78_spill] sm:$0xff]  ;;  %v9316_v6 = vadd.f32 %v2475_v55, %v8917_v38 }
 0x44d   :  { %v2483_v61 = vmul.f32 %v9241_v58, %v11586_v46  ;;  %v11589_v14 = vld [vmem:[#allocation77_spill] sm:$0xff]  ;;  %v9305_v7 = vadd.f32 %v2017_v13, %v11591_v44  ;;  %v11593_v54 = vld [vmem:[#allocation214_spill] sm:$0xff]  ;;  %v11594_v12 = vld [vmem:[#allocation79_spill] sm:$0xff]  ;;  %v9333_v38 = vadd.f32 %v2476_v19, %v8928_v37  ;;  %v9339_v55 = vadd.f32 %v2478_v20, %v8942_v16 }
 0x44e   :  { %v9302_v45 = vadd.f32 %v2018_v5, %v11589_v14  ;;  %v2482_v15 = vmul.f32 %v9241_v58, %v11593_v54  ;;  %v9310_v10 = vadd.f32 %v2473_v57, %v11594_v12  ;;  %v11595_v26 = vld [vmem:[#allocation4_spill] sm:$0xff]  ;;  %v11596_v47 = vld [vmem:[#allocation215_spill] sm:$0xff]  ;;  %v9327_v57 = vadd.f32 %v2474_v62, %v8920_v8  ;;  %v9352_v62 = vpop.permute.xlu0 %3832  ;;  %v11605_v14 = vld [vmem:[#allocation222_spill] sm:$0xff] }
 0x44f   :  { %11592 = vst [vmem:[#allocation124_spill] sm:$0xff] %v9305_v7  ;;  %v9313_v46 = vadd.f32 %v2472_v35, %v11595_v26  ;;  %v2485_v5 = vmul.f32 %v9241_v58, %v11596_v47  ;;  %v5323_v13 = vld [vmem:[%s10776_s0 + $0x112] sm:$0xff]  ;;  %v5322_v50 = vld [vmem:[%s10776_s0 + $0x10a] sm:$0xff]  ;;  %v9330_v26 = vadd.f32 %v2477_v28, %v8925_v27  ;;  %v9336_v35 = vadd.f32 %v2479_v36, %v8931_v22  ;;  %v9350_v27 = vpop.permute.xlu1 %3837  ;;  %v11671_v42 = vld [vmem:[#allocation270_spill] sm:$0xff] }
 0x450   :  { %11590 = vst [vmem:[#allocation23_spill] sm:$0xff] %v9302_v45  ;;  %v9342_v43 = vadd.f32 %v2481_v17, %v8945_v40  ;;  %v9345_v47 = vadd.f32 %v2480_v11, %v8948_v25  ;;  %v9348_v8 = vadd.f32 %v2483_v61, %v8951_v3  ;;  %11597 = vst [vmem:[#allocation26_spill] sm:$0xff] %v9350_v27  ;;  %v11599_v22 = vld [vmem:[#allocation216_spill] sm:$0xff]  ;;  %v11600_v28 = vld [vmem:[#allocation217_spill] sm:$0xff]  ;;  %4314 = vperm.xlu1 %5451, %v5323_v13  }
 0x451   :  { %11598 = vst [vmem:[#allocation27_spill] sm:$0xff] %v9352_v62  ;;  %v9355_v37 = vadd.f32 %v2482_v15, %v8954_v9  ;;  %v2484_v16 = vmul.f32 %v9241_v58, %v11599_v22  ;;  %v2487_v40 = vmul.f32 %v9241_v58, %v11600_v28  ;;  %4309 = vperm.xlu0 %5450, %v5322_v50   ;;  %v11601_v3 = vld [vmem:[#allocation218_spill] sm:$0xff]  ;;  %v11602_v19 = vld [vmem:[#allocation219_spill] sm:$0xff]  ;;  %v11603_v20 = vld [vmem:[#allocation220_spill] sm:$0xff] }
 0x452   :  { %v9362_v25 = vadd.f32 %v2485_v5, %v8957_v63  ;;  %v2486_v11 = vmul.f32 %v9241_v58, %v11601_v3  ;;  %v2489_v36 = vmul.f32 %v9241_v58, %v11602_v19  ;;  %v2488_v9 = vmul.f32 %v9241_v58, %v11603_v20  ;;  %v5355_v15 = vld [vmem:[%s10776_s0 + $0x2c2] sm:$0xff]  ;;  %v5354_v17 = vld [vmem:[%s10776_s0 + $0x2ba] sm:$0xff]  ;;  %v11607_v5 = vld [vmem:[#allocation224_spill] sm:$0xff] }
 0x453   :  { %v11604_v61 = vld [vmem:[#allocation221_spill] sm:$0xff]  ;;  %v2490_v44 = vmul.f32 %v9241_v58, %v11605_v14  ;;  %v11606_v54 = vld [vmem:[#allocation223_spill] sm:$0xff]  ;;  %v2492_v13 = vmul.f32 %v9241_v58, %v11607_v5  ;;  %v11609_v28 = vld [vmem:[#allocation226_spill] sm:$0xff]  ;;  %v9392_v27 = vpop.permute.xlu1 %3847  ;;  %v9394_v14 = vpop.permute.xlu0 %3842  ;;  %v9400_v5 = vadd.f32 %v2487_v40, %v8963_v2 }
 0x454   :  { %v2491_v63 = vmul.f32 %v9241_v58, %v11604_v61  ;;  %v2493_v12 = vmul.f32 %v9241_v58, %v11606_v54  ;;  %v11608_v50 = vld [vmem:[#allocation225_spill] sm:$0xff]  ;;  %v2494_v3 = vmul.f32 %v9241_v58, %v11609_v28  ;;  %v11610_v19 = vld [vmem:[#allocation227_spill] sm:$0xff]  ;;  %v11611_v62 = vld [vmem:[#allocation228_spill] sm:$0xff]  ;;  %11612 = vst [vmem:[#allocation30_spill] sm:$0xff] %v9392_v27  ;;  %v9397_v54 = vadd.f32 %v2484_v16, %v8960_v33 }
 0x455   :  { %v2495_v22 = vmul.f32 %v9241_v58, %v11608_v50  ;;  %v2497_v20 = vmul.f32 %v9241_v58, %v11610_v19  ;;  %v2496_v61 = vmul.f32 %v9241_v58, %v11611_v62  ;;  %11613 = vst [vmem:[#allocation125_spill] sm:$0xff] %v9394_v14  ;;  %11614 = vst [vmem:[#allocation31_spill] sm:$0xff] %v9400_v5  ;;  %v11615_v50 = vld [vmem:[#allocation229_spill] sm:$0xff]  ;;  %4474 = vperm.xlu1 %5451, %v5355_v15   ;;  %v11620_v14 = vld [vmem:[#allocation230_spill] sm:$0xff] }
 0x456   :  { %v2499_v7 = vmul.f32 %v9241_v58, %v11615_v50  ;;  %4469 = vperm.xlu0 %5450, %v5354_v17   ;;  %v9405_v28 = vadd.f32 %v2486_v11, %v8970_v53  ;;  %v11617_v19 = vld [vmem:[#allocation81_spill] sm:$0xff]  ;;  %v9411_v27 = vadd.f32 %v2488_v9, %v9012_v59  ;;  %v2498_v33 = vmul.f32 %v9241_v58, %v11620_v14  ;;  %v5293_v16 = vld [vmem:[%s10776_s0 + $0x2e9] sm:$0xff]  ;;  %v11678_v23 = vld [vmem:[#allocation250_spill] sm:$0xff] }
 0x457   :  { %v9408_v62 = vadd.f32 %v2489_v36, %v11617_v19  ;;  %v5294_v2 = vld [vmem:[%s10776_s0 + $0x2f1] sm:$0xff]  ;;  %v9422_v53 = vadd.f32 %v2491_v63, %v9015_v0  ;;  %v9425_v40 = vadd.f32 %v2490_v44, %v9020_v32  ;;  %v9428_v59 = vadd.f32 %v2493_v12, %v9023_v24  ;;  %v9445_v32 = vpop.permute.xlu1 %3857  ;;  %v9447_v17 = vpop.permute.xlu0 %3852 }
 0x458   :  { %11616 = vst [vmem:[#allocation32_spill] sm:$0xff] %v9405_v28  ;;  %11619 = vst [vmem:[#allocation34_spill] sm:$0xff] %v9411_v27  ;;  %v9431_v11 = vadd.f32 %v2492_v13, %v9026_v21  ;;  %v9434_v36 = vadd.f32 %v2495_v22, %v9037_v34  ;;  %v9437_v9 = vadd.f32 %v2494_v3, %v9040_v60  ;;  %v11632_v21 = vld [vmem:[#allocation235_spill] sm:$0xff]  ;;  %v11633_v63 = vld [vmem:[#allocation236_spill] sm:$0xff] }
 0x459   :  { %11618 = vst [vmem:[#allocation33_spill] sm:$0xff] %v9408_v62  ;;  %11621 = vst [vmem:[#allocation35_spill] sm:$0xff] %v9422_v53  ;;  %v9440_v15 = vadd.f32 %v2497_v20, %v9043_v49  ;;  %v9443_v0 = vadd.f32 %v2496_v61, %v9046_v56  ;;  %v9450_v24 = vadd.f32 %v2499_v7, %v9049_v51  ;;  %3977 = vperm.xlu1 %5451, %v5294_v2   ;;  %v11635_v56 = vld [vmem:[#allocation231_spill] sm:$0xff]  ;;  %v11637_v12 = vld [vmem:[#allocation237_spill] sm:$0xff] }
 0x45a   :  { %11622 = vst [vmem:[#allocation36_spill] sm:$0xff] %v9425_v40  ;;  %11623 = vst [vmem:[#allocation37_spill] sm:$0xff] %v9428_v59  ;;  %v2505_v34 = vmul.f32 %v9241_v58, %v11632_v21  ;;  %v2504_v60 = vmul.f32 %v9241_v58, %v11633_v63  ;;  %3972 = vperm.xlu0 %5450, %v5293_v16   ;;  %v9457_v49 = vadd.f32 %v2498_v33, %v9052_v29  ;;  %v11638_v51 = vld [vmem:[#allocation238_spill] sm:$0xff]  ;;  %v5325_v22 = vld [vmem:[%s10776_s0 + $0x12a] sm:$0xff] }
 0x45b   :  { %11624 = vst [vmem:[#allocation38_spill] sm:$0xff] %v9431_v11  ;;  %11625 = vst [vmem:[#allocation39_spill] sm:$0xff] %v9434_v36  ;;  %v9461_v44 = vmul.f32 %v9241_v58, %v11635_v56  ;;  %v2507_v13 = vmul.f32 %v9241_v58, %v11637_v12  ;;  %v2506_v7 = vmul.f32 %v9241_v58, %v11638_v51  ;;  %v5324_v3 = vld [vmem:[%s10776_s0 + $0x122] sm:$0xff]  ;;  %v11639_v29 = vld [vmem:[#allocation232_spill] sm:$0xff] }
 0x45c   :  { %11626 = vst [vmem:[#allocation126_spill] sm:$0xff] %v9437_v9  ;;  %11627 = vst [vmem:[#allocation127_spill] sm:$0xff] %v9440_v15  ;;  %v9475_v20 = vmul.f32 %v9241_v58, %v11639_v29  ;;  %v11641_v61 = vld [vmem:[#allocation239_spill] sm:$0xff]  ;;  %v11642_v50 = vld [vmem:[#allocation240_spill] sm:$0xff]  ;;  %v9590_v31 = vmul.f32 %v9241_v58, %v11678_v23 }
 0x45d   :  { %11628 = vst [vmem:[#allocation40_spill] sm:$0xff] %v9443_v0  ;;  %11629 = vst [vmem:[#allocation128_spill] sm:$0xff] %v9445_v32  ;;  %v2509_v14 = vmul.f32 %v9241_v58, %v11641_v61  ;;  %v2508_v19 = vmul.f32 %v9241_v58, %v11642_v50  ;;  %v11643_v33 = vld [vmem:[#allocation241_spill] sm:$0xff]  ;;  %v11646_v63 = vld [vmem:[#allocation242_spill] sm:$0xff]  ;;  %v9493_v61 = vpop.permute.xlu1 %3867  ;;  %v9495_v32 = vpop.permute.xlu0 %3862  ;;  %4324 = vperm.xlu1 %5451, %v5325_v22  }
 0x45e   :  { %11630 = vst [vmem:[#allocation129_spill] sm:$0xff] %v9447_v17  ;;  %11631 = vst [vmem:[#allocation130_spill] sm:$0xff] %v9450_v24  ;;  %v2511_v2 = vmul.f32 %v9241_v58, %v11643_v33  ;;  %v11644_v16 = vld [vmem:[#allocation233_spill] sm:$0xff]  ;;  %v2510_v56 = vmul.f32 %v9241_v58, %v11646_v63  ;;  %v11647_v12 = vld [vmem:[#allocation243_spill] sm:$0xff]  ;;  %4319 = vperm.xlu0 %5450, %v5324_v3  }
 0x45f   :  { %11634 = vst [vmem:[#allocation131_spill] sm:$0xff] %v9457_v49  ;;  %11636 = vst [vmem:[#allocation132_spill] sm:$0xff] %v9461_v44  ;;  %v9485_v21 = vmul.f32 %v9241_v58, %v11644_v16  ;;  %v2513_v51 = vmul.f32 %v9241_v58, %v11647_v12  ;;  %v11648_v29 = vld [vmem:[#allocation244_spill] sm:$0xff]  ;;  %v11649_v50 = vld [vmem:[#allocation234_spill] sm:$0xff]  ;;  %v9502_v16 = vadd.f32 %v2505_v34, %v9107_v4 }
 0x460   :  { %11640 = vst [vmem:[#allocation133_spill] sm:$0xff] %v9475_v20  ;;  %v2512_v17 = vmul.f32 %v9241_v58, %v11648_v29  ;;  %v9499_v33 = vmul.f32 %v9241_v58, %v11649_v50  ;;  %v11651_v49 = vld [vmem:[#allocation91_spill] sm:$0xff]  ;;  %v11652_v63 = vld [vmem:[#allocation92_spill] sm:$0xff]  ;;  %v11653_v29 = vld [vmem:[#allocation93_spill] sm:$0xff] }
 0x461   :  { %11645 = vst [vmem:[#allocation134_spill] sm:$0xff] %v9485_v21  ;;  %v9505_v24 = vadd.f32 %v2504_v60, %v11651_v49  ;;  %v9508_v12 = vadd.f32 %v2507_v13, %v11652_v63  ;;  %v9511_v0 = vadd.f32 %v2506_v7, %v11653_v29  ;;  %v11654_v15 = vld [vmem:[#allocation245_spill] sm:$0xff]  ;;  %v11655_v36 = vld [vmem:[#allocation246_spill] sm:$0xff]  ;;  %v11657_v49 = vld [vmem:[#allocation16_spill] sm:$0xff] }
 0x462   :  { %11650 = vst [vmem:[#allocation135_spill] sm:$0xff] %v9499_v33  ;;  %v2515_v9 = vmul.f32 %v9241_v58, %v11654_v15  ;;  %v2514_v50 = vmul.f32 %v9241_v58, %v11655_v36  ;;  %v9520_v4 = vld [vmem:[%s10777_s1 + $0x5] ss:$0 sm:$0xff]  ;;  %v5357_v34 = vld [vmem:[%s10776_s0 + $0x2da] sm:$0xff]  ;;  %v5356_v60 = vld [vmem:[%s10776_s0 + $0x2d2] sm:$0xff]  ;;  %v9529_v13 = vadd.f32 %v2509_v14, %v11657_v49 }
 0x463   :  { %11656 = vst [vmem:[#allocation136_spill] sm:$0xff] %v9520_v4  ;;  %v11658_v15 = vld [vmem:[#allocation17_spill] sm:$0xff]  ;;  %v11659_v36 = vld [vmem:[#allocation94_spill] sm:$0xff]  ;;  %v11660_v3 = vld [vmem:[#allocation247_spill] sm:$0xff]  ;;  %4484 = vperm.xlu1 %5451, %v5357_v34   ;;  %4479 = vperm.xlu0 %5450, %v5356_v60  }
 0x464   :  { %v9532_v7 = vadd.f32 %v2508_v19, %v11658_v15  ;;  %v9535_v22 = vadd.f32 %v2511_v2, %v11659_v36  ;;  %v2517_v63 = vmul.f32 %v9241_v58, %v11660_v3  ;;  %v11661_v29 = vld [vmem:[#allocation7_spill] sm:$0xff]  ;;  %v11664_v14 = vld [vmem:[#allocation248_spill] sm:$0xff]  ;;  %v9550_v19 = vpop.permute.xlu1 %3877  ;;  %v9552_v15 = vpop.permute.xlu0 %3872  ;;  %v11665_v2 = vld [vmem:[#allocation249_spill] sm:$0xff]  ;;  %11679 = vst [vmem:[#allocation138_spill] sm:$0xff] %v9590_v31 }
 0x465   :  { %v9540_v11 = vadd.f32 %v2510_v56, %v11661_v29  ;;  %v11662_v59 = vld [vmem:[#allocation19_spill] sm:$0xff]  ;;  %v2516_v49 = vmul.f32 %v9241_v58, %v11664_v14  ;;  %v2519_v36 = vmul.f32 %v9241_v58, %v11665_v2  ;;  %v11667_v29 = vld [vmem:[#allocation268_spill] sm:$0xff]  ;;  %v11670_v1 = vld [vmem:[#allocation269_spill] sm:$0xff]  ;;  %v2991_v2 = vmul.f32 %v9520_v4, %v11671_v42 }
 0x466   :  { %v9543_v40 = vadd.f32 %v2513_v51, %v11662_v59  ;;  %v11663_v53 = vld [vmem:[#allocation95_spill] sm:$0xff]  ;;  %v2989_v59 = vmul.f32 %v9520_v4, %v11667_v29  ;;  %v11669_v51 = vld [vmem:[#allocation97_spill] sm:$0xff]  ;;  %v2992_v52 = vmul.f32 %v9520_v4, %v11670_v1  ;;  %v11672_v60 = vld [vmem:[#allocation98_spill] sm:$0xff] }
 0x467   :  { %v9546_v45 = vadd.f32 %v2512_v17, %v11663_v53  ;;  %v11666_v3 = vld [vmem:[#allocation267_spill] sm:$0xff]  ;;  %v11668_v53 = vld [vmem:[#allocation96_spill] sm:$0xff]  ;;  %v9564_v14 = vadd.f32 %v2514_v50, %v11669_v51  ;;  %v11675_v51 = vld [vmem:[#allocation273_spill] sm:$0xff]  ;;  %v9613_v58 = vadd.f32 %v2991_v2, %v9327_v57 }
 0x468   :  { %v2990_v56 = vmul.f32 %v9520_v4, %v11666_v3  ;;  %v9561_v17 = vadd.f32 %v2515_v9, %v11668_v53  ;;  %v5296_v3 = vld [vmem:[%s10776_s0 + $0x309] sm:$0xff]  ;;  %v5295_v34 = vld [vmem:[%s10776_s0 + $0x301] sm:$0xff]  ;;  %v9577_v9 = vadd.f32 %v2517_v63, %v11672_v60  ;;  %v2996_v42 = vmul.f32 %v9520_v4, %v11675_v51  ;;  %v11676_v30 = vld [vmem:[#allocation101_spill] sm:$0xff]  ;;  %v9598_v20 = vpop.permute.xlu0 %3882 }
 0x469   :  { %v11673_v29 = vld [vmem:[#allocation271_spill] sm:$0xff]  ;;  %v11674_v53 = vld [vmem:[#allocation272_spill] sm:$0xff]  ;;  %v9586_v39 = vadd.f32 %v2516_v49, %v11676_v30  ;;  %v11680_v33 = vld [vmem:[#allocation274_spill] sm:$0xff]  ;;  %v9607_v49 = vadd.f32 %v2989_v59, %v9313_v46  ;;  %3987 = vperm.xlu1 %5451, %v5296_v3   ;;  %3982 = vperm.xlu0 %5450, %v5295_v34   ;;  %v9610_v23 = vadd.f32 %v2992_v52, %v9316_v6 }
 0x46a   :  { %v2994_v50 = vmul.f32 %v9520_v4, %v11673_v29  ;;  %v2993_v1 = vmul.f32 %v9520_v4, %v11674_v53  ;;  %v2995_v63 = vmul.f32 %v9520_v4, %v11680_v33  ;;  %v11681_v60 = vld [vmem:[#allocation275_spill] sm:$0xff]  ;;  %v9596_v29 = vpop.permute.xlu1 %3887  ;;  %v11682_v53 = vld [vmem:[#allocation102_spill] sm:$0xff]  ;;  %v9604_v30 = vadd.f32 %v2990_v56, %v9310_v10  ;;  %v11684_v33 = vld [vmem:[#allocation276_spill] sm:$0xff] }
 0x46b   :  { %11677 = vst [vmem:[#allocation137_spill] sm:$0xff] %v9586_v39  ;;  %v2998_v21 = vmul.f32 %v9520_v4, %v11681_v60  ;;  %v9601_v44 = vadd.f32 %v2519_v36, %v11682_v53  ;;  %v2997_v51 = vmul.f32 %v9520_v4, %v11684_v33  ;;  %v11685_v60 = vld [vmem:[#allocation277_spill] sm:$0xff]  ;;  %v5327_v10 = vld [vmem:[%s10776_s0 + $0x142] sm:$0xff]  ;;  %v9632_v57 = vadd.f32 %v2996_v42, %v9336_v35  ;;  %v11690_v33 = vld [vmem:[#allocation300_spill] sm:$0xff] }
 0x46c   :  { %v3000_v36 = vmul.f32 %v9520_v4, %v11685_v60  ;;  %v5326_v46 = vld [vmem:[%s10776_s0 + $0x13a] sm:$0xff]  ;;  %v9626_v52 = vadd.f32 %v2994_v50, %v9330_v26  ;;  %v9629_v6 = vadd.f32 %v2993_v1, %v9333_v38  ;;  %v9637_v2 = vadd.f32 %v2995_v63, %v9339_v55  ;;  %v11687_v34 = vld [vmem:[#allocation279_spill] sm:$0xff]  ;;  %v11688_v26 = vld [vmem:[#allocation280_spill] sm:$0xff]  ;;  %v9648_v1 = vpop.permute.xlu0 %3892 }
 0x46d   :  { %11683 = vst [vmem:[#allocation41_spill] sm:$0xff] %v9601_v44  ;;  %v11686_v56 = vld [vmem:[#allocation278_spill] sm:$0xff]  ;;  %v9640_v3 = vadd.f32 %v2998_v21, %v9342_v43  ;;  %v3002_v53 = vmul.f32 %v9520_v4, %v11687_v34  ;;  %v3001_v50 = vmul.f32 %v9520_v4, %v11688_v26  ;;  %v11689_v35 = vld [vmem:[#allocation299_spill] sm:$0xff]  ;;  %v3021_v55 = vmul.f32 %v9520_v4, %v11690_v33  ;;  %v11691_v63 = vld [vmem:[#allocation301_spill] sm:$0xff] }
 0x46e   :  { %v2999_v59 = vmul.f32 %v9520_v4, %v11686_v56  ;;  %v9646_v38 = vpop.permute.xlu1 %3897  ;;  %v3022_v42 = vmul.f32 %v9520_v4, %v11689_v35  ;;  %v3024_v43 = vmul.f32 %v9520_v4, %v11691_v63  ;;  %4334 = vperm.xlu1 %5451, %v5327_v10   ;;  %4329 = vperm.xlu0 %5450, %v5326_v46   ;;  %v11692_v56 = vld [vmem:[#allocation302_spill] sm:$0xff]  ;;  %v11693_v26 = vld [vmem:[#allocation303_spill] sm:$0xff]  ;;  %v5359_v33 = vld [vmem:[%s10776_s0 + $0x2f2] sm:$0xff] }
 0x46f   :  { %v9657_v21 = vadd.f32 %v2997_v51, %v9345_v47  ;;  %v9660_v60 = vadd.f32 %v3000_v36, %v9348_v8  ;;  %v3023_v34 = vmul.f32 %v9520_v4, %v11692_v56  ;;  %v3026_v35 = vmul.f32 %v9520_v4, %v11693_v26  ;;  %v5358_v10 = vld [vmem:[%s10776_s0 + $0x2ea] sm:$0xff]  ;;  %v11695_v36 = vld [vmem:[#allocation305_spill] sm:$0xff]  ;;  %v11696_v63 = vld [vmem:[#allocation306_spill] sm:$0xff] }
 0x470   :  { %v9673_v47 = vadd.f32 %v2999_v59, %v9355_v37  ;;  %v11694_v51 = vld [vmem:[#allocation304_spill] sm:$0xff]  ;;  %v3028_v46 = vmul.f32 %v9520_v4, %v11695_v36  ;;  %v3027_v56 = vmul.f32 %v9520_v4, %v11696_v63  ;;  %v9682_v26 = vadd.f32 %v3002_v53, %v9362_v25  ;;  %v11697_v62 = vld [vmem:[#allocation307_spill] sm:$0xff]  ;;  %v9698_v63 = vpop.permute.xlu0 %3902  ;;  %v11700_v44 = vld [vmem:[#allocation310_spill] sm:$0xff] }
 0x471   :  { %v3025_v8 = vmul.f32 %v9520_v4, %v11694_v51  ;;  %v9685_v27 = vadd.f32 %v3001_v50, %v9397_v54  ;;  %v3030_v18 = vmul.f32 %v9520_v4, %v11697_v62  ;;  %v11698_v37 = vld [vmem:[#allocation308_spill] sm:$0xff]  ;;  %v9694_v51 = vld [vmem:[%s10777_s1 + $0x6] ss:$0 sm:$0xff]  ;;  %v9701_v25 = vadd.f32 %v3022_v42, %v9502_v16  ;;  %v11714_v31 = vld [vmem:[#allocation65_spill] sm:$0xff] }
 0x472   :  { %v3029_v59 = vmul.f32 %v9520_v4, %v11698_v37  ;;  %v9696_v36 = vpop.permute.xlu1 %3907  ;;  %v9704_v54 = vadd.f32 %v3021_v55, %v9505_v24  ;;  %v9707_v62 = vadd.f32 %v3024_v43, %v9508_v12  ;;  %4494 = vperm.xlu1 %5451, %v5359_v33   ;;  %4489 = vperm.xlu0 %5450, %v5358_v10   ;;  %v11699_v37 = vld [vmem:[#allocation309_spill] sm:$0xff]  ;;  %v5298_v24 = vld [vmem:[%s10776_s0 + $0x321] sm:$0xff] }
 0x473   :  { %v9710_v53 = vadd.f32 %v3023_v34, %v9511_v0  ;;  %v9713_v50 = vadd.f32 %v3026_v35, %v9529_v13  ;;  %v3032_v48 = vmul.f32 %v9520_v4, %v11699_v37  ;;  %v3031_v16 = vmul.f32 %v9520_v4, %v11700_v44  ;;  %v5297_v12 = vld [vmem:[%s10776_s0 + $0x319] sm:$0xff]  ;;  %v11701_v55 = vld [vmem:[#allocation331_spill] sm:$0xff]  ;;  %v11702_v35 = vld [vmem:[#allocation332_spill] sm:$0xff] }
 0x474   :  { %v9726_v0 = vadd.f32 %v3025_v8, %v9532_v7  ;;  %v9729_v13 = vadd.f32 %v3028_v46, %v9535_v22  ;;  %v9732_v42 = vadd.f32 %v3027_v56, %v9540_v11  ;;  %v3508_v44 = vmul.f32 %v9694_v51, %v11701_v55  ;;  %v11703_v7 = vld [vmem:[#allocation333_spill] sm:$0xff]  ;;  %v9748_v8 = vpop.permute.xlu0 %3912  ;;  %v11704_v11 = vld [vmem:[#allocation334_spill] sm:$0xff]  ;;  %v11705_v56 = vld [vmem:[#allocation335_spill] sm:$0xff] }
 0x475   :  { %v9737_v43 = vadd.f32 %v3030_v18, %v9543_v40  ;;  %v9740_v34 = vadd.f32 %v3029_v59, %v9546_v45  ;;  %v3507_v33 = vmul.f32 %v9694_v51, %v11702_v35  ;;  %v3510_v10 = vmul.f32 %v9694_v51, %v11703_v7  ;;  %v11706_v40 = vld [vmem:[#allocation336_spill] sm:$0xff]  ;;  %v9759_v59 = vld [vmem:[%s10777_s1 + $0x7] ss:$0 sm:$0xff]  ;;  %v11707_v35 = vld [vmem:[#allocation311_spill] sm:$0xff] }
 0x476   :  { %v9746_v22 = vpop.permute.xlu1 %3917  ;;  %v3509_v46 = vmul.f32 %v9694_v51, %v11704_v11  ;;  %v3512_v18 = vmul.f32 %v9694_v51, %v11705_v56  ;;  %v3511_v45 = vmul.f32 %v9694_v51, %v11706_v40  ;;  %3997 = vperm.xlu1 %5451, %v5298_v24   ;;  %3992 = vperm.xlu0 %5450, %v5297_v12   ;;  %v11709_v11 = vld [vmem:[#allocation337_spill] sm:$0xff] }
 0x477   :  { %v9762_v37 = vadd.f32 %v3032_v48, %v9561_v17  ;;  %v9765_v55 = vadd.f32 %v3031_v16, %v9564_v14  ;;  %v9769_v7 = vmul.f32 %v9520_v4, %v11707_v35  ;;  %v3514_v56 = vmul.f32 %v9694_v51, %v11709_v11  ;;  %v5329_v40 = vld [vmem:[%s10776_s0 + $0x15a] sm:$0xff]  ;;  %v5328_v24 = vld [vmem:[%s10776_s0 + $0x152] sm:$0xff]  ;;  %v11713_v35 = vld [vmem:[#allocation339_spill] sm:$0xff] }
 0x478   :  { %v11710_v48 = vld [vmem:[#allocation312_spill] sm:$0xff]  ;;  %v3572_v14 = vadd.f32 %v3508_v44, %v9604_v30  ;;  %v11712_v16 = vld [vmem:[#allocation338_spill] sm:$0xff]  ;;  %v3516_v11 = vmul.f32 %v9694_v51, %v11713_v35  ;;  %v3571_v28 = vadd.f32 %v3507_v33, %v9607_v49  ;;  %v3574_v5 = vadd.f32 %v3510_v10, %v9610_v23  ;;  %v11715_v39 = vld [vmem:[#allocation369_spill] sm:$0xff] }
 0x479   :  { %11708 = vst [vmem:[#allocation42_spill] sm:$0xff] %v9769_v7  ;;  %v9781_v17 = vmul.f32 %v9520_v4, %v11710_v48  ;;  %v3513_v12 = vmul.f32 %v9694_v51, %v11712_v16  ;;  %v4025_v41 = vmul.f32 %v9759_v59, %v11714_v31  ;;  %v4024_v7 = vmul.f32 %v9759_v59, %v11715_v39  ;;  %v9796_v4 = vpop.permute.xlu0 %3922  ;;  %v11718_v31 = vld [vmem:[#allocation340_spill] sm:$0xff]  ;;  %v11719_v23 = vld [vmem:[#allocation341_spill] sm:$0xff]  ;;  %v11720_v10 = vld [vmem:[#allocation342_spill] sm:$0xff] }
 0x47a   :  { %v9794_v48 = vpop.permute.xlu1 %3927  ;;  %11717 = vst [vmem:[#allocation46_spill] sm:$0xff] %v9796_v4  ;;  %v3573_v30 = vadd.f32 %v3509_v46, %v9613_v58  ;;  %v9800_v44 = vadd.f32 %v3512_v18, %v9626_v52  ;;  %v9803_v16 = vadd.f32 %v3511_v45, %v9629_v6  ;;  %4344 = vperm.xlu1 %5451, %v5329_v40   ;;  %v9817_v52 = vld [vmem:[%s10777_s1 + $0x8] ss:$0 sm:$0xff]  ;;  %v5361_v6 = vld [vmem:[%s10776_s0 + $0x30a] sm:$0xff]  ;;  %v11724_v4 = vld [vmem:[#allocation70_spill] sm:$0xff] }
 0x47b   :  { %11711 = vst [vmem:[#allocation139_spill] sm:$0xff] %v9781_v17  ;;  %11716 = vst [vmem:[#allocation45_spill] sm:$0xff] %v9794_v48  ;;  %4339 = vperm.xlu0 %5450, %v5328_v24   ;;  %v9806_v49 = vadd.f32 %v3514_v56, %v9632_v57  ;;  %v3515_v39 = vmul.f32 %v9694_v51, %v11718_v31  ;;  %v3518_v33 = vmul.f32 %v9694_v51, %v11719_v23  ;;  %v5360_v57 = vld [vmem:[%s10776_s0 + $0x302] sm:$0xff]  ;;  %v11722_v40 = vld [vmem:[#allocation364_spill] sm:$0xff] }
 0x47c   :  { %v3517_v58 = vmul.f32 %v9694_v51, %v11720_v10  ;;  %v9826_v46 = vadd.f32 %v3513_v12, %v9637_v2  ;;  %v9829_v18 = vadd.f32 %v3516_v11, %v9640_v3  ;;  %v11721_v45 = vld [vmem:[#allocation363_spill] sm:$0xff]  ;;  %v3539_v24 = vmul.f32 %v9694_v51, %v11722_v40  ;;  %v11723_v35 = vld [vmem:[#allocation376_spill] sm:$0xff] }
 0x47d   :  { %v3540_v56 = vmul.f32 %v9694_v51, %v11721_v45  ;;  %v3542_v31 = vmul.f32 %v9694_v51, %v11723_v35  ;;  %v4089_v23 = vadd.f32 %v4025_v41, %v3572_v14  ;;  %v4088_v10 = vadd.f32 %v4024_v7, %v3571_v28  ;;  %v4220_v2 = vpop.permute.xlu0 %4219  ;;  %v11725_v12 = vld [vmem:[#allocation71_spill] sm:$0xff] }
 0x47e   :  { %v4027_v48 = vmul.f32 %v9759_v59, %v11724_v4  ;;  %v4225_v17 = vpop.permute.xlu1 %4224  ;;  %v4026_v3 = vmul.f32 %v9759_v59, %v11725_v12  ;;  %v4541_v45 = vmul.f32 %v9817_v52, %v4220_v2  ;;  %4504 = vperm.xlu1 %5451, %v5361_v6   ;;  %v9844_v40 = vadd.f32 %v3515_v39, %v9657_v21  ;;  %v11726_v4 = vld [vmem:[#allocation377_spill] sm:$0xff]  ;;  %v11727_v14 = vld [vmem:[#allocation343_spill] sm:$0xff] }
 0x47f   :  { %v4542_v11 = vmul.f32 %v9817_v52, %v4225_v17  ;;  %4499 = vperm.xlu0 %5450, %v5360_v57   ;;  %v9847_v41 = vadd.f32 %v3518_v33, %v9660_v60  ;;  %v9850_v28 = vadd.f32 %v3517_v58, %v9673_v47  ;;  %v3541_v7 = vmul.f32 %v9694_v51, %v11726_v4  ;;  %v5300_v17 = vld [vmem:[%s10776_s0 + $0x339] sm:$0xff]  ;;  %v9865_v60 = vld [vmem:[%s10777_s1 + $0x9] ss:$0 sm:$0xff]  ;;  %v5299_v33 = vld [vmem:[%s10776_s0 + $0x331] sm:$0xff] }
 0x480   :  { %v9859_v6 = vmul.f32 %v9694_v51, %v11727_v14  ;;  %v3604_v21 = vadd.f32 %v3540_v56, %v9701_v25  ;;  %v4605_v39 = vadd.f32 %v4541_v45, %v4088_v10  ;;  %v3603_v58 = vadd.f32 %v3539_v24, %v9704_v54  ;;  %v11728_v54 = vld [vmem:[#allocation11_spill] sm:$0xff]  ;;  %v11732_v14 = vld [vmem:[#allocation8_spill] sm:$0xff] }
 0x481   :  { %v4606_v47 = vadd.f32 %v4542_v11, %v4089_v23  ;;  %v3606_v57 = vadd.f32 %v3542_v31, %v9707_v62  ;;  %v4057_v35 = vmul.f32 %v9759_v59, %v9493_v61  ;;  %v4056_v25 = vmul.f32 %v9759_v59, %v9495_v32  ;;  %v4230_v2 = vpop.permute.xlu0 %4229  ;;  %v11729_v32 = vld [vmem:[#allocation12_spill] sm:$0xff] }
 0x482   :  { %v4235_v56 = vpop.permute.xlu1 %4234  ;;  %v4091_v12 = vadd.f32 %v4027_v48, %v3574_v5  ;;  %v4090_v4 = vadd.f32 %v4026_v3, %v3573_v30  ;;  %v4543_v10 = vmul.f32 %v9817_v52, %v4230_v2  ;;  %4007 = vperm.xlu1 %5451, %v5300_v17   ;;  %v3605_v11 = vadd.f32 %v3541_v7, %v9710_v53  ;;  %v5331_v5 = vld [vmem:[%s10776_s0 + $0x172] sm:$0xff]  ;;  %v11730_v30 = vld [vmem:[#allocation18_spill] sm:$0xff]  ;;  %v5330_v45 = vld [vmem:[%s10776_s0 + $0x16a] sm:$0xff] }
 0x483   :  { %v4544_v23 = vmul.f32 %v9817_v52, %v4235_v56  ;;  %v3544_v62 = vmul.f32 %v9694_v51, %v11728_v54  ;;  %v4675_v24 = vadd.f32 %v9865_v60, %v4606_v47  ;;  %v4674_v61 = vadd.f32 %v9865_v60, %v4605_v39  ;;  %4002 = vperm.xlu0 %5450, %v5299_v33   ;;  %v11731_v7 = vld [vmem:[#allocation6_spill] sm:$0xff] }
 0x484   :  { %v3543_v48 = vmul.f32 %v9694_v51, %v11729_v32  ;;  %v3546_v31 = vmul.f32 %v9694_v51, %v11730_v30  ;;  %v4607_v53 = vadd.f32 %v4543_v10, %v4090_v4  ;;  %v3545_v17 = vmul.f32 %v9694_v51, %v11731_v7 }
 0x485   :  { %v4608_v3 = vadd.f32 %v4544_v23, %v4091_v12  ;;  %v3548_v47 = vmul.f32 %v9694_v51, %v11732_v14  ;;  %v4121_v39 = vadd.f32 %v4057_v35, %v3604_v21  ;;  %v4120_v33 = vadd.f32 %v4056_v25, %v3603_v58  ;;  %v4380_v2 = vpop.permute.xlu0 %4379  ;;  %v5363_v58 = vld [vmem:[%s10776_s0 + $0x322] sm:$0xff] }
 0x486   :  { %v4385_v56 = vpop.permute.xlu1 %4384  ;;  %v4676_v32 = vadd.f32 %v9865_v60, %v4607_v53  ;;  %v4573_v4 = vmul.f32 %v9817_v52, %v4380_v2  ;;  %4354 = vperm.xlu1 %5451, %v5331_v5   ;;  %v4059_v23 = vmul.f32 %v9759_v59, %v9550_v19  ;;  %v4058_v10 = vmul.f32 %v9759_v59, %v9552_v15  ;;  %v5362_v5 = vld [vmem:[%s10776_s0 + $0x31a] sm:$0xff] }
 0x487   :  { %v4677_v54 = vadd.f32 %v9865_v60, %v4608_v3  ;;  %v4574_v12 = vmul.f32 %v9817_v52, %v4385_v56  ;;  %v4739_v30 = vmax.f32 %v4675_v24, 0.0  ;;  %v4738_v21 = vmax.f32 %v4674_v61, 0.0  ;;  %4349 = vperm.xlu0 %5450, %v5330_v45   ;;  %v11733_v14 = vld [vmem:[#allocation74_spill] sm:$0xff] }
 0x488   :  { %v4740_v25 = vmax.f32 %v4676_v32, 0.0  ;;  %v4637_v53 = vadd.f32 %v4573_v4, %v4120_v33  ;;  %v3608_v19 = vadd.f32 %v3544_v62, %v9713_v50  ;;  %v3607_v7 = vadd.f32 %v3543_v48, %v9726_v0  ;;  %v11734_v33 = vld [vmem:[#allocation75_spill] sm:$0xff]  ;;  %v5302_v62 = vld [vmem:[%s10776_s0 + $0x351] sm:$0xff] }
 0x489   :  { %v4741_v35 = vmax.f32 %v4677_v54, 0.0  ;;  %v4638_v3 = vadd.f32 %v4574_v12, %v4121_v39  ;;  %v9914_v15 = vadd.f32 %v3546_v31, %v9729_v13  ;;  %v9917_v24 = vadd.f32 %v3545_v17, %v9732_v42  ;;  %v4390_v45 = vpop.permute.xlu0 %4389  ;;  %v11735_v31 = vld [vmem:[#allocation9_spill] sm:$0xff] }
 0x48a   :  { %v4395_v61 = vpop.permute.xlu1 %4394  ;;  %v4029_v39 = vmul.f32 %v9759_v59, %v11733_v14  ;;  %v4028_v56 = vmul.f32 %v9759_v59, %v11734_v33  ;;  %v9925_v54 = vadd.f32 %v4740_v25, %v4738_v21  ;;  %4514 = vperm.xlu1 %5451, %v5363_v58   ;;  %v4123_v50 = vadd.f32 %v4059_v23, %v3606_v57  ;;  %v11736_v58 = vld [vmem:[#allocation2_spill] sm:$0xff]  ;;  %v11737_v25 = vld [vmem:[#allocation3_spill] sm:$0xff] }
 0x48b   :  { %v9923_v2 = vadd.f32 %v4741_v35, %v4739_v30  ;;  %v4122_v0 = vadd.f32 %v4058_v10, %v3605_v11  ;;  %v4576_v13 = vmul.f32 %v9817_v52, %v4395_v61  ;;  %v4575_v42 = vmul.f32 %v9817_v52, %v4390_v45  ;;  %4509 = vperm.xlu0 %5450, %v5362_v5   ;;  %v5301_v11 = vld [vmem:[%s10776_s0 + $0x349] sm:$0xff] }
 0x48c   :  { %v9933_v48 = vadd.f32 %v3548_v47, %v9737_v43  ;;  %v3547_v17 = vmul.f32 %v9694_v51, %v11735_v31  ;;  %v4061_v32 = vmul.f32 %v9759_v59, %v9596_v29  ;;  %v4060_v57 = vmul.f32 %v9759_v59, %v9598_v20 }
 0x48d   :  { %v4707_v12 = vadd.f32 %v9865_v60, %v4638_v3  ;;  %v4706_v4 = vadd.f32 %v9865_v60, %v4637_v53  ;;  %v4640_v23 = vadd.f32 %v4576_v13, %v4123_v50  ;;  %v4639_v43 = vadd.f32 %v4575_v42, %v4122_v0  ;;  %v4240_v10 = vpop.permute.xlu0 %4239 }
 0x48e   :  { %v4245_v47 = vpop.permute.xlu1 %4244  ;;  %v4093_v30 = vadd.f32 %v4029_v39, %v9800_v44  ;;  %v4092_v21 = vadd.f32 %v4028_v56, %v9803_v16  ;;  %v4545_v20 = vmul.f32 %v9817_v52, %v4240_v10  ;;  %4017 = vperm.xlu1 %5451, %v5302_v62   ;;  %v4031_v35 = vmul.f32 %v9759_v59, %v11736_v58  ;;  %v5333_v44 = vld [vmem:[%s10776_s0 + $0x18a] sm:$0xff]  ;;  %v5332_v39 = vld [vmem:[%s10776_s0 + $0x182] sm:$0xff] }
 0x48f   :  { %v4546_v29 = vmul.f32 %v9817_v52, %v4245_v47  ;;  %v4030_v3 = vmul.f32 %v9759_v59, %v11737_v25  ;;  %v4709_v53 = vadd.f32 %v9865_v60, %v4640_v23  ;;  %v4708_v5 = vadd.f32 %v9865_v60, %v4639_v43  ;;  %4012 = vperm.xlu0 %5450, %v5301_v11   ;;  %v5365_v23 = vld [vmem:[%s10776_s0 + $0x33a] sm:$0xff] }
 0x490   :  { %v4125_v16 = vadd.f32 %v4061_v32, %v3608_v19  ;;  %v4124_v61 = vadd.f32 %v4060_v57, %v3607_v7  ;;  %v4609_v14 = vadd.f32 %v4545_v20, %v4092_v21  ;;  %v4771_v33 = vmax.f32 %v4707_v12, 0.0  ;;  %v11738_v32 = vld [vmem:[#allocation5_spill] sm:$0xff] }
 0x491   :  { %v4610_v45 = vadd.f32 %v4546_v29, %v4093_v30  ;;  %v4770_v56 = vmax.f32 %v4706_v4, 0.0  ;;  %v4773_v50 = vmax.f32 %v4709_v53, 0.0  ;;  %v4772_v0 = vmax.f32 %v4708_v5, 0.0  ;;  %v4400_v42 = vpop.permute.xlu0 %4399  ;;  %v5364_v21 = vld [vmem:[%s10776_s0 + $0x332] sm:$0xff] }
 0x492   :  { %v4405_v13 = vpop.permute.xlu1 %4404  ;;  %v4678_v31 = vadd.f32 %v9865_v60, %v4609_v14  ;;  %v4577_v19 = vmul.f32 %v9817_v52, %v4400_v42  ;;  %4364 = vperm.xlu1 %5451, %v5333_v44   ;;  %v9967_v7 = vadd.f32 %v3547_v17, %v9740_v34  ;;  %v4033_v57 = vmul.f32 %v9759_v59, %v11738_v32 }
 0x493   :  { %v4679_v62 = vadd.f32 %v9865_v60, %v4610_v45  ;;  %v4578_v11 = vmul.f32 %v9817_v52, %v4405_v13  ;;  %v4847_v12 = vadd.f32 %v4773_v50, %v4771_v33  ;;  %v4832_v4 = vadd.f32 %v4772_v0, %v4770_v56  ;;  %4359 = vperm.xlu0 %5450, %v5332_v39   ;;  %v5334_v45 = vld [vmem:[%s10776_s0 + $0x19a] sm:$0xff] }
 0x494   :  { %v4742_v47 = vmax.f32 %v4678_v31, 0.0  ;;  %v4641_v30 = vadd.f32 %v4577_v19, %v4124_v61  ;;  %v4095_v34 = vadd.f32 %v4031_v35, %v9806_v49  ;;  %v4094_v17 = vadd.f32 %v4030_v3, %v9826_v46  ;;  %v11739_v46 = vld [vmem:[#allocation13_spill] sm:$0xff] }
 0x495   :  { %v4743_v43 = vmax.f32 %v4679_v62, 0.0  ;;  %v4642_v10 = vadd.f32 %v4578_v11, %v4125_v16  ;;  %v4063_v29 = vmul.f32 %v9759_v59, %v9646_v38  ;;  %v4062_v20 = vmul.f32 %v9759_v59, %v9648_v1  ;;  %v4250_v25 = vpop.permute.xlu0 %4249 }
 0x496   :  { %v4255_v58 = vpop.permute.xlu1 %4254  ;;  %v4803_v5 = vadd.f32 %v9925_v54, %v4742_v47  ;;  %v4710_v16 = vadd.f32 %v9865_v60, %v4641_v30  ;;  %4524 = vperm.xlu1 %5451, %v5365_v23   ;;  %v4097_v49 = vadd.f32 %v4033_v57, %v9829_v18  ;;  %v4032_v35 = vmul.f32 %v9759_v59, %v11739_v46  ;;  %v4885_v54 = vld [vmem:[%s10778_s2] sm:$0xff]  ;;  %v4886_v18 = vld [vmem:[%s10778_s2 + $0x8] sm:$0xff]  ;;  %v5367_v57 = vld [vmem:[%s10776_s0 + $0x352] sm:$0xff] }
 0x497   :  { %v4818_v53 = vadd.f32 %v9923_v2, %v4743_v43  ;;  %v4711_v44 = vadd.f32 %v9865_v60, %v4642_v10  ;;  %v4548_v38 = vmul.f32 %v9817_v52, %v4255_v58  ;;  %v4547_v1 = vmul.f32 %v9817_v52, %v4250_v25  ;;  %4519 = vperm.xlu0 %5450, %v5364_v21   ;;  %v5335_v2 = vld [vmem:[%s10776_s0 + $0x1a2] sm:$0xff]  ;;  %v11740_v23 = vld [vmem:[#allocation80_spill] sm:$0xff] }
 0x498   :  { %v4774_v61 = vmax.f32 %v4710_v16, 0.0  ;;  %v5423_v14 = vpack.c.bf16 %v4886_v18, %v4885_v54  ;;  %v4127_v39 = vadd.f32 %v4063_v29, %v9914_v15  ;;  %v4126_v33 = vadd.f32 %v4062_v20, %v9917_v24  ;;  %v5366_v10 = vld [vmem:[%s10776_s0 + $0x34a] sm:$0xff]  ;;  %v11741_v21 = vld [vmem:[#allocation14_spill] sm:$0xff] }
 0x499   :  { %v4775_v3 = vmax.f32 %v4711_v44, 0.0  ;;  %v4612_v56 = vadd.f32 %v4548_v38, %v4095_v34  ;;  %v4611_v50 = vadd.f32 %v4547_v1, %v4094_v17  ;;  %v4410_v13 = vpop.permute.xlu0 %4409  ;;  %v5459_v42 = vmov 0.0|0.0   ;;  %v4890_v54 = vld [vmem:[%s10778_s2 + $0x28] sm:$0xff] }
 0x49a   :  { %v4415_v0 = vpop.permute.xlu1 %4414  ;;  %5422 = vmatprep.subr.bf16.mxu0 %v5459_v42  ;;  %v4833_v31 = vadd.f32 %v4832_v4, %v4774_v61  ;;  %v4579_v19 = vmul.f32 %v9817_v52, %v4410_v13  ;;  %4374 = vperm.xlu1 %5451, %v5335_v2   ;;  %v4096_v32 = vadd.f32 %v4032_v35, %v9844_v40  ;;  %v4888_v4 = vld [vmem:[%s10778_s2 + $0x18] sm:$0xff] }
 0x49b   :  { %v4848_v62 = vadd.f32 %v4847_v12, %v4775_v3  ;;  %v4580_v11 = vmul.f32 %v9817_v52, %v4415_v0  ;;  %v4681_v15 = vadd.f32 %v9865_v60, %v4612_v56  ;;  %v4680_v24 = vadd.f32 %v9865_v60, %v4611_v50  ;;  %4369 = vperm.xlu0 %5450, %v5334_v45   ;;  %v4887_v12 = vld [vmem:[%s10778_s2 + $0x10] sm:$0xff] }
 0x49c   :  { %5424 = vmatpush3.bf16.msra.mxu0 %v5423_v14  ;;  %v4035_v40 = vmul.f32 %v9759_v59, %v11740_v23  ;;  %v4643_v47 = vadd.f32 %v4579_v19, %v4126_v33  ;;  %v5426_v30 = vpack.c.bf16 %v4888_v4, %v4887_v12  ;;  %v4034_v34 = vmul.f32 %v9759_v59, %v11741_v21  ;;  %v11742_v14 = vld [vmem:[#allocation10_spill] sm:$0xff] }
 0x49d   :  { %v4644_v43 = vadd.f32 %v4580_v11, %v4127_v39  ;;  %5425 = vmatprep.subr.bf16.mxu0 %v5459_v42  ;;  %v4065_v17 = vmul.f32 %v9759_v59, %v9696_v36  ;;  %v4745_v29 = vmax.f32 %v4681_v15, 0.0  ;;  %v4744_v20 = vmax.f32 %v4680_v24, 0.0  ;;  %v4260_v25 = vpop.permute.xlu0 %4259  ;;  %v4889_v36 = vld [vmem:[%s10778_s2 + $0x20] sm:$0xff] }
 0x49e   :  { %v4265_v58 = vpop.permute.xlu1 %4264  ;;  %v4712_v16 = vadd.f32 %v9865_v60, %v4643_v47  ;;  %v4549_v35 = vmul.f32 %v9817_v52, %v4260_v25  ;;  %4534 = vperm.xlu1 %5451, %v5367_v57   ;;  %v4064_v38 = vmul.f32 %v9759_v59, %v9698_v63  ;;  %v3550_v63 = vmul.f32 %v9694_v51, %v11742_v14 }
 0x49f   :  { %v4713_v44 = vadd.f32 %v9865_v60, %v4644_v43  ;;  %v4550_v46 = vmul.f32 %v9817_v52, %v4265_v58  ;;  %v4819_v1 = vadd.f32 %v4818_v53, %v4745_v29  ;;  %v4804_v2 = vadd.f32 %v4803_v5, %v4744_v20  ;;  %4529 = vperm.xlu0 %5450, %v5366_v10   ;;  %v11743_v53 = vld [vmem:[#allocation20_spill] sm:$0xff]  ;;  %v4894_v20 = vld [vmem:[%s10778_s2 + $0x48] sm:$0xff] }
 0x4a0   :  { %5427 = vmatpush3.bf16.msra.mxu0 %v5426_v30  ;;  %v4776_v3 = vmax.f32 %v4712_v16, 0.0  ;;  %v4613_v45 = vadd.f32 %v4549_v35, %v4096_v32  ;;  %v3549_v5 = vmul.f32 %v9694_v51, %v11743_v53  ;;  %v4099_v39 = vadd.f32 %v4035_v40, %v9847_v41  ;;  %v4891_v41 = vld [vmem:[%s10778_s2 + $0x30] sm:$0xff] }
 0x4a1   :  { %v4777_v18 = vmax.f32 %v4713_v44, 0.0  ;;  %v4614_v61 = vadd.f32 %v4550_v46, %v4097_v49  ;;  %5428 = vmatprep.subr.bf16.mxu0 %v5459_v42  ;;  %v4420_v56 = vpop.permute.xlu0 %4419  ;;  %v5429_v50 = vpack.c.bf16 %v4890_v54, %v4889_v36  ;;  %v4129_v19 = vadd.f32 %v4065_v17, %v9933_v48  ;;  %v11744_v58 = vld [vmem:[#allocation344_spill] sm:$0xff] }
 0x4a2   :  { %v4425_v33 = vpop.permute.xlu1 %4424  ;;  %v4834_v13 = vadd.f32 %v4833_v31, %v4776_v3  ;;  %v4682_v49 = vadd.f32 %v9865_v60, %v4613_v45  ;;  %v4128_v32 = vadd.f32 %v4064_v38, %v9967_v7  ;;  %v4581_v24 = vmul.f32 %v9817_v52, %v4420_v56  ;;  %v11745_v45 = vld [vmem:[#allocation82_spill] sm:$0xff] }
 0x4a3   :  { %v4849_v0 = vadd.f32 %v4848_v62, %v4777_v18  ;;  %v4683_v11 = vadd.f32 %v9865_v60, %v4614_v61  ;;  %v4582_v15 = vmul.f32 %v9817_v52, %v4425_v33  ;;  %v4892_v62 = vld [vmem:[%s10778_s2 + $0x38] sm:$0xff]  ;;  %v4098_v31 = vadd.f32 %v4034_v34, %v9850_v28 }
 0x4a4   :  { %5430 = vmatpush3.bf16.msra.mxu0 %v5429_v50  ;;  %v4746_v12 = vmax.f32 %v4682_v49, 0.0  ;;  %v5432_v48 = vpack.c.bf16 %v4892_v62, %v4891_v41  ;;  %v4067_v7 = vmul.f32 %v9759_v59, %v9746_v22  ;;  %v4066_v4 = vmul.f32 %v9759_v59, %v9748_v8  ;;  %v4893_v8 = vld [vmem:[%s10778_s2 + $0x40] sm:$0xff] }
 0x4a5   :  { %v4747_v57 = vmax.f32 %v4683_v11, 0.0  ;;  %5431 = vmatprep.subr.bf16.mxu0 %v5459_v42  ;;  %v4646_v23 = vadd.f32 %v4582_v15, %v4129_v19  ;;  %v4645_v40 = vadd.f32 %v4581_v24, %v4128_v32  ;;  %v4270_v47 = vpop.permute.xlu0 %4269  ;;  %v3614_v34 = vadd.f32 %v3550_v63, %v9762_v37  ;;  %v4897_v19 = vld [vmem:[%s10778_s2 + $0x60] sm:$0xff]  ;;  %v4898_v32 = vld [vmem:[%s10778_s2 + $0x68] sm:$0xff] }
 0x4a6   :  { %v4275_v43 = vpop.permute.xlu1 %4274  ;;  %v4805_v30 = vadd.f32 %v4804_v2, %v4746_v12  ;;  %v4551_v28 = vmul.f32 %v9817_v52, %v4270_v47  ;;  %v3613_v17 = vadd.f32 %v3549_v5, %v9765_v55  ;;  %v3519_v25 = vmul.f32 %v9694_v51, %v11744_v58  ;;  %v4895_v5 = vld [vmem:[%s10778_s2 + $0x50] sm:$0xff]  ;;  %v11747_v12 = vld [vmem:[#allocation21_spill] sm:$0xff] }
 0x4a7   :  { %v4820_v10 = vadd.f32 %v4819_v1, %v4747_v57  ;;  %v4552_v21 = vmul.f32 %v9817_v52, %v4275_v43  ;;  %v4715_v29 = vadd.f32 %v9865_v60, %v4646_v23  ;;  %v4714_v22 = vadd.f32 %v9865_v60, %v4645_v40  ;;  %v11749_v40 = vld [vmem:[#allocation42_spill] sm:$0xff]  ;;  %v11750_v47 = vld [vmem:[#allocation137_spill] sm:$0xff] }
 0x4a8   :  { %5433 = vmatpush3.bf16.msra.mxu0 %v5432_v48  ;;  %v4615_v37 = vadd.f32 %v4551_v28, %v4098_v31  ;;  %v5435_v55 = vpack.c.bf16 %v4894_v20, %v4893_v8  ;;  %v4131_v16 = vadd.f32 %v4067_v7, %v3614_v34  ;;  %v4130_v46 = vadd.f32 %v4066_v4, %v3613_v17  ;;  %v11748_v7 = vld [vmem:[#allocation22_spill] sm:$0xff]  ;;  %v4900_v34 = vld [vmem:[%s10778_s2 + $0x78] sm:$0xff] }
 0x4a9   :  { %v4616_v44 = vadd.f32 %v4552_v21, %v4099_v39  ;;  %5434 = vmatprep.subr.bf16.mxu0 %v5459_v42  ;;  %v4779_v35 = vmax.f32 %v4715_v29, 0.0  ;;  %v4778_v38 = vmax.f32 %v4714_v22, 0.0  ;;  %v4430_v2 = vpop.permute.xlu0 %4429  ;;  %v3584_v61 = vadd.f32 %v9859_v6, %v9682_v26  ;;  %v4896_v39 = vld [vmem:[%s10778_s2 + $0x58] sm:$0xff]  ;;  %v11746_v26 = vld [vmem:[#allocation15_spill] sm:$0xff]  ;;  %v11753_v8 = vld [vmem:[#allocation46_spill] sm:$0xff] }
 0x4aa   :  { %v4435_v1 = vpop.permute.xlu1 %4434  ;;  %v4684_v54 = vadd.f32 %v9865_v60, %v4615_v37  ;;  %v4583_v3 = vmul.f32 %v9817_v52, %v4430_v2  ;;  %v4037_v14 = vmul.f32 %v9759_v59, %v11745_v45  ;;  %v4036_v6 = vmul.f32 %v9759_v59, %v11746_v26  ;;  %v11752_v22 = vld [vmem:[#allocation45_spill] sm:$0xff] }
 0x4ab   :  { %v4685_v36 = vadd.f32 %v9865_v60, %v4616_v44  ;;  %v4584_v18 = vmul.f32 %v9817_v52, %v4435_v1  ;;  %v4850_v63 = vadd.f32 %v4849_v0, %v4779_v35  ;;  %v4835_v53 = vadd.f32 %v4834_v13, %v4778_v38  ;;  %v11755_v35 = vld [vmem:[#allocation138_spill] sm:$0xff] }
 0x4ac   :  { %5436 = vmatpush3.bf16.msra.mxu0 %v5435_v55  ;;  %v4748_v56 = vmax.f32 %v4684_v54, 0.0  ;;  %v4647_v11 = vadd.f32 %v4583_v3, %v4130_v46  ;;  %v5438_v49 = vpack.c.bf16 %v4896_v39, %v4895_v5  ;;  %v5461_v31 = vmov 0.0   ;;  %v11754_v46 = vld [vmem:[#allocation105_spill] sm:$0xff]  ;;  %v10142_v54 = vld [vmem:[%s10777_s1 + $0x4] ss:$0 sm:$0xff]  ;;  %v11759_v5 = vld [vmem:[#allocation136_spill] sm:$0xff] }
 0x4ad   :  { %v4749_v33 = vmax.f32 %v4685_v36, 0.0  ;;  %v4648_v50 = vadd.f32 %v4584_v18, %v4131_v16  ;;  %5437 = vmatprep.subr.bf16.mxu0 %v5459_v42  ;;  %v10101_v13 = vpop.permute.xlu0 %3932  ;;  %5419 = vmatprep.mubr.msk.f32.mxu0 %vm5460_vm0, %v5461_v31  ;;  %v3583_v57 = vadd.f32 %v3519_v25, %v9685_v27  ;;  %v3552_v48 = vmul.f32 %v9694_v51, %v11747_v12  ;;  %v4899_v27 = vld [vmem:[%s10778_s2 + $0x70] sm:$0xff]  ;;  %v11756_v18 = vld [vmem:[#allocation251_spill] sm:$0xff]  ;;  %v11762_v31 = vld [vmem:[#allocation314_spill] sm:$0xff] }
 0x4ae   :  { %v10099_v0 = vpop.permute.xlu1 %3937  ;;  %v10111_v24 = vadd.f32 %v4805_v30, %v4748_v56  ;;  %v4716_v62 = vadd.f32 %v9865_v60, %v4647_v11  ;;  %v3551_v4 = vmul.f32 %v9694_v51, %v11748_v7  ;;  %v5441_v23 = vpack.c.bf16 %v4898_v32, %v4897_v19  ;;  %v11763_v12 = vld [vmem:[#allocation345_spill] sm:$0xff]  ;;  %v11764_v7 = vld [vmem:[#allocation346_spill] sm:$0xff] }
 0x4af   :  { %v10109_v15 = vadd.f32 %v4820_v10, %v4749_v33  ;;  %v4717_v41 = vadd.f32 %v9865_v60, %v4648_v50  ;;  %v3098_v43 = vadd.f32 %v11749_v40, %v9577_v9  ;;  %v11751_v10 = vld [vmem:[#allocation139_spill] sm:$0xff]  ;;  %v4101_v17 = vadd.f32 %v4037_v14, %v3584_v61  ;;  %v11757_v61 = vld [vmem:[#allocation252_spill] sm:$0xff]  ;;  %v11760_v33 = vld [vmem:[#allocation282_spill] sm:$0xff] }
 0x4b0   :  { %5439 = vmatpush3.bf16.msra.mxu0 %v5438_v49  ;;  %v3097_v30 = vadd.f32 %v11751_v10, %v11750_v47  ;;  %v4780_v28 = vmax.f32 %v4716_v62, 0.0  ;;  %v4100_v29 = vadd.f32 %v4036_v6, %v3583_v57  ;;  %v4069_v9 = vmul.f32 %v9759_v59, %v11752_v22  ;;  %v11761_v62 = vld [vmem:[#allocation313_spill] sm:$0xff]  ;;  %v11765_v10 = vld [vmem:[#allocation31_spill] sm:$0xff] }
 0x4b1   :  { %v4781_v21 = vmax.f32 %v4717_v41, 0.0  ;;  %5440 = vmatprep.subr.bf16.mxu0 %v5459_v42  ;;  %v4068_v20 = vmul.f32 %v9759_v59, %v11753_v8  ;;  %v4280_v25 = vpop.permute.xlu0 %4279  ;;  %v2582_v38 = vadd.f32 %v11755_v35, %v11754_v46  ;;  %v3616_v1 = vadd.f32 %v3552_v48, %v3098_v43  ;;  %v11769_v46 = vld [vmem:[#allocation24_spill] sm:$0xff] }
 0x4b2   :  { %v4285_v58 = vpop.permute.xlu1 %4284  ;;  %v4836_v37 = vadd.f32 %v4835_v53, %v4780_v28  ;;  %v4553_v16 = vmul.f32 %v9817_v52, %v4280_v25  ;;  %v3615_v2 = vadd.f32 %v3551_v4, %v3097_v30  ;;  %v5444_v36 = vpack.c.bf16 %v4900_v34, %v4899_v27  ;;  %v11758_v53 = vld [vmem:[#allocation281_spill] sm:$0xff] }
 0x4b3   :  { %v4851_v44 = vadd.f32 %v4850_v63, %v4781_v21  ;;  %v4554_v55 = vmul.f32 %v9817_v52, %v4285_v58  ;;  %v2521_v3 = vmul.f32 %v10142_v54, %v11756_v18  ;;  %v2520_v45 = vmul.f32 %v10142_v54, %v11757_v61  ;;  %v11766_v21 = vld [vmem:[#allocation32_spill] sm:$0xff]  ;;  %v11767_v27 = vld [vmem:[#allocation85_spill] sm:$0xff] }
 0x4b4   :  { %5442 = vmatpush3.bf16.msra.mxu0 %v5441_v23  ;;  %v4617_v63 = vadd.f32 %v4553_v16, %v4100_v29  ;;  %v3004_v39 = vmul.f32 %v11759_v5, %v11758_v53  ;;  %v3003_v56 = vmul.f32 %v11759_v5, %v11760_v33  ;;  %v4133_v50 = vadd.f32 %v4069_v9, %v3616_v1  ;;  %v11770_v1 = vld [vmem:[#allocation25_spill] sm:$0xff] }
 0x4b5   :  { %v4618_v14 = vadd.f32 %v4554_v55, %v4101_v17  ;;  %5443 = vmatprep.subr.bf16.mxu0 %v5459_v42  ;;  %v4132_v11 = vadd.f32 %v4068_v20, %v3615_v2  ;;  %v4440_v6 = vpop.permute.xlu0 %4439  ;;  %v3036_v42 = vmul.f32 %v11759_v5, %v11761_v62  ;;  %v3035_v57 = vmul.f32 %v11759_v5, %v11762_v31  ;;  %v11768_v17 = vld [vmem:[#allocation86_spill] sm:$0xff] }
 0x4b6   :  { %v4445_v26 = vpop.permute.xlu1 %4444  ;;  %v4686_v19 = vadd.f32 %v9865_v60, %v4617_v63  ;;  %v4585_v41 = vmul.f32 %v9817_v52, %v4440_v6  ;;  %v3522_v48 = vmul.f32 %v9694_v51, %v11763_v12  ;;  %v3521_v4 = vmul.f32 %v9694_v51, %v11764_v7  ;;  %v11775_v31 = vld [vmem:[#allocation254_spill] sm:$0xff] }
 0x4b7   :  { %v4687_v49 = vadd.f32 %v9865_v60, %v4618_v14  ;;  %v4586_v32 = vmul.f32 %v9817_v52, %v4445_v26  ;;  %v3068_v30 = vadd.f32 %v3004_v39, %v11765_v10  ;;  %v3067_v28 = vadd.f32 %v3003_v56, %v11766_v21  ;;  %v11778_v21 = vld [vmem:[#allocation315_spill] sm:$0xff] }
 0x4b8   :  { %5445 = vmatpush3.bf16.msra.mxu0 %v5444_v36  ;;  %v4750_v40 = vmax.f32 %v4686_v19, 0.0  ;;  %v4649_v47 = vadd.f32 %v4585_v41, %v4132_v11  ;;  %v4039_v34 = vmul.f32 %v9759_v59, %v11767_v27  ;;  %v4038_v29 = vmul.f32 %v9759_v59, %v11768_v17  ;;  %v11771_v36 = vld [vmem:[#allocation41_spill] sm:$0xff]  ;;  %v11773_v19 = vld [vmem:[#allocation107_spill] sm:$0xff] }
 0x4b9   :  { %v4751_v23 = vmax.f32 %v4687_v49, 0.0  ;;  %v4650_v43 = vadd.f32 %v4586_v32, %v4133_v50  ;;  %v10173_v9 = vpop.permute.xlu0 %3942  ;;  %v3586_v55 = vadd.f32 %v3522_v48, %v3068_v30  ;;  %v3585_v16 = vadd.f32 %v3521_v4, %v3067_v28  ;;  %v11772_v49 = vld [vmem:[#allocation106_spill] sm:$0xff]  ;;  %v11777_v48 = vld [vmem:[#allocation284_spill] sm:$0xff] }
 0x4ba   :  { %v10171_v22 = vpop.permute.xlu1 %3947  ;;  %v4807_v20 = vadd.f32 %v10111_v24, %v4750_v40  ;;  %v4718_v25 = vadd.f32 %v9865_v60, %v4649_v47  ;;  %v3554_v35 = vmul.f32 %v9694_v51, %v11769_v46  ;;  %v3553_v2 = vmul.f32 %v9694_v51, %v11770_v1  ;;  %v10207_v30 = vld [vmem:[%s10777_s1 + $0x5] ss:$0 sm:$0xff]  ;;  %v11779_v28 = vld [vmem:[#allocation316_spill] sm:$0xff] }
 0x4bb   :  { %v4822_v8 = vadd.f32 %v10109_v15, %v4751_v23  ;;  %v4719_v58 = vadd.f32 %v9865_v60, %v4650_v43  ;;  %v3100_v18 = vadd.f32 %v3036_v42, %v11771_v36  ;;  %v3099_v61 = vadd.f32 %v3035_v57, %v2582_v38  ;;  %v11774_v42 = vld [vmem:[#allocation253_spill] sm:$0xff] }
 0x4bc   :  { %v4782_v63 = vmax.f32 %v4718_v25, 0.0  ;;  %v4103_v15 = vadd.f32 %v4039_v34, %v3586_v55  ;;  %v4102_v53 = vadd.f32 %v4038_v29, %v3585_v16  ;;  %v4071_v24 = vmul.f32 %v9759_v59, %v10099_v0  ;;  %v11780_v34 = vld [vmem:[#allocation347_spill] sm:$0xff]  ;;  %v11781_v29 = vld [vmem:[#allocation348_spill] sm:$0xff] }
 0x4bd   :  { %v4783_v14 = vmax.f32 %v4719_v58, 0.0  ;;  %v4070_v39 = vmul.f32 %v9759_v59, %v10101_v13  ;;  %v4290_v56 = vpop.permute.xlu0 %4289  ;;  %v2585_v38 = vadd.f32 %v2521_v3, %v11772_v49  ;;  %v2584_v32 = vadd.f32 %v2520_v45, %v11773_v19  ;;  %v11786_v49 = vld [vmem:[#allocation28_spill] sm:$0xff] }
 0x4be   :  { %v4295_v33 = vpop.permute.xlu1 %4294  ;;  %v4837_v11 = vadd.f32 %v4836_v37, %v4782_v63  ;;  %v4555_v6 = vmul.f32 %v9817_v52, %v4290_v56  ;;  %v3618_v41 = vadd.f32 %v3554_v35, %v3100_v18  ;;  %v3617_v62 = vadd.f32 %v3553_v2, %v3099_v61  ;;  %v11782_v35 = vld [vmem:[#allocation33_spill] sm:$0xff]  ;;  %v11783_v2 = vld [vmem:[#allocation34_spill] sm:$0xff] }
 0x4bf   :  { %v4852_v50 = vadd.f32 %v4851_v44, %v4783_v14  ;;  %v4556_v26 = vmul.f32 %v9817_v52, %v4295_v33  ;;  %v2523_v0 = vmul.f32 %v10142_v54, %v11774_v42  ;;  %v2522_v13 = vmul.f32 %v10142_v54, %v11775_v31  ;;  %v11776_v44 = vld [vmem:[#allocation283_spill] sm:$0xff]  ;;  %v11784_v18 = vld [vmem:[#allocation89_spill] sm:$0xff]  ;;  %v11785_v14 = vld [vmem:[#allocation90_spill] sm:$0xff] }
 0x4c0   :  { %v4619_v12 = vadd.f32 %v4555_v6, %v4102_v53  ;;  %v3006_v37 = vmul.f32 %v11759_v5, %v11776_v44  ;;  %v3005_v7 = vmul.f32 %v11759_v5, %v11777_v48  ;;  %v4135_v4 = vadd.f32 %v4071_v24, %v3618_v41  ;;  %v11787_v41 = vld [vmem:[#allocation29_spill] sm:$0xff] }
 0x4c1   :  { %v4620_v57 = vadd.f32 %v4556_v26, %v4103_v15  ;;  %v4134_v3 = vadd.f32 %v4070_v39, %v3617_v62  ;;  %v4450_v45 = vpop.permute.xlu0 %4449  ;;  %v3038_v5 = vmul.f32 %v10207_v30, %v11778_v21  ;;  %v3037_v27 = vmul.f32 %v10207_v30, %v11779_v28  ;;  %v11792_v21 = vld [vmem:[#allocation87_spill] sm:$0xff] }
 0x4c2   :  { %v4455_v23 = vpop.permute.xlu1 %4454  ;;  %v4688_v43 = vadd.f32 %v9865_v60, %v4619_v12  ;;  %v4587_v10 = vmul.f32 %v9817_v52, %v4450_v45  ;;  %v3524_v17 = vmul.f32 %v9694_v51, %v11780_v34  ;;  %v3523_v58 = vmul.f32 %v9694_v51, %v11781_v29 }
 0x4c3   :  { %v4689_v40 = vadd.f32 %v9865_v60, %v4620_v57  ;;  %v4588_v47 = vmul.f32 %v9817_v52, %v4455_v23  ;;  %v3070_v1 = vadd.f32 %v3006_v37, %v11782_v35  ;;  %v3069_v36 = vadd.f32 %v3005_v7, %v11783_v2 }
 0x4c4   :  { %v4752_v55 = vmax.f32 %v4688_v43, 0.0  ;;  %v4651_v46 = vadd.f32 %v4587_v10, %v4134_v3  ;;  %v4041_v61 = vmul.f32 %v9759_v59, %v11784_v18  ;;  %v4040_v63 = vmul.f32 %v9759_v59, %v11785_v14  ;;  %v11791_v43 = vld [vmem:[#allocation133_spill] sm:$0xff] }
 0x4c5   :  { %v4753_v25 = vmax.f32 %v4689_v40, 0.0  ;;  %v4652_v16 = vadd.f32 %v4588_v47, %v4135_v4  ;;  %v10225_v53 = vpop.permute.xlu0 %3952  ;;  %v3588_v26 = vadd.f32 %v3524_v17, %v3070_v1  ;;  %v3587_v6 = vadd.f32 %v3523_v58, %v3069_v36  ;;  %v11790_v40 = vld [vmem:[#allocation84_spill] sm:$0xff]  ;;  %v11797_v58 = vld [vmem:[#allocation109_spill] sm:$0xff] }
 0x4c6   :  { %v10223_v15 = vpop.permute.xlu1 %3957  ;;  %v4808_v39 = vadd.f32 %v4807_v20, %v4752_v55  ;;  %v4720_v56 = vadd.f32 %v9865_v60, %v4651_v46  ;;  %v3556_v19 = vmul.f32 %v9694_v51, %v11786_v49  ;;  %v3555_v62 = vmul.f32 %v9694_v51, %v11787_v41  ;;  %v11796_v17 = vld [vmem:[#allocation108_spill] sm:$0xff] }
 0x4c7   :  { %v4823_v24 = vadd.f32 %v4822_v8, %v4753_v25  ;;  %v4721_v33 = vadd.f32 %v9865_v60, %v4652_v16  ;;  %v3102_v42 = vadd.f32 %v3038_v5, %v2585_v38  ;;  %v3101_v31 = vadd.f32 %v3037_v27, %v2584_v32  ;;  %v11788_v38 = vld [vmem:[#allocation83_spill] sm:$0xff]  ;;  %v11789_v32 = vld [vmem:[#allocation132_spill] sm:$0xff] }
 0x4c8   :  { %v4784_v12 = vmax.f32 %v4720_v56, 0.0  ;;  %v4105_v44 = vadd.f32 %v4041_v61, %v3588_v26  ;;  %v4104_v37 = vadd.f32 %v4040_v63, %v3587_v6  ;;  %v4073_v8 = vmul.f32 %v9759_v59, %v10171_v22  ;;  %v11798_v61 = vld [vmem:[#allocation255_spill] sm:$0xff]  ;;  %v11799_v63 = vld [vmem:[#allocation256_spill] sm:$0xff]  ;;  %v11801_v56 = vld [vmem:[#allocation258_spill] sm:$0xff] }
 0x4c9   :  { %v4785_v57 = vmax.f32 %v4721_v33, 0.0  ;;  %v4072_v20 = vmul.f32 %v9759_v59, %v10173_v9  ;;  %v4300_v7 = vpop.permute.xlu0 %4299  ;;  %v10241_v45 = vadd.f32 %v11789_v32, %v11788_v38  ;;  %v10245_v47 = vadd.f32 %v11791_v43, %v11790_v40  ;;  %v11793_v9 = vld [vmem:[#allocation134_spill] sm:$0xff]  ;;  %v11800_v33 = vld [vmem:[#allocation257_spill] sm:$0xff]  ;;  %v11807_v43 = vld [vmem:[#allocation111_spill] sm:$0xff] }
 0x4ca   :  { %v4305_v48 = vpop.permute.xlu1 %4304  ;;  %v4838_v3 = vadd.f32 %v4837_v11, %v4784_v12  ;;  %v4557_v51 = vmul.f32 %v9817_v52, %v4300_v7  ;;  %v3620_v22 = vadd.f32 %v3556_v19, %v3102_v42  ;;  %v3619_v10 = vadd.f32 %v3555_v62, %v3101_v31  ;;  %v11795_v11 = vld [vmem:[#allocation135_spill] sm:$0xff]  ;;  %v11803_v31 = vld [vmem:[#allocation260_spill] sm:$0xff]  ;;  %v11804_v12 = vld [vmem:[#allocation317_spill] sm:$0xff] }
 0x4cb   :  { %v4853_v4 = vadd.f32 %v4852_v50, %v4785_v57  ;;  %v4558_v23 = vmul.f32 %v9817_v52, %v4305_v48  ;;  %v10249_v5 = vadd.f32 %v11793_v9, %v11792_v21  ;;  %v11794_v50 = vld [vmem:[#allocation88_spill] sm:$0xff]  ;;  %v2587_v29 = vadd.f32 %v2523_v0, %v11796_v17  ;;  %v11802_v62 = vld [vmem:[#allocation259_spill] sm:$0xff]  ;;  %v11806_v32 = vld [vmem:[#allocation110_spill] sm:$0xff] }
 0x4cc   :  { %v10253_v28 = vadd.f32 %v11795_v11, %v11794_v50  ;;  %v4621_v34 = vadd.f32 %v4557_v51, %v4104_v37  ;;  %v2586_v25 = vadd.f32 %v2522_v13, %v11797_v58  ;;  %v4137_v55 = vadd.f32 %v4073_v8, %v3620_v22  ;;  %v11805_v37 = vld [vmem:[#allocation318_spill] sm:$0xff]  ;;  %v11809_v9 = vld [vmem:[#allocation113_spill] sm:$0xff] }
 0x4cd   :  { %v4622_v27 = vadd.f32 %v4558_v23, %v4105_v44  ;;  %v4136_v16 = vadd.f32 %v4072_v20, %v3619_v10  ;;  %v4460_v35 = vpop.permute.xlu0 %4459  ;;  %v2525_v14 = vmul.f32 %v10142_v54, %v11798_v61  ;;  %v2524_v0 = vmul.f32 %v10142_v54, %v11799_v63  ;;  %v11808_v10 = vld [vmem:[#allocation112_spill] sm:$0xff] }
 0x4ce   :  { %v4465_v46 = vpop.permute.xlu1 %4464  ;;  %v4690_v2 = vadd.f32 %v9865_v60, %v4621_v34  ;;  %v4589_v18 = vmul.f32 %v9817_v52, %v4460_v35  ;;  %v2527_v13 = vmul.f32 %v10142_v54, %v11800_v33  ;;  %v2526_v26 = vmul.f32 %v10142_v54, %v11801_v56  ;;  %v11814_v33 = vld [vmem:[#allocation261_spill] sm:$0xff]  ;;  %v11815_v56 = vld [vmem:[#allocation262_spill] sm:$0xff] }
 0x4cf   :  { %v4691_v1 = vadd.f32 %v9865_v60, %v4622_v27  ;;  %v4590_v36 = vmul.f32 %v9817_v52, %v4465_v46  ;;  %v2529_v42 = vmul.f32 %v10142_v54, %v11802_v62  ;;  %v2528_v57 = vmul.f32 %v10142_v54, %v11803_v31  ;;  %v11811_v27 = vld [vmem:[#allocation44_spill] sm:$0xff]  ;;  %v11813_v46 = vld [vmem:[#allocation115_spill] sm:$0xff] }
 0x4d0   :  { %v4754_v49 = vmax.f32 %v4690_v2, 0.0  ;;  %v4653_v41 = vadd.f32 %v4589_v18, %v4136_v16  ;;  %v3040_v44 = vmul.f32 %v10207_v30, %v11804_v12  ;;  %v3039_v8 = vmul.f32 %v10207_v30, %v11805_v37 }
 0x4d1   :  { %v4755_v6 = vmax.f32 %v4691_v1, 0.0  ;;  %v4654_v19 = vadd.f32 %v4590_v36, %v4137_v55  ;;  %v10279_v48 = vpop.permute.xlu0 %3962  ;;  %v10288_v40 = vadd.f32 %v2525_v14, %v11806_v32  ;;  %v10291_v22 = vadd.f32 %v2524_v0, %v11807_v43  ;;  %v11812_v55 = vld [vmem:[#allocation114_spill] sm:$0xff] }
 0x4d2   :  { %v10277_v20 = vpop.permute.xlu1 %3967  ;;  %v10283_v23 = vadd.f32 %v4808_v39, %v4754_v49  ;;  %v4722_v38 = vadd.f32 %v9865_v60, %v4653_v41  ;;  %v10294_v21 = vadd.f32 %v2527_v13, %v11808_v10  ;;  %v10297_v50 = vadd.f32 %v2526_v26, %v11809_v9  ;;  %v11810_v39 = vld [vmem:[#allocation43_spill] sm:$0xff]  ;;  %v11819_v41 = vld [vmem:[#allocation266_spill] sm:$0xff]  ;;  %v11824_v10 = vld [vmem:[#allocation116_spill] sm:$0xff] }
 0x4d3   :  { %v10281_v7 = vadd.f32 %v4823_v24, %v4755_v6  ;;  %v4723_v51 = vadd.f32 %v9865_v60, %v4654_v19  ;;  %v10302_v24 = vld [vmem:[%s10777_s1 + $0x6] ss:$0 sm:$0xff]  ;;  %v10309_v16 = vadd.f32 %v2529_v42, %v11812_v55  ;;  %v10312_v35 = vadd.f32 %v2528_v57, %v11813_v46  ;;  %v11817_v6 = vld [vmem:[#allocation264_spill] sm:$0xff]  ;;  %v11818_v19 = vld [vmem:[#allocation265_spill] sm:$0xff] }
 0x4d4   :  { %v3558_v11 = vmul.f32 %v10302_v24, %v11810_v39  ;;  %v3557_v34 = vmul.f32 %v10302_v24, %v11811_v27  ;;  %v4786_v58 = vmax.f32 %v4722_v38, 0.0  ;;  %v3104_v1 = vadd.f32 %v3040_v44, %v2587_v29  ;;  %v11816_v29 = vld [vmem:[#allocation263_spill] sm:$0xff]  ;;  %v11821_v42 = vld [vmem:[#allocation286_spill] sm:$0xff]  ;;  %v11823_v44 = vld [vmem:[#allocation288_spill] sm:$0xff] }
 0x4d5   :  { %v4787_v17 = vmax.f32 %v4723_v51, 0.0  ;;  %v3103_v2 = vadd.f32 %v3039_v8, %v2586_v25  ;;  %v10316_v18 = vpop.permute.xlu0 %4309  ;;  %v4075_v61 = vmul.f32 %v9759_v59, %v10223_v15  ;;  %v4074_v14 = vmul.f32 %v9759_v59, %v10225_v53  ;;  %v11822_v57 = vld [vmem:[#allocation287_spill] sm:$0xff]  ;;  %v11825_v39 = vld [vmem:[#allocation117_spill] sm:$0xff]  ;;  %v11826_v27 = vld [vmem:[#allocation120_spill] sm:$0xff] }
 0x4d6   :  { %v10314_v36 = vpop.permute.xlu1 %4314  ;;  %v4839_v0 = vadd.f32 %v4838_v3, %v4786_v58  ;;  %v2531_v13 = vmul.f32 %v10142_v54, %v11814_v33  ;;  %v2530_v26 = vmul.f32 %v10142_v54, %v11815_v56  ;;  %v2533_v25 = vmul.f32 %v10142_v54, %v11816_v29  ;;  %v11820_v3 = vld [vmem:[#allocation285_spill] sm:$0xff]  ;;  %v11828_v55 = vld [vmem:[#allocation23_spill] sm:$0xff] }
 0x4d7   :  { %v4854_v63 = vadd.f32 %v4853_v4, %v4787_v17  ;;  %v2532_v49 = vmul.f32 %v10142_v54, %v11817_v6  ;;  %v2535_v15 = vmul.f32 %v10142_v54, %v11818_v19  ;;  %v2534_v59 = vmul.f32 %v10142_v54, %v11819_v41  ;;  %v11827_v17 = vld [vmem:[#allocation121_spill] sm:$0xff] }
 0x4d8   :  { %v3622_v53 = vadd.f32 %v3558_v11, %v3104_v1  ;;  %v3621_v4 = vadd.f32 %v3557_v34, %v3103_v2  ;;  %v3008_v62 = vmul.f32 %v10207_v30, %v11820_v3  ;;  %v3007_v31 = vmul.f32 %v10207_v30, %v11821_v42  ;;  %v11829_v1 = vld [vmem:[#allocation124_spill] sm:$0xff] }
 0x4d9   :  { %v3010_v12 = vmul.f32 %v10207_v30, %v11822_v57  ;;  %v3009_v37 = vmul.f32 %v10207_v30, %v11823_v44  ;;  %v4470_v51 = vpop.permute.xlu0 %4469  ;;  %v10345_v9 = vadd.f32 %v2531_v13, %v11824_v10  ;;  %v10348_v11 = vadd.f32 %v2530_v26, %v11825_v39  ;;  %v11831_v13 = vld [vmem:[#allocation36_spill] sm:$0xff]  ;;  %v11832_v26 = vld [vmem:[#allocation319_spill] sm:$0xff]  ;;  %v11842_v10 = vld [vmem:[#allocation293_spill] sm:$0xff] }
 0x4da   :  { %v4475_v8 = vpop.permute.xlu1 %4474  ;;  %v4139_v38 = vadd.f32 %v4075_v61, %v3622_v53  ;;  %v4138_v32 = vadd.f32 %v4074_v14, %v3621_v4  ;;  %v4591_v43 = vmul.f32 %v9817_v52, %v4470_v51  ;;  %v10351_v34 = vadd.f32 %v2533_v25, %v11826_v27  ;;  %v11830_v14 = vld [vmem:[#allocation35_spill] sm:$0xff]  ;;  %v11833_v25 = vld [vmem:[#allocation320_spill] sm:$0xff]  ;;  %v11843_v27 = vld [vmem:[#allocation294_spill] sm:$0xff] }
 0x4db   :  { %v4592_v54 = vmul.f32 %v9817_v52, %v4475_v8  ;;  %v10354_v58 = vadd.f32 %v2532_v49, %v11827_v17  ;;  %v10357_v46 = vadd.f32 %v2535_v15, %v11828_v55  ;;  %v10360_v2 = vadd.f32 %v2534_v59, %v11829_v1  ;;  %v11834_v15 = vld [vmem:[#allocation37_spill] sm:$0xff]  ;;  %v11835_v59 = vld [vmem:[#allocation38_spill] sm:$0xff]  ;;  %v11838_v44 = vld [vmem:[#allocation291_spill] sm:$0xff] }
 0x4dc   :  { %v4655_v52 = vadd.f32 %v4591_v43, %v4138_v32  ;;  %v10363_v33 = vadd.f32 %v3008_v62, %v11830_v14  ;;  %v10366_v56 = vadd.f32 %v3007_v31, %v11831_v13  ;;  %v3042_v29 = vmul.f32 %v10207_v30, %v11832_v26  ;;  %v11836_v62 = vld [vmem:[#allocation289_spill] sm:$0xff]  ;;  %v11837_v31 = vld [vmem:[#allocation290_spill] sm:$0xff]  ;;  %v11839_v51 = vld [vmem:[#allocation292_spill] sm:$0xff] }
 0x4dd   :  { %v4656_v61 = vadd.f32 %v4592_v54, %v4139_v38  ;;  %v3041_v6 = vmul.f32 %v10207_v30, %v11833_v25  ;;  %v10374_v19 = vpop.permute.xlu0 %3972  ;;  %v10377_v41 = vadd.f32 %v3010_v12, %v11834_v15  ;;  %v10380_v53 = vadd.f32 %v3009_v37, %v11835_v59  ;;  %v11840_v38 = vld [vmem:[#allocation47_spill] sm:$0xff]  ;;  %v11841_v32 = vld [vmem:[#allocation48_spill] sm:$0xff]  ;;  %v10409_v14 = vld [vmem:[%s10777_s1 + $0x7] ss:$0 sm:$0xff] }
 0x4de   :  { %v10372_v49 = vpop.permute.xlu1 %3977  ;;  %v4724_v3 = vadd.f32 %v9865_v60, %v4655_v52  ;;  %v3012_v42 = vmul.f32 %v10207_v30, %v11836_v62  ;;  %v3011_v57 = vmul.f32 %v10207_v30, %v11837_v31  ;;  %v3014_v8 = vmul.f32 %v10207_v30, %v11838_v44  ;;  %v11846_v59 = vld [vmem:[#allocation127_spill] sm:$0xff]  ;;  %v11848_v31 = vld [vmem:[#allocation40_spill] sm:$0xff] }
 0x4df   :  { %v4725_v4 = vadd.f32 %v9865_v60, %v4656_v61  ;;  %v3013_v12 = vmul.f32 %v10207_v30, %v11839_v51  ;;  %v3560_v37 = vmul.f32 %v10302_v24, %v11840_v38  ;;  %v3559_v54 = vmul.f32 %v10302_v24, %v11841_v32  ;;  %v11850_v51 = vld [vmem:[#allocation130_spill] sm:$0xff]  ;;  %v11851_v38 = vld [vmem:[#allocation131_spill] sm:$0xff]  ;;  %v11852_v32 = vld [vmem:[#allocation297_spill] sm:$0xff] }
 0x4e0   :  { %v4788_v60 = vmax.f32 %v4724_v3, 0.0  ;;  %v3016_v39 = vmul.f32 %v10207_v30, %v11842_v10  ;;  %v3015_v17 = vmul.f32 %v10207_v30, %v11843_v27  ;;  %v3106_v55 = vadd.f32 %v3042_v29, %v10288_v40  ;;  %v11844_v40 = vld [vmem:[#allocation39_spill] sm:$0xff] }
 0x4e1   :  { %v4789_v43 = vmax.f32 %v4725_v4, 0.0  ;;  %v3105_v1 = vadd.f32 %v3041_v6, %v10291_v22  ;;  %v10404_v52 = vpop.permute.xlu0 %4319  ;;  %v4077_v13 = vmul.f32 %v10409_v14, %v10277_v20  ;;  %v4076_v26 = vmul.f32 %v10409_v14, %v10279_v48  ;;  %v11845_v22 = vld [vmem:[#allocation126_spill] sm:$0xff]  ;;  %v11847_v3 = vld [vmem:[#allocation295_spill] sm:$0xff]  ;;  %v11849_v20 = vld [vmem:[#allocation296_spill] sm:$0xff] }
 0x4e2   :  { %v10402_v61 = vpop.permute.xlu1 %4324  ;;  %v4840_v15 = vadd.f32 %v4839_v0, %v4788_v60  ;;  %v10416_v29 = vadd.f32 %v3012_v42, %v11844_v40  ;;  %v10419_v6 = vadd.f32 %v3011_v57, %v11845_v22  ;;  %v10422_v4 = vadd.f32 %v3014_v8, %v11846_v59  ;;  %v11855_v22 = vld [vmem:[#allocation322_spill] sm:$0xff] }
 0x4e3   :  { %v4855_v25 = vadd.f32 %v4854_v63, %v4789_v43  ;;  %v3018_v62 = vmul.f32 %v10207_v30, %v11847_v3  ;;  %v10427_v44 = vadd.f32 %v3013_v12, %v11848_v31  ;;  %v3017_v48 = vmul.f32 %v10207_v30, %v11849_v20  ;;  %v11853_v43 = vld [vmem:[#allocation298_spill] sm:$0xff]  ;;  %v11857_v31 = vld [vmem:[#allocation324_spill] sm:$0xff] }
 0x4e4   :  { %v3624_v63 = vadd.f32 %v3560_v37, %v3106_v55  ;;  %v3623_v0 = vadd.f32 %v3559_v54, %v3105_v1  ;;  %v10432_v42 = vadd.f32 %v3016_v39, %v11850_v51  ;;  %v10435_v57 = vadd.f32 %v3015_v17, %v11851_v38  ;;  %v10444_v37 = vld [vmem:[%s10777_s1 + $0x8] ss:$0 sm:$0xff]  ;;  %v11854_v55 = vld [vmem:[#allocation321_spill] sm:$0xff]  ;;  %v11859_v38 = vld [vmem:[#allocation326_spill] sm:$0xff] }
 0x4e5   :  { %v3020_v8 = vmul.f32 %v10207_v30, %v11852_v32  ;;  %v3019_v60 = vmul.f32 %v10207_v30, %v11853_v43  ;;  %v4480_v12 = vpop.permute.xlu0 %4479  ;;  %v10449_v17 = vadd.f32 %v3018_v62, %v10241_v45  ;;  %v3044_v1 = vmul.f32 %v10207_v30, %v11854_v55  ;;  %v11858_v62 = vld [vmem:[#allocation325_spill] sm:$0xff]  ;;  %v11860_v43 = vld [vmem:[#allocation327_spill] sm:$0xff]  ;;  %v11861_v55 = vld [vmem:[#allocation328_spill] sm:$0xff] }
 0x4e6   :  { %v4485_v10 = vpop.permute.xlu1 %4484  ;;  %v4141_v27 = vadd.f32 %v4077_v13, %v3624_v63  ;;  %v4140_v40 = vadd.f32 %v4076_v26, %v3623_v0  ;;  %v4593_v39 = vmul.f32 %v10444_v37, %v4480_v12  ;;  %v3043_v59 = vmul.f32 %v10207_v30, %v11855_v22  ;;  %v11856_v13 = vld [vmem:[#allocation323_spill] sm:$0xff] }
 0x4e7   :  { %v4594_v54 = vmul.f32 %v10444_v37, %v4485_v10  ;;  %v3046_v26 = vmul.f32 %v10207_v30, %v11856_v13  ;;  %v10458_v3 = vadd.f32 %v3017_v48, %v10245_v47  ;;  %v3045_v20 = vmul.f32 %v10207_v30, %v11857_v31  ;;  %v11863_v31 = vld [vmem:[#allocation330_spill] sm:$0xff] }
 0x4e8   :  { %v4657_v0 = vadd.f32 %v4593_v39, %v4140_v40  ;;  %v3084_v45 = vadd.f32 %v3020_v8, %v10249_v5  ;;  %v3048_v51 = vmul.f32 %v10207_v30, %v11858_v62  ;;  %v3047_v32 = vmul.f32 %v10207_v30, %v11859_v38  ;;  %v10479_v5 = vld [vmem:[%s10777_s1 + $0x9] ss:$0 sm:$0xff] }
 0x4e9   :  { %v4658_v63 = vadd.f32 %v4594_v54, %v4141_v27  ;;  %v3050_v10 = vmul.f32 %v10207_v30, %v11860_v43  ;;  %v10471_v47 = vpop.permute.xlu0 %3982  ;;  %v3083_v48 = vadd.f32 %v3019_v60, %v10253_v28  ;;  %v3049_v27 = vmul.f32 %v10207_v30, %v11861_v55  ;;  %v11862_v28 = vld [vmem:[#allocation329_spill] sm:$0xff]  ;;  %v11869_v43 = vld [vmem:[#allocation352_spill] sm:$0xff] }
 0x4ea   :  { %v10469_v12 = vpop.permute.xlu1 %3987  ;;  %v4726_v40 = vadd.f32 %v10479_v5, %v4657_v0  ;;  %v3108_v54 = vadd.f32 %v3044_v1, %v10294_v21  ;;  %v3107_v39 = vadd.f32 %v3043_v59, %v10297_v50  ;;  %v10486_v22 = vadd.f32 %v3046_v26, %v10309_v16  ;;  %v11864_v16 = vld [vmem:[#allocation349_spill] sm:$0xff]  ;;  %v11865_v26 = vld [vmem:[#allocation350_spill] sm:$0xff] }
 0x4eb   :  { %v4727_v8 = vadd.f32 %v10479_v5, %v4658_v63  ;;  %v3052_v60 = vmul.f32 %v10207_v30, %v11862_v28  ;;  %v10491_v13 = vadd.f32 %v3045_v20, %v10312_v35  ;;  %v3051_v62 = vmul.f32 %v10207_v30, %v11863_v31  ;;  %v11870_v55 = vld [vmem:[#allocation353_spill] sm:$0xff] }
 0x4ec   :  { %v4790_v63 = vmax.f32 %v4726_v40, 0.0  ;;  %v10496_v0 = vadd.f32 %v3048_v51, %v10345_v9  ;;  %v10499_v21 = vadd.f32 %v3047_v32, %v10348_v11  ;;  %v10502_v50 = vadd.f32 %v3050_v10, %v10351_v34  ;;  %v11868_v51 = vld [vmem:[#allocation351_spill] sm:$0xff]  ;;  %v11874_v31 = vld [vmem:[#allocation357_spill] sm:$0xff] }
 0x4ed   :  { %v4791_v38 = vmax.f32 %v4727_v8, 0.0  ;;  %v3526_v1 = vmul.f32 %v10302_v24, %v11864_v16  ;;  %v10508_v35 = vpop.permute.xlu0 %4329  ;;  %v10511_v30 = vadd.f32 %v3049_v27, %v10354_v58  ;;  %v3525_v9 = vmul.f32 %v10302_v24, %v11865_v26  ;;  %v11871_v8 = vld [vmem:[#allocation354_spill] sm:$0xff]  ;;  %v11876_v26 = vld [vmem:[#allocation359_spill] sm:$0xff] }
 0x4ee   :  { %v10506_v59 = vpop.permute.xlu1 %4334  ;;  %v10517_v11 = vadd.f32 %v4840_v15, %v4790_v63  ;;  %v10520_v34 = vadd.f32 %v3052_v60, %v10357_v46  ;;  %v3528_v32 = vmul.f32 %v10302_v24, %v11868_v51  ;;  %v3527_v10 = vmul.f32 %v10302_v24, %v11869_v43  ;;  %v11872_v15 = vld [vmem:[#allocation355_spill] sm:$0xff]  ;;  %v11873_v46 = vld [vmem:[#allocation356_spill] sm:$0xff]  ;;  %v11875_v63 = vld [vmem:[#allocation358_spill] sm:$0xff] }
 0x4ef   :  { %v10515_v20 = vadd.f32 %v4855_v25, %v4791_v38  ;;  %v3530_v58 = vmul.f32 %v10302_v24, %v11870_v55  ;;  %v10529_v27 = vadd.f32 %v3051_v62, %v10360_v2  ;;  %v3529_v25 = vmul.f32 %v10302_v24, %v11871_v8  ;;  %v11877_v55 = vld [vmem:[#allocation360_spill] sm:$0xff] }
 0x4f0   :  { %11867 = vst [vmem:[#allocation49_spill] sm:$0xff] %v10517_v11  ;;  %v3532_v40 = vmul.f32 %v10302_v24, %v11872_v15  ;;  %v3531_v28 = vmul.f32 %v10302_v24, %v11873_v46  ;;  %v3590_v60 = vadd.f32 %v3526_v1, %v10363_v33  ;;  %v3534_v38 = vmul.f32 %v10302_v24, %v11874_v31  ;;  %v11878_v15 = vld [vmem:[#allocation361_spill] sm:$0xff]  ;;  %v11879_v1 = vld [vmem:[#allocation362_spill] sm:$0xff] }
 0x4f1   :  { %11866 = vst [vmem:[#allocation140_spill] sm:$0xff] %v10515_v20  ;;  %v3533_v16 = vmul.f32 %v10302_v24, %v11875_v63  ;;  %v3536_v2 = vmul.f32 %v10302_v24, %v11876_v26  ;;  %v10546_v51 = vpop.permute.xlu0 %4489  ;;  %v3589_v43 = vadd.f32 %v3525_v9, %v10366_v56  ;;  %v3535_v8 = vmul.f32 %v10302_v24, %v11877_v55  ;;  %v11880_v11 = vld [vmem:[#allocation53_spill] sm:$0xff] }
 0x4f2   :  { %v10544_v62 = vpop.permute.xlu1 %4494  ;;  %v3538_v33 = vmul.f32 %v10302_v24, %v11878_v15  ;;  %v3537_v46 = vmul.f32 %v10302_v24, %v11879_v1  ;;  %v3592_v31 = vadd.f32 %v3528_v32, %v10377_v41  ;;  %v3591_v63 = vadd.f32 %v3527_v10, %v10380_v53  ;;  %v11881_v15 = vld [vmem:[#allocation54_spill] sm:$0xff] }
 0x4f3   :  { %v3594_v26 = vadd.f32 %v3530_v58, %v10416_v29  ;;  %v3562_v20 = vmul.f32 %v10302_v24, %v11880_v11  ;;  %v3593_v56 = vadd.f32 %v3529_v25, %v10419_v6  ;;  %v10562_v9 = vadd.f32 %v3532_v40, %v10422_v4  ;;  %v11882_v11 = vld [vmem:[#allocation99_spill] sm:$0xff]  ;;  %v11885_v58 = vld [vmem:[#allocation100_spill] sm:$0xff] }
 0x4f4   :  { %v10565_v55 = vadd.f32 %v3531_v28, %v10427_v44  ;;  %v3561_v1 = vmul.f32 %v10302_v24, %v11881_v15  ;;  %v10570_v41 = vadd.f32 %v3534_v38, %v10432_v42  ;;  %v10573_v53 = vadd.f32 %v3533_v16, %v10435_v57  ;;  %v11887_v28 = vld [vmem:[#allocation58_spill] sm:$0xff] }
 0x4f5   :  { %v10576_v29 = vadd.f32 %v3536_v2, %v10449_v17  ;;  %v4043_v6 = vmul.f32 %v10409_v14, %v11882_v11  ;;  %v10582_v32 = vpop.permute.xlu0 %3992  ;;  %v10585_v44 = vadd.f32 %v3535_v8, %v10458_v3  ;;  %v10587_v10 = vadd.f32 %v3538_v33, %v3084_v45  ;;  %v11886_v17 = vld [vmem:[#allocation57_spill] sm:$0xff]  ;;  %v11888_v45 = vld [vmem:[#allocation103_spill] sm:$0xff]  ;;  %v11889_v2 = vld [vmem:[#allocation104_spill] sm:$0xff] }
 0x4f6   :  { %v10580_v4 = vpop.permute.xlu1 %3997  ;;  %v10589_v42 = vadd.f32 %v3537_v46, %v3083_v48  ;;  %v4042_v57 = vmul.f32 %v10409_v14, %v11885_v58  ;;  %v10593_v25 = vadd.f32 %v3562_v20, %v3108_v54  ;;  %v3564_v40 = vmul.f32 %v10302_v24, %v11886_v17  ;;  %v11890_v20 = vld [vmem:[#allocation59_spill] sm:$0xff]  ;;  %v11891_v46 = vld [vmem:[#allocation60_spill] sm:$0xff]  ;;  %v11892_v11 = vld [vmem:[#allocation62_spill] sm:$0xff] }
 0x4f7   :  { %11883 = vst [vmem:[#allocation141_spill] sm:$0xff] %v10587_v10  ;;  %v3563_v38 = vmul.f32 %v10302_v24, %v11887_v28  ;;  %v4560_v16 = vmul.f32 %v10444_v37, %v10314_v36  ;;  %v10601_v3 = vadd.f32 %v3561_v1, %v3107_v39  ;;  %v4045_v48 = vmul.f32 %v10409_v14, %v11888_v45  ;;  %v11893_v17 = vld [vmem:[#allocation63_spill] sm:$0xff] }
 0x4f8   :  { %11884 = vst [vmem:[#allocation142_spill] sm:$0xff] %v10589_v42  ;;  %v4044_v8 = vmul.f32 %v10409_v14, %v11889_v2  ;;  %v4559_v54 = vmul.f32 %v10444_v37, %v10316_v18  ;;  %v3566_v33 = vmul.f32 %v10302_v24, %v11890_v20  ;;  %v3565_v15 = vmul.f32 %v10302_v24, %v11891_v46 }
 0x4f9   :  { %v3568_v36 = vmul.f32 %v10302_v24, %v11892_v11  ;;  %v4107_v39 = vadd.f32 %v4043_v6, %v3590_v60  ;;  %v3567_v28 = vmul.f32 %v10302_v24, %v11893_v17  ;;  %v4106_v45 = vadd.f32 %v4042_v57, %v3589_v43  ;;  %v11894_v60 = vld [vmem:[#allocation64_spill] sm:$0xff]  ;;  %v11895_v17 = vld [vmem:[#allocation118_spill] sm:$0xff] }
 0x4fa   :  { %v10615_v1 = vpop.permute.xlu1 %4344  ;;  %v10617_v58 = vpop.permute.xlu0 %4339  ;;  %v4562_v18 = vmul.f32 %v10444_v37, %v10402_v61  ;;  %v4561_v2 = vmul.f32 %v10444_v37, %v10404_v52  ;;  %v10626_v20 = vadd.f32 %v3564_v40, %v10486_v22  ;;  %v10629_v46 = vadd.f32 %v3563_v38, %v10491_v13  ;;  %v11896_v13 = vld [vmem:[#allocation119_spill] sm:$0xff] }
 0x4fb   :  { %v3570_v6 = vmul.f32 %v10302_v24, %v11894_v60  ;;  %v4624_v11 = vadd.f32 %v4560_v16, %v4107_v39  ;;  %v4109_v42 = vadd.f32 %v4045_v48, %v3592_v31  ;;  %v4108_v10 = vadd.f32 %v4044_v8, %v3591_v63  ;;  %v11897_v63 = vld [vmem:[#allocation366_spill] sm:$0xff]  ;;  %v11899_v39 = vld [vmem:[#allocation123_spill] sm:$0xff] }
 0x4fc   :  { %v4047_v43 = vmul.f32 %v10409_v14, %v11895_v17  ;;  %v4623_v57 = vadd.f32 %v4559_v54, %v4106_v45  ;;  %v10636_v61 = vadd.f32 %v3566_v33, %v10496_v0  ;;  %v10639_v52 = vadd.f32 %v3565_v15, %v10499_v21  ;;  %v11898_v54 = vld [vmem:[#allocation122_spill] sm:$0xff] }
 0x4fd   :  { %v10642_v22 = vadd.f32 %v3568_v36, %v10502_v50  ;;  %v4046_v40 = vmul.f32 %v10409_v14, %v11896_v13  ;;  %v10647_v31 = vadd.f32 %v3567_v28, %v10511_v30  ;;  %v3569_v48 = vmul.f32 %v10302_v24, %v11897_v63  ;;  %v11900_v28 = vld [vmem:[#allocation26_spill] sm:$0xff] }
 0x4fe   :  { %v4505_v38 = vpop.permute.xlu1 %4504  ;;  %v4500_v16 = vpop.permute.xlu0 %4499  ;;  %v4626_v8 = vadd.f32 %v4562_v18, %v4109_v42  ;;  %v4625_v0 = vadd.f32 %v4561_v2, %v4108_v10  ;;  %v4049_v21 = vmul.f32 %v10409_v14, %v11898_v54  ;;  %v4693_v33 = vadd.f32 %v10479_v5, %v4624_v11  ;;  %v11901_v18 = vld [vmem:[#allocation27_spill] sm:$0xff] }
 0x4ff   :  { %v4564_v50 = vmul.f32 %v10444_v37, %v10506_v59  ;;  %v4563_v15 = vmul.f32 %v10444_v37, %v10508_v35  ;;  %v10659_v36 = vadd.f32 %v3570_v6, %v10520_v34  ;;  %v4111_v30 = vadd.f32 %v4047_v43, %v3594_v26 }
 0x500   :  { %v4048_v24 = vmul.f32 %v10409_v14, %v11899_v39  ;;  %v4692_v10 = vadd.f32 %v10479_v5, %v4623_v57  ;;  %v4110_v42 = vadd.f32 %v4046_v40, %v3593_v56  ;;  %v4051_v45 = vmul.f32 %v10409_v14, %v11900_v28  ;;  %v11903_v39 = vld [vmem:[#allocation125_spill] sm:$0xff] }
 0x501   :  { %v4050_v2 = vmul.f32 %v10409_v14, %v11901_v18  ;;  %v4079_v59 = vmul.f32 %v10409_v14, %v10372_v49  ;;  %v10673_v34 = vadd.f32 %v3569_v48, %v10529_v27  ;;  %v4078_v26 = vmul.f32 %v10409_v14, %v10374_v19  ;;  %v11902_v48 = vld [vmem:[#allocation30_spill] sm:$0xff] }
 0x502   :  { %v10670_v35 = vpop.permute.xlu1 %4007  ;;  %v4695_v60 = vadd.f32 %v10479_v5, %v4626_v8  ;;  %v4694_v56 = vadd.f32 %v10479_v5, %v4625_v0  ;;  %v10679_v6 = vpop.permute.xlu0 %4002  ;;  %v4113_v11 = vadd.f32 %v4049_v21, %v10562_v9  ;;  %v4757_v17 = vmax.f32 %v4693_v33, 0.0 }
 0x503   :  { %v4628_v43 = vadd.f32 %v4564_v50, %v4111_v30  ;;  %v4627_v57 = vadd.f32 %v4563_v15, %v4110_v42  ;;  %v4112_v49 = vadd.f32 %v4048_v24, %v10565_v55  ;;  %v4756_v13 = vmax.f32 %v4692_v10, 0.0  ;;  %v11904_v24 = vld [vmem:[#allocation128_spill] sm:$0xff]  ;;  %v11905_v10 = vld [vmem:[#allocation129_spill] sm:$0xff] }
 0x504   :  { %v4596_v27 = vmul.f32 %v10444_v37, %v10544_v62  ;;  %v4595_v19 = vmul.f32 %v10444_v37, %v10546_v51  ;;  %v4115_v40 = vadd.f32 %v4051_v45, %v10570_v41  ;;  %v4114_v63 = vadd.f32 %v4050_v2, %v10573_v53 }
 0x505   :  { %v4053_v8 = vmul.f32 %v10409_v14, %v11902_v48  ;;  %v4143_v9 = vadd.f32 %v4079_v59, %v10593_v25  ;;  %v4142_v54 = vadd.f32 %v4078_v26, %v10601_v3  ;;  %v4759_v55 = vmax.f32 %v4695_v60, 0.0  ;;  %v11906_v48 = vld [vmem:[#allocation141_spill] sm:$0xff] }
 0x506   :  { %v4355_v0 = vpop.permute.xlu1 %4354  ;;  %v4758_v21 = vmax.f32 %v4694_v56, 0.0  ;;  %v4081_v62 = vmul.f32 %v10409_v14, %v10469_v12  ;;  %v4350_v33 = vpop.permute.xlu0 %4349  ;;  %v4825_v51 = vadd.f32 %v10281_v7, %v4757_v17  ;;  %v4080_v41 = vmul.f32 %v10409_v14, %v10471_v47 }
 0x507   :  { %v4697_v53 = vadd.f32 %v10479_v5, %v4628_v43  ;;  %v4696_v50 = vadd.f32 %v10479_v5, %v4627_v57  ;;  %v4810_v25 = vadd.f32 %v10283_v23, %v4756_v13  ;;  %v4660_v15 = vadd.f32 %v4596_v27, %v4143_v9 }
 0x508   :  { %v4659_v30 = vadd.f32 %v4595_v19, %v4142_v54  ;;  %v4566_v3 = vmul.f32 %v10444_v37, %v10615_v1  ;;  %v4052_v12 = vmul.f32 %v10409_v14, %v11903_v39  ;;  %v4055_v7 = vmul.f32 %v10409_v14, %v11904_v24  ;;  %v11908_v39 = vld [vmem:[#allocation140_spill] sm:$0xff] }
 0x509   :  { %v4054_v47 = vmul.f32 %v10409_v14, %v11905_v10  ;;  %v4565_v42 = vmul.f32 %v10444_v37, %v10617_v58  ;;  %v4826_v45 = vadd.f32 %v4825_v51, %v4759_v55  ;;  %v4811_v23 = vadd.f32 %v4810_v25, %v4758_v21  ;;  %v11909_v10 = vld [vmem:[#allocation49_spill] sm:$0xff] }
 0x50a   :  { %v4515_v28 = vpop.permute.xlu1 %4514  ;;  %v4145_v18 = vadd.f32 %v4081_v62, %v10626_v20  ;;  %v4598_v2 = vmul.f32 %v10444_v37, %v4505_v38  ;;  %v4510_v1 = vpop.permute.xlu0 %4509  ;;  %v4144_v59 = vadd.f32 %v4080_v41, %v10629_v46  ;;  %v4761_v26 = vmax.f32 %v4697_v53, 0.0 }
 0x50b   :  { %v4760_v60 = vmax.f32 %v4696_v50, 0.0  ;;  %v4597_v56 = vmul.f32 %v10444_v37, %v4500_v16  ;;  %v4729_v17 = vadd.f32 %v10479_v5, %v4660_v15  ;;  %v4728_v43 = vadd.f32 %v10479_v5, %v4659_v30 }
 0x50c   :  { %v4630_v57 = vadd.f32 %v4566_v3, %v4113_v11  ;;  %v4568_v58 = vmul.f32 %v10444_v37, %v4355_v0  ;;  %v4083_v13 = vmul.f32 %v10409_v14, %v10580_v4  ;;  %v4082_v20 = vmul.f32 %v10409_v14, %v10582_v32  ;;  %v11907_v0 = vld [vmem:[#allocation142_spill] sm:$0xff] }
 0x50d   :  { %v4629_v38 = vadd.f32 %v4565_v42, %v4112_v49  ;;  %v4567_v46 = vmul.f32 %v10444_v37, %v4350_v33  ;;  %v4117_v19 = vadd.f32 %v4053_v8, %v10576_v29  ;;  %v4116_v16 = vadd.f32 %v4052_v12, %v10585_v44 }
 0x50e   :  { %v4018_v27 = vpop.permute.xlu1 %4017  ;;  %v10726_v9 = vadd.f32 %v4055_v7, %v11906_v48  ;;  %v4662_v11 = vadd.f32 %v4598_v2, %v4145_v18  ;;  %v4013_v54 = vpop.permute.xlu0 %4012  ;;  %v10729_v55 = vadd.f32 %v4054_v47, %v11907_v0  ;;  %v4827_v4 = vadd.f32 %v4826_v45, %v4761_v26 }
 0x50f   :  { %v4812_v21 = vadd.f32 %v4811_v23, %v4760_v60  ;;  %v4661_v62 = vadd.f32 %v4597_v56, %v4144_v59  ;;  %v4793_v32 = vmax.f32 %v4729_v17, 0.0  ;;  %v4792_v49 = vmax.f32 %v4728_v43, 0.0 }
 0x510   :  { %v4699_v33 = vadd.f32 %v10479_v5, %v4630_v57  ;;  %v4632_v51 = vadd.f32 %v4568_v58, %v4115_v40  ;;  %v4147_v29 = vadd.f32 %v4083_v13, %v10636_v61  ;;  %v4146_v44 = vadd.f32 %v4082_v20, %v10639_v52 }
 0x511   :  { %v4698_v8 = vadd.f32 %v10479_v5, %v4629_v38  ;;  %v4631_v41 = vadd.f32 %v4567_v46, %v4114_v63  ;;  %v4731_v50 = vadd.f32 %v10479_v5, %v4662_v11  ;;  %v4085_v25 = vmul.f32 %v10409_v14, %v10670_v35 }
 0x512   :  { %v4365_v53 = vpop.permute.xlu1 %4364  ;;  %v4600_v15 = vmul.f32 %v10444_v37, %v4515_v28  ;;  %v4360_v3 = vpop.permute.xlu0 %4359  ;;  %v4730_v40 = vadd.f32 %v10479_v5, %v4661_v62  ;;  %v4084_v61 = vmul.f32 %v10409_v14, %v10679_v6  ;;  %v4599_v52 = vmul.f32 %v10444_v37, %v4510_v1 }
 0x513   :  { %v4570_v30 = vmul.f32 %v10444_v37, %v4365_v53  ;;  %v4569_v63 = vmul.f32 %v10444_v37, %v4360_v3  ;;  %v4857_v12 = vadd.f32 %v11908_v39, %v4793_v32  ;;  %v4763_v24 = vmax.f32 %v4699_v33, 0.0 }
 0x514   :  { %v4701_v7 = vadd.f32 %v10479_v5, %v4632_v51  ;;  %v4842_v47 = vadd.f32 %v11909_v10, %v4792_v49  ;;  %v4762_v42 = vmax.f32 %v4698_v8, 0.0  ;;  %v4700_v28 = vadd.f32 %v10479_v5, %v4631_v41 }
 0x515   :  { %v4634_v35 = vadd.f32 %v4570_v30, %v4117_v19  ;;  %v4633_v45 = vadd.f32 %v4569_v63, %v4116_v16  ;;  %v4795_v18 = vmax.f32 %v4731_v50, 0.0  ;;  %v4149_v6 = vadd.f32 %v4085_v25, %v10642_v22 }
 0x516   :  { %v4525_v23 = vpop.permute.xlu1 %4524  ;;  %v4664_v2 = vadd.f32 %v4600_v15, %v4147_v29  ;;  %v4520_v59 = vpop.permute.xlu0 %4519  ;;  %v4794_v26 = vmax.f32 %v4730_v40, 0.0  ;;  %v4148_v60 = vadd.f32 %v4084_v61, %v10647_v31  ;;  %v4663_v56 = vadd.f32 %v4599_v52, %v4146_v44 }
 0x517   :  { %v4602_v1 = vmul.f32 %v10444_v37, %v4525_v23  ;;  %v4601_v17 = vmul.f32 %v10444_v37, %v4520_v59  ;;  %v4828_v43 = vadd.f32 %v4827_v4, %v4763_v24  ;;  %v4765_v57 = vmax.f32 %v4701_v7, 0.0 }
 0x518   :  { %v4703_v58 = vadd.f32 %v10479_v5, %v4634_v35  ;;  %v4813_v20 = vadd.f32 %v4812_v21, %v4762_v42  ;;  %v4764_v38 = vmax.f32 %v4700_v28, 0.0  ;;  %v4702_v46 = vadd.f32 %v10479_v5, %v4633_v45 }
 0x519   :  { %v4666_v13 = vadd.f32 %v4602_v1, %v4149_v6  ;;  %v4665_v22 = vadd.f32 %v4601_v17, %v4148_v60  ;;  %v4858_v16 = vadd.f32 %v4857_v12, %v4795_v18  ;;  %v4733_v48 = vadd.f32 %v10479_v5, %v4664_v2 }
 0x51a   :  { %v4375_v19 = vpop.permute.xlu1 %4374  ;;  %v4087_v11 = vmul.f32 %v10409_v14, %v4018_v27  ;;  %v4370_v0 = vpop.permute.xlu0 %4369  ;;  %v4843_v62 = vadd.f32 %v4842_v47, %v4794_v26  ;;  %v4732_v4 = vadd.f32 %v10479_v5, %v4663_v56  ;;  %v4086_v32 = vmul.f32 %v10409_v14, %v4013_v54 }
 0x51b   :  { %v4572_v31 = vmul.f32 %v10444_v37, %v4375_v19  ;;  %v4571_v21 = vmul.f32 %v10444_v37, %v4370_v0  ;;  %v4829_v49 = vadd.f32 %v4828_v43, %v4765_v57  ;;  %v4767_v33 = vmax.f32 %v4703_v58, 0.0 }
 0x51c   :  { %v4735_v51 = vadd.f32 %v10479_v5, %v4666_v13  ;;  %v4814_v44 = vadd.f32 %v4813_v20, %v4764_v38  ;;  %v4766_v8 = vmax.f32 %v4702_v46, 0.0  ;;  %v4734_v27 = vadd.f32 %v10479_v5, %v4665_v22 }
 0x51d   :  { %v4636_v29 = vadd.f32 %v4572_v31, %v10726_v9  ;;  %v4635_v41 = vadd.f32 %v4571_v21, %v10729_v55  ;;  %v4797_v50 = vmax.f32 %v4733_v48, 0.0  ;;  %v4151_v25 = vadd.f32 %v4087_v11, %v10659_v36 }
 0x51e   :  { %v4535_v53 = vpop.permute.xlu1 %4534  ;;  %v4530_v15 = vpop.permute.xlu0 %4529  ;;  %v4796_v30 = vmax.f32 %v4732_v4, 0.0  ;;  %v4150_v3 = vadd.f32 %v4086_v32, %v10673_v34  ;;  %v4830_v61 = vadd.f32 %v4829_v49, %v4767_v33  ;;  %v4799_v52 = vmax.f32 %v4735_v51, 0.0 }
 0x51f   :  { %v4705_v14 = vadd.f32 %v10479_v5, %v4636_v29  ;;  %v4604_v54 = vmul.f32 %v10444_v37, %v4535_v53  ;;  %v4704_v9 = vadd.f32 %v10479_v5, %v4635_v41  ;;  %v4603_v40 = vmul.f32 %v10444_v37, %v4530_v15 }
 0x520   :  { %v4815_v39 = vadd.f32 %v4814_v44, %v4766_v8  ;;  %v4798_v12 = vmax.f32 %v4734_v27, 0.0  ;;  %v4859_v7 = vadd.f32 %v4858_v16, %v4797_v50  ;;  %v4844_v47 = vadd.f32 %v4843_v62, %v4796_v30 }
 0x521   :  { %v4769_v63 = vmax.f32 %v4705_v14, 0.0  ;;  %v4668_v55 = vadd.f32 %v4604_v54, %v4151_v25  ;;  %v4768_v24 = vmax.f32 %v4704_v9, 0.0  ;;  %v4667_v36 = vadd.f32 %v4603_v40, %v4150_v3 }
 0x522   :  { %v4860_v28 = vadd.f32 %v4859_v7, %v4799_v52  ;;  %v4845_v23 = vadd.f32 %v4844_v47, %v4798_v12  ;;  %v4876_v57 = vlaneseq }
 0x523   :  { %v4831_v35 = vadd.f32 %v4830_v61, %v4769_v63  ;;  %v4737_v10 = vadd.f32 %v10479_v5, %v4668_v55  ;;  %v4816_v42 = vadd.f32 %v4815_v39, %v4768_v24  ;;  %v4736_v34 = vadd.f32 %v10479_v5, %v4667_v36 }
 0x524   :  { %v4877_v38 = vand.u32 127, %v4876_v57 }
 0x525   :  { %v4801_v45 = vmax.f32 %v4737_v10, 0.0  ;;  %v4862_v37 = vadd.f32 %v4831_v35, %v4816_v42  ;;  %v4800_v18 = vmax.f32 %v4736_v34, 0.0 }
 0x526   :  { %vm4878_vm2 = vcmp.eq.s32.totalorder %v4877_v38, 32 }
 0x527   :  { %v4861_v6 = vadd.f32 %v4860_v28, %v4801_v45  ;;  %v4863_v2 = vrot.slane %v4862_v37, 4  ;;  %v4846_v1 = vadd.f32 %v4845_v23, %v4800_v18 }
 0x529   :  { %v4864_v59 = vadd.f32 %v4863_v2, %v4862_v37  ;;  %v4869_v26 = vadd.f32 %v4861_v6, %v4846_v1 }
 0x52b   :  { %v4870_v60 = vrot.slane %v4869_v26, 4  ;;  %v4865_v56 = vrot.slane %v4864_v59, 2 }
 0x52d   :  { %v4871_v17 = vadd.f32 %v4870_v60, %v4869_v26  ;;  %v4866_v43 = vadd.f32 %v4865_v56, %v4864_v59 }
 0x52f   :  { %v4872_v58 = vrot.slane %v4871_v17, 2  ;;  %v4867_v13 = vrot.slane %v4866_v43, 1 }
 0x531   :  { %v4873_v20 = vadd.f32 %v4872_v58, %v4871_v17  ;;  %v4868_v46 = vadd.f32 %v4867_v13, %v4866_v43 }
 0x533   :  { %v4874_v5 = vrot.slane %v4873_v20, 1 }
 0x535   :  { %v4875_v22 = vadd.f32 %v4874_v5, %v4873_v20 }
 0x537   :  { %v4882_v19 = vsel %vm4881_vm1, %v4875_v22, %v4868_v46 }
 0x538   :  { %v4884_v16 = vsel %vm4878_vm2, 1.0, %v4882_v19 }
 0x539   :  { %5420 = vmatmul.mubr.f32.vlgmr.msra.gmra.mrb[0].mxu0 %v4884_v16 }
 0x60c   :  { %v4967_v48 = vpop.f32.mrb[0].mxu0 }
 0x60d   :  { %4971 = vst [vmem:[%s10779_s3] sm:$0x3] %v4967_v48  ;;  %v5421_v11 = vpop.f32.mrb[1].mxu0 }

</bundles_post_ra>
